<compile_context>
chip_gen: v7x
topology: tpu7x:2x2x1
jax: 0.10.0
libtpu: 0.0.40
codegen_flags: <defaults>
</compile_context>

<pallas_src>
import math

import jax
import jax.numpy as jnp
from jax.experimental import pallas as pl
from jax.experimental.pallas import tpu as pltpu


# ----------------------------- kernel -------------------------------------- #

def _make_basic_block_kernel(taps, pad):
    """taps: tuple of (flat_lane_offset, needs_mask) for the 27 conv taps."""

    def kernel(x_ref, w1_ref, b1_ref, w2_ref, b2_ref, m_ref, o_ref,
               buf_ref, col_ref):
        x = x_ref[0]                          # (C, DHW), lane-dense
        n = x.shape[-1]

        # Zero the haloed staging buffer once; only its centre is rewritten below,
        # so the halo stays zero for both convolutions (== conv zero padding).
        buf_ref[...] = jnp.zeros(buf_ref.shape, buf_ref.dtype)

        def conv_bn(inp, w_ref, b_ref):
            c = inp.shape[0]
            buf_ref[:, pad:pad + n] = inp
            # Build the im2col slab: row block t = tap-t shifted / masked copy.
            for t, (off, needs_mask) in enumerate(taps):
                xs = buf_ref[:, pad + off:pad + off + n]
                if needs_mask:
                    xs = xs * m_ref[t]        # zero reads that crossed a border
                col_ref[t * c:(t + 1) * c, :] = xs
            # Single K = 27*C MXU matmul; BN scale folded into w, BN shift in b.
            y = jnp.dot(w_ref[...], col_ref[...],
                        preferred_element_type=jnp.float32)
            return y + b_ref[...]

        h = jnp.maximum(conv_bn(x, w1_ref, b1_ref), 0.0)      # conv1 + bn1 + relu
        h = conv_bn(h, w2_ref, b2_ref)                         # conv2 + bn2
        o_ref[0] = jnp.maximum(h + x, 0.0)                     # + residual, relu

    return kernel


# ----------------------------- wrapper -------------------------------------- #

def basic_block(x, params):
    """Forward of BasicBlock (stride=1, downsample=None); x is NCDHW float32."""
    B, Cin, D, H, W = x.shape
    planes = params["w1"].shape[0]
    assert params["w2"].shape == (planes, planes, 3, 3, 3)
    assert Cin == planes, "downsample=None requires inplanes == planes"
    # TODO(synk): stride > 1 and the optional `downsample` branch are not implemented
    # (module defaults: stride=1, downsample=None).
    # TODO(synk): training-mode BatchNorm (batch statistics + running-stat updates) is
    # not implemented; eval-mode BN with running stats is folded into the convs.

    HW, DHW = H * W, D * H * W
    f32 = jnp.float32

    # ---- fold eval-mode BatchNorm into the conv weights / bias ---------------- #
    def fold_bn(w, bn):
        scale = bn["gamma"] * jax.lax.rsqrt(bn["var"] + bn["eps"])       # (Cout,)
        return (w * scale[:, None, None, None, None],
                bn["beta"] - bn["mean"] * scale)

    w1f, b1 = fold_bn(params["w1"].astype(f32), params["bn1"])
    w2f, b2 = fold_bn(params["w2"].astype(f32), params["bn2"])

    # Tap order t = kd*9 + kh*3 + kw; weight column order matches the row order of
    # the in-kernel im2col slab (tap-major, channel-minor).
    w1col = jnp.transpose(w1f, (0, 2, 3, 4, 1)).reshape(planes, 27 * Cin)
    w2col = jnp.transpose(w2f, (0, 2, 3, 4, 1)).reshape(planes, 27 * planes)
    b1c = b1.reshape(planes, 1)
    b2c = b2.reshape(planes, 1)

    # ---- per-tap flat lane offsets + border masks (zero-padding semantics) ---- #
    p = jnp.arange(DHW, dtype=jnp.int32)
    di, hi, wi = p // HW, (p // W) % H, p % W
    masks, taps = [], []
    for kd in range(3):
        for kh in range(3):
            for kw in range(3):
                sd, sh, sw = kd - 1, kh - 1, kw - 1
                ok = ((di + sd >= 0) & (di + sd < D) &
                      (hi + sh >= 0) & (hi + sh < H) &
                      (wi + sw >= 0) & (wi + sw < W))
                masks.append(ok.astype(f32))
                taps.append((sd * HW + sh * W + sw, (sd, sh, sw) != (0, 0, 0)))
    mask_arr = jnp.stack(masks).reshape(27, 1, DHW)
    taps = tuple(taps)

    pad = ((HW + W + 1 + 127) // 128) * 128      # lane-aligned halo width
    x_flat = x.astype(f32).reshape(B, Cin, DHW)

    kernel = _make_basic_block_kernel(taps, pad)
    out = pl.pallas_call(
        kernel,
        out_shape=jax.ShapeDtypeStruct((B, planes, DHW), f32),
        grid=(B,),
        in_specs=[
            pl.BlockSpec((1, Cin, DHW), lambda b: (b, 0, 0)),
            pl.BlockSpec((planes, 27 * Cin), lambda b: (0, 0)),
            pl.BlockSpec((planes, 1), lambda b: (0, 0)),
            pl.BlockSpec((planes, 27 * planes), lambda b: (0, 0)),
            pl.BlockSpec((planes, 1), lambda b: (0, 0)),
            pl.BlockSpec((27, 1, DHW), lambda b: (0, 0, 0)),
        ],
        out_specs=pl.BlockSpec((1, planes, DHW), lambda b: (b, 0, 0)),
        scratch_shapes=[
            pltpu.VMEM((Cin, DHW + 2 * pad), f32),      # zero-haloed staging buffer
            pltpu.VMEM((27 * Cin, DHW), f32),           # stacked im2col slab
        ],
        compiler_params=pltpu.CompilerParams(
            dimension_semantics=("parallel",),          # megacore: batch across TCs
            vmem_limit_bytes=32 * 1024 * 1024),
    )(x_flat, w1col, b1c, w2col, b2c, mask_arr)

    return out.reshape(B, planes, D, H, W)


# ----------------------------- params / reference --------------------------- #

def init_params(key, inplanes, planes):
    ks = jax.random.split(key, 4)

    def conv_init(k, cout, cin):
        # PyTorch Conv3d default: U(-1/sqrt(fan_in), 1/sqrt(fan_in)), fan_in = cin*27.
        bound = 1.0 / math.sqrt(cin * 27)
        return jax.random.uniform(k, (cout, cin, 3, 3, 3), jnp.float32, -bound, bound)

    def bn_init(k, c):
        kg, kb, km, kv = jax.random.split(k, 4)
        # NOTE: PyTorch default-initialises BN to identity (gamma=1, beta=0, running
        # stats 0/1); random values are used so the BN path is exercised non-trivially.
        return {"gamma": jax.random.uniform(kg, (c,), jnp.float32, 0.5, 1.5),
                "beta": 0.1 * jax.random.normal(kb, (c,), jnp.float32),
                "mean": 0.1 * jax.random.normal(km, (c,), jnp.float32),
                "var": jax.random.uniform(kv, (c,), jnp.float32, 0.5, 1.5),
                "eps": 1e-5}

    return {"w1": conv_init(ks[0], planes, inplanes),
            "bn1": bn_init(ks[1], planes),
            "w2": conv_init(ks[2], planes, planes),
            "bn2": bn_init(ks[3], planes)}


def basic_block_reference(x, params):
    def conv3(x, w):
        B, C, D, H, W = x.shape
        xp = jnp.pad(x, ((0, 0), (0, 0), (1, 1), (1, 1), (1, 1)))
        out = jnp.zeros((B, w.shape[0], D, H, W), jnp.float32)
        for kd in range(3):
            for kh in range(3):
                for kw in range(3):
                    patch = xp[:, :, kd:kd + D, kh:kh + H, kw:kw + W]
                    out = out + jnp.einsum(
                        "bcdhw,oc->bodhw", patch, w[:, :, kd, kh, kw],
                        precision=jax.lax.Precision.HIGHEST)
        return out

    def bn(y, p):
        scale = p["gamma"] / jnp.sqrt(p["var"] + p["eps"])
        shift = p["beta"] - p["mean"] * scale
        return (y * scale[None, :, None, None, None]
                + shift[None, :, None, None, None])

    out = jax.nn.relu(bn(conv3(x, params["w1"]), params["bn1"]))
    out = bn(conv3(out, params["w2"]), params["bn2"])
    return jax.nn.relu(out + x)


# ----------------------------- main ------------------------------------------ #

if __name__ == "__main__":
    key = jax.random.PRNGKey(0)
    kx, kp = jax.random.split(key)

    B, C, D, H, W = 2, 4, 8, 8, 8                  # small NCDHW input, DHW = 512
    x = jax.random.normal(kx, (B, C, D, H, W), jnp.float32)
    params = init_params(kp, C, C)                 # inplanes == planes == 4

    y = jax.jit(basic_block)(x, params)
    y = jax.block_until_ready(y)

    y_ref = basic_block_reference(x, params)
    assert y.shape == (B, C, D, H, W)
    err = float(jnp.max(jnp.abs(y - y_ref)))
    assert bool(jnp.allclose(y, y_ref, rtol=5e-3, atol=5e-3)), f"max err {err}"
    print("KERNEL_OK")
</pallas_src>

<mosaic_0001>
module attributes {stable_mosaic.version = 11 : i64} {
  func.func @kernel(%arg0: i32, %arg1: memref<1x4x512xf32, #tpu.memory_space<vmem>>, %arg2: memref<4x108xf32, #tpu.memory_space<vmem>>, %arg3: memref<4x1xf32, #tpu.memory_space<vmem>>, %arg4: memref<4x108xf32, #tpu.memory_space<vmem>>, %arg5: memref<4x1xf32, #tpu.memory_space<vmem>>, %arg6: memref<27x1x512xf32, #tpu.memory_space<vmem>>, %arg7: memref<1x4x512xf32, #tpu.memory_space<vmem>>, %arg8: memref<4x768xf32, #tpu.memory_space<vmem>>, %arg9: memref<108x512xf32, #tpu.memory_space<vmem>>) attributes {dimension_semantics = [#tpu.dimension_semantics<parallel>], iteration_bounds = array<i64: 2>, scalar_prefetch = 0 : i64, scratch_operands = 2 : i64, tpu.core_type = #tpu.core_type<tc>, window_params = [{transform_indices = @transform_0, window_bounds = array<i64: 1, 4, 512>}, {pipeline_mode = #tpu.pipeline_mode<synchronous>, transform_indices = @transform_1, window_bounds = array<i64: 4, 108>}, {pipeline_mode = #tpu.pipeline_mode<synchronous>, transform_indices = @transform_2, window_bounds = array<i64: 4, 1>}, {pipeline_mode = #tpu.pipeline_mode<synchronous>, transform_indices = @transform_3, window_bounds = array<i64: 4, 108>}, {pipeline_mode = #tpu.pipeline_mode<synchronous>, transform_indices = @transform_4, window_bounds = array<i64: 4, 1>}, {pipeline_mode = #tpu.pipeline_mode<synchronous>, transform_indices = @transform_5, window_bounds = array<i64: 27, 1, 512>}, {transform_indices = @transform_6, window_bounds = array<i64: 1, 4, 512>}]} {
    %c0 = arith.constant 0 : index
    %c0_0 = arith.constant 0 : index
    %c0_1 = arith.constant 0 : index
    %0 = vector.load %arg1[%c0, %c0_0, %c0_1] : memref<1x4x512xf32, #tpu.memory_space<vmem>>, vector<1x4x512xf32>
    %1 = vector.shape_cast %0 : vector<1x4x512xf32> to vector<4x512xf32>
    %cst = arith.constant 0.000000e+00 : f32
    %2 = vector.broadcast %cst : f32 to vector<4x768xf32>
    %c0_2 = arith.constant 0 : index
    %c0_3 = arith.constant 0 : index
    %3 = vector.load %arg8[%c0_2, %c0_3] : memref<4x768xf32, #tpu.memory_space<vmem>>, vector<4x768xf32>
    tpu.vector_store %arg8[%c0_2, %c0_3], %2 {strides = array<i32>} : memref<4x768xf32, #tpu.memory_space<vmem>>, vector<4x768xf32>,
    %c0_4 = arith.constant 0 : index
    %c128 = arith.constant 128 : index
    %4 = vector.load %arg8[%c0_4, %c128] : memref<4x768xf32, #tpu.memory_space<vmem>>, vector<4x512xf32>
    tpu.vector_store %arg8[%c0_4, %c128], %1 {strides = array<i32>} : memref<4x768xf32, #tpu.memory_space<vmem>>, vector<4x512xf32>,
    %c0_5 = arith.constant 0 : index
    %c55 = arith.constant 55 : index
    %5 = vector.load %arg8[%c0_5, %c55] : memref<4x768xf32, #tpu.memory_space<vmem>>, vector<4x512xf32>
    %c0_6 = arith.constant 0 : index
    %c0_7 = arith.constant 0 : index
    %c0_8 = arith.constant 0 : index
    %6 = vector.load %arg6[%c0_6, %c0_7, %c0_8] : memref<27x1x512xf32, #tpu.memory_space<vmem>>, vector<1x1x512xf32>
    %7 = vector.shape_cast %6 : vector<1x1x512xf32> to vector<1x512xf32>
    %8 = vector.broadcast %7 : vector<1x512xf32> to vector<4x512xf32>
    %9 = arith.mulf %5, %8 : vector<4x512xf32>
    %c0_9 = arith.constant 0 : index
    %c0_10 = arith.constant 0 : index
    %10 = vector.load %arg9[%c0_9, %c0_10] : memref<108x512xf32, #tpu.memory_space<vmem>>, vector<4x512xf32>
    tpu.vector_store %arg9[%c0_9, %c0_10], %9 {strides = array<i32>} : memref<108x512xf32, #tpu.memory_space<vmem>>, vector<4x512xf32>,
    %c0_11 = arith.constant 0 : index
    %c56 = arith.constant 56 : index
    %11 = vector.load %arg8[%c0_11, %c56] : memref<4x768xf32, #tpu.memory_space<vmem>>, vector<4x512xf32>
    %c1 = arith.constant 1 : index
    %c0_12 = arith.constant 0 : index
    %c0_13 = arith.constant 0 : index
    %12 = vector.load %arg6[%c1, %c0_12, %c0_13] : memref<27x1x512xf32, #tpu.memory_space<vmem>>, vector<1x1x512xf32>
    %13 = vector.shape_cast %12 : vector<1x1x512xf32> to vector<1x512xf32>
    %14 = vector.broadcast %13 : vector<1x512xf32> to vector<4x512xf32>
    %15 = arith.mulf %11, %14 : vector<4x512xf32>
    %c4 = arith.constant 4 : index
    %c0_14 = arith.constant 0 : index
    %16 = vector.load %arg9[%c4, %c0_14] : memref<108x512xf32, #tpu.memory_space<vmem>>, vector<4x512xf32>
    tpu.vector_store %arg9[%c4, %c0_14], %15 {strides = array<i32>} : memref<108x512xf32, #tpu.memory_space<vmem>>, vector<4x512xf32>,
    %c0_15 = arith.constant 0 : index
    %c57 = arith.constant 57 : index
    %17 = vector.load %arg8[%c0_15, %c57] : memref<4x768xf32, #tpu.memory_space<vmem>>, vector<4x512xf32>
    %c2 = arith.constant 2 : index
    %c0_16 = arith.constant 0 : index
    %c0_17 = arith.constant 0 : index
    %18 = vector.load %arg6[%c2, %c0_16, %c0_17] : memref<27x1x512xf32, #tpu.memory_space<vmem>>, vector<1x1x512xf32>
    %19 = vector.shape_cast %18 : vector<1x1x512xf32> to vector<1x512xf32>
    %20 = vector.broadcast %19 : vector<1x512xf32> to vector<4x512xf32>
    %21 = arith.mulf %17, %20 : vector<4x512xf32>
    %c8 = arith.constant 8 : index
    %c0_18 = arith.constant 0 : index
    %22 = vector.load %arg9[%c8, %c0_18] : memref<108x512xf32, #tpu.memory_space<vmem>>, vector<4x512xf32>
    tpu.vector_store %arg9[%c8, %c0_18], %21 {strides = array<i32>} : memref<108x512xf32, #tpu.memory_space<vmem>>, vector<4x512xf32>,
    %c0_19 = arith.constant 0 : index
    %c63 = arith.constant 63 : index
    %23 = vector.load %arg8[%c0_19, %c63] : memref<4x768xf32, #tpu.memory_space<vmem>>, vector<4x512xf32>
    %c3 = arith.constant 3 : index
    %c0_20 = arith.constant 0 : index
    %c0_21 = arith.constant 0 : index
    %24 = vector.load %arg6[%c3, %c0_20, %c0_21] : memref<27x1x512xf32, #tpu.memory_space<vmem>>, vector<1x1x512xf32>
    %25 = vector.shape_cast %24 : vector<1x1x512xf32> to vector<1x512xf32>
    %26 = vector.broadcast %25 : vector<1x512xf32> to vector<4x512xf32>
    %27 = arith.mulf %23, %26 : vector<4x512xf32>
    %c12 = arith.constant 12 : index
    %c0_22 = arith.constant 0 : index
    %28 = vector.load %arg9[%c12, %c0_22] : memref<108x512xf32, #tpu.memory_space<vmem>>, vector<4x512xf32>
    tpu.vector_store %arg9[%c12, %c0_22], %27 {strides = array<i32>} : memref<108x512xf32, #tpu.memory_space<vmem>>, vector<4x512xf32>,
    %c0_23 = arith.constant 0 : index
    %c64 = arith.constant 64 : index
    %29 = vector.load %arg8[%c0_23, %c64] : memref<4x768xf32, #tpu.memory_space<vmem>>, vector<4x512xf32>
    %c4_24 = arith.constant 4 : index
    %c0_25 = arith.constant 0 : index
    %c0_26 = arith.constant 0 : index
    %30 = vector.load %arg6[%c4_24, %c0_25, %c0_26] : memref<27x1x512xf32, #tpu.memory_space<vmem>>, vector<1x1x512xf32>
    %31 = vector.shape_cast %30 : vector<1x1x512xf32> to vector<1x512xf32>
    %32 = vector.broadcast %31 : vector<1x512xf32> to vector<4x512xf32>
    %33 = arith.mulf %29, %32 : vector<4x512xf32>
    %c16 = arith.constant 16 : index
    %c0_27 = arith.constant 0 : index
    %34 = vector.load %arg9[%c16, %c0_27] : memref<108x512xf32, #tpu.memory_space<vmem>>, vector<4x512xf32>
    tpu.vector_store %arg9[%c16, %c0_27], %33 {strides = array<i32>} : memref<108x512xf32, #tpu.memory_space<vmem>>, vector<4x512xf32>,
    %c0_28 = arith.constant 0 : index
    %c65 = arith.constant 65 : index
    %35 = vector.load %arg8[%c0_28, %c65] : memref<4x768xf32, #tpu.memory_space<vmem>>, vector<4x512xf32>
    %c5 = arith.constant 5 : index
    %c0_29 = arith.constant 0 : index
    %c0_30 = arith.constant 0 : index
    %36 = vector.load %arg6[%c5, %c0_29, %c0_30] : memref<27x1x512xf32, #tpu.memory_space<vmem>>, vector<1x1x512xf32>
    %37 = vector.shape_cast %36 : vector<1x1x512xf32> to vector<1x512xf32>
    %38 = vector.broadcast %37 : vector<1x512xf32> to vector<4x512xf32>
    %39 = arith.mulf %35, %38 : vector<4x512xf32>
    %c20 = arith.constant 20 : index
    %c0_31 = arith.constant 0 : index
    %40 = vector.load %arg9[%c20, %c0_31] : memref<108x512xf32, #tpu.memory_space<vmem>>, vector<4x512xf32>
    tpu.vector_store %arg9[%c20, %c0_31], %39 {strides = array<i32>} : memref<108x512xf32, #tpu.memory_space<vmem>>, vector<4x512xf32>,
    %c0_32 = arith.constant 0 : index
    %c71 = arith.constant 71 : index
    %41 = vector.load %arg8[%c0_32, %c71] : memref<4x768xf32, #tpu.memory_space<vmem>>, vector<4x512xf32>
    %c6 = arith.constant 6 : index
    %c0_33 = arith.constant 0 : index
    %c0_34 = arith.constant 0 : index
    %42 = vector.load %arg6[%c6, %c0_33, %c0_34] : memref<27x1x512xf32, #tpu.memory_space<vmem>>, vector<1x1x512xf32>
    %43 = vector.shape_cast %42 : vector<1x1x512xf32> to vector<1x512xf32>
    %44 = vector.broadcast %43 : vector<1x512xf32> to vector<4x512xf32>
    %45 = arith.mulf %41, %44 : vector<4x512xf32>
    %c24 = arith.constant 24 : index
    %c0_35 = arith.constant 0 : index
    %46 = vector.load %arg9[%c24, %c0_35] : memref<108x512xf32, #tpu.memory_space<vmem>>, vector<4x512xf32>
    tpu.vector_store %arg9[%c24, %c0_35], %45 {strides = array<i32>} : memref<108x512xf32, #tpu.memory_space<vmem>>, vector<4x512xf32>,
    %c0_36 = arith.constant 0 : index
    %c72 = arith.constant 72 : index
    %47 = vector.load %arg8[%c0_36, %c72] : memref<4x768xf32, #tpu.memory_space<vmem>>, vector<4x512xf32>
    %c7 = arith.constant 7 : index
    %c0_37 = arith.constant 0 : index
    %c0_38 = arith.constant 0 : index
    %48 = vector.load %arg6[%c7, %c0_37, %c0_38] : memref<27x1x512xf32, #tpu.memory_space<vmem>>, vector<1x1x512xf32>
    %49 = vector.shape_cast %48 : vector<1x1x512xf32> to vector<1x512xf32>
    %50 = vector.broadcast %49 : vector<1x512xf32> to vector<4x512xf32>
    %51 = arith.mulf %47, %50 : vector<4x512xf32>
    %c28 = arith.constant 28 : index
    %c0_39 = arith.constant 0 : index
    %52 = vector.load %arg9[%c28, %c0_39] : memref<108x512xf32, #tpu.memory_space<vmem>>, vector<4x512xf32>
    tpu.vector_store %arg9[%c28, %c0_39], %51 {strides = array<i32>} : memref<108x512xf32, #tpu.memory_space<vmem>>, vector<4x512xf32>,
    %c0_40 = arith.constant 0 : index
    %c73 = arith.constant 73 : index
    %53 = vector.load %arg8[%c0_40, %c73] : memref<4x768xf32, #tpu.memory_space<vmem>>, vector<4x512xf32>
    %c8_41 = arith.constant 8 : index
    %c0_42 = arith.constant 0 : index
    %c0_43 = arith.constant 0 : index
    %54 = vector.load %arg6[%c8_41, %c0_42, %c0_43] : memref<27x1x512xf32, #tpu.memory_space<vmem>>, vector<1x1x512xf32>
    %55 = vector.shape_cast %54 : vector<1x1x512xf32> to vector<1x512xf32>
    %56 = vector.broadcast %55 : vector<1x512xf32> to vector<4x512xf32>
    %57 = arith.mulf %53, %56 : vector<4x512xf32>
    %c32 = arith.constant 32 : index
    %c0_44 = arith.constant 0 : index
    %58 = vector.load %arg9[%c32, %c0_44] : memref<108x512xf32, #tpu.memory_space<vmem>>, vector<4x512xf32>
    tpu.vector_store %arg9[%c32, %c0_44], %57 {strides = array<i32>} : memref<108x512xf32, #tpu.memory_space<vmem>>, vector<4x512xf32>,
    %c0_45 = arith.constant 0 : index
    %c119 = arith.constant 119 : index
    %59 = vector.load %arg8[%c0_45, %c119] : memref<4x768xf32, #tpu.memory_space<vmem>>, vector<4x512xf32>
    %c9 = arith.constant 9 : index
    %c0_46 = arith.constant 0 : index
    %c0_47 = arith.constant 0 : index
    %60 = vector.load %arg6[%c9, %c0_46, %c0_47] : memref<27x1x512xf32, #tpu.memory_space<vmem>>, vector<1x1x512xf32>
    %61 = vector.shape_cast %60 : vector<1x1x512xf32> to vector<1x512xf32>
    %62 = vector.broadcast %61 : vector<1x512xf32> to vector<4x512xf32>
    %63 = arith.mulf %59, %62 : vector<4x512xf32>
    %c36 = arith.constant 36 : index
    %c0_48 = arith.constant 0 : index
    %64 = vector.load %arg9[%c36, %c0_48] : memref<108x512xf32, #tpu.memory_space<vmem>>, vector<4x512xf32>
    tpu.vector_store %arg9[%c36, %c0_48], %63 {strides = array<i32>} : memref<108x512xf32, #tpu.memory_space<vmem>>, vector<4x512xf32>,
    %c0_49 = arith.constant 0 : index
    %c120 = arith.constant 120 : index
    %65 = vector.load %arg8[%c0_49, %c120] : memref<4x768xf32, #tpu.memory_space<vmem>>, vector<4x512xf32>
    %c10 = arith.constant 10 : index
    %c0_50 = arith.constant 0 : index
    %c0_51 = arith.constant 0 : index
    %66 = vector.load %arg6[%c10, %c0_50, %c0_51] : memref<27x1x512xf32, #tpu.memory_space<vmem>>, vector<1x1x512xf32>
    %67 = vector.shape_cast %66 : vector<1x1x512xf32> to vector<1x512xf32>
    %68 = vector.broadcast %67 : vector<1x512xf32> to vector<4x512xf32>
    %69 = arith.mulf %65, %68 : vector<4x512xf32>
    %c40 = arith.constant 40 : index
    %c0_52 = arith.constant 0 : index
    %70 = vector.load %arg9[%c40, %c0_52] : memref<108x512xf32, #tpu.memory_space<vmem>>, vector<4x512xf32>
    tpu.vector_store %arg9[%c40, %c0_52], %69 {strides = array<i32>} : memref<108x512xf32, #tpu.memory_space<vmem>>, vector<4x512xf32>,
    %c0_53 = arith.constant 0 : index
    %c121 = arith.constant 121 : index
    %71 = vector.load %arg8[%c0_53, %c121] : memref<4x768xf32, #tpu.memory_space<vmem>>, vector<4x512xf32>
    %c11 = arith.constant 11 : index
    %c0_54 = arith.constant 0 : index
    %c0_55 = arith.constant 0 : index
    %72 = vector.load %arg6[%c11, %c0_54, %c0_55] : memref<27x1x512xf32, #tpu.memory_space<vmem>>, vector<1x1x512xf32>
    %73 = vector.shape_cast %72 : vector<1x1x512xf32> to vector<1x512xf32>
    %74 = vector.broadcast %73 : vector<1x512xf32> to vector<4x512xf32>
    %75 = arith.mulf %71, %74 : vector<4x512xf32>
    %c44 = arith.constant 44 : index
    %c0_56 = arith.constant 0 : index
    %76 = vector.load %arg9[%c44, %c0_56] : memref<108x512xf32, #tpu.memory_space<vmem>>, vector<4x512xf32>
    tpu.vector_store %arg9[%c44, %c0_56], %75 {strides = array<i32>} : memref<108x512xf32, #tpu.memory_space<vmem>>, vector<4x512xf32>,
    %c0_57 = arith.constant 0 : index
    %c127 = arith.constant 127 : index
    %77 = vector.load %arg8[%c0_57, %c127] : memref<4x768xf32, #tpu.memory_space<vmem>>, vector<4x512xf32>
    %c12_58 = arith.constant 12 : index
    %c0_59 = arith.constant 0 : index
    %c0_60 = arith.constant 0 : index
    %78 = vector.load %arg6[%c12_58, %c0_59, %c0_60] : memref<27x1x512xf32, #tpu.memory_space<vmem>>, vector<1x1x512xf32>
    %79 = vector.shape_cast %78 : vector<1x1x512xf32> to vector<1x512xf32>
    %80 = vector.broadcast %79 : vector<1x512xf32> to vector<4x512xf32>
    %81 = arith.mulf %77, %80 : vector<4x512xf32>
    %c48 = arith.constant 48 : index
    %c0_61 = arith.constant 0 : index
    %82 = vector.load %arg9[%c48, %c0_61] : memref<108x512xf32, #tpu.memory_space<vmem>>, vector<4x512xf32>
    tpu.vector_store %arg9[%c48, %c0_61], %81 {strides = array<i32>} : memref<108x512xf32, #tpu.memory_space<vmem>>, vector<4x512xf32>,
    %c0_62 = arith.constant 0 : index
    %c128_63 = arith.constant 128 : index
    %83 = vector.load %arg8[%c0_62, %c128_63] : memref<4x768xf32, #tpu.memory_space<vmem>>, vector<4x512xf32>
    %c52 = arith.constant 52 : index
    %c0_64 = arith.constant 0 : index
    %84 = vector.load %arg9[%c52, %c0_64] : memref<108x512xf32, #tpu.memory_space<vmem>>, vector<4x512xf32>
    tpu.vector_store %arg9[%c52, %c0_64], %83 {strides = array<i32>} : memref<108x512xf32, #tpu.memory_space<vmem>>, vector<4x512xf32>,
    %c0_65 = arith.constant 0 : index
    %c129 = arith.constant 129 : index
    %85 = vector.load %arg8[%c0_65, %c129] : memref<4x768xf32, #tpu.memory_space<vmem>>, vector<4x512xf32>
    %c14 = arith.constant 14 : index
    %c0_66 = arith.constant 0 : index
    %c0_67 = arith.constant 0 : index
    %86 = vector.load %arg6[%c14, %c0_66, %c0_67] : memref<27x1x512xf32, #tpu.memory_space<vmem>>, vector<1x1x512xf32>
    %87 = vector.shape_cast %86 : vector<1x1x512xf32> to vector<1x512xf32>
    %88 = vector.broadcast %87 : vector<1x512xf32> to vector<4x512xf32>
    %89 = arith.mulf %85, %88 : vector<4x512xf32>
    %c56_68 = arith.constant 56 : index
    %c0_69 = arith.constant 0 : index
    %90 = vector.load %arg9[%c56_68, %c0_69] : memref<108x512xf32, #tpu.memory_space<vmem>>, vector<4x512xf32>
    tpu.vector_store %arg9[%c56_68, %c0_69], %89 {strides = array<i32>} : memref<108x512xf32, #tpu.memory_space<vmem>>, vector<4x512xf32>,
    %c0_70 = arith.constant 0 : index
    %c135 = arith.constant 135 : index
    %91 = vector.load %arg8[%c0_70, %c135] : memref<4x768xf32, #tpu.memory_space<vmem>>, vector<4x512xf32>
    %c15 = arith.constant 15 : index
    %c0_71 = arith.constant 0 : index
    %c0_72 = arith.constant 0 : index
    %92 = vector.load %arg6[%c15, %c0_71, %c0_72] : memref<27x1x512xf32, #tpu.memory_space<vmem>>, vector<1x1x512xf32>
    %93 = vector.shape_cast %92 : vector<1x1x512xf32> to vector<1x512xf32>
    %94 = vector.broadcast %93 : vector<1x512xf32> to vector<4x512xf32>
    %95 = arith.mulf %91, %94 : vector<4x512xf32>
    %c60 = arith.constant 60 : index
    %c0_73 = arith.constant 0 : index
    %96 = vector.load %arg9[%c60, %c0_73] : memref<108x512xf32, #tpu.memory_space<vmem>>, vector<4x512xf32>
    tpu.vector_store %arg9[%c60, %c0_73], %95 {strides = array<i32>} : memref<108x512xf32, #tpu.memory_space<vmem>>, vector<4x512xf32>,
    %c0_74 = arith.constant 0 : index
    %c136 = arith.constant 136 : index
    %97 = vector.load %arg8[%c0_74, %c136] : memref<4x768xf32, #tpu.memory_space<vmem>>, vector<4x512xf32>
    %c16_75 = arith.constant 16 : index
    %c0_76 = arith.constant 0 : index
    %c0_77 = arith.constant 0 : index
    %98 = vector.load %arg6[%c16_75, %c0_76, %c0_77] : memref<27x1x512xf32, #tpu.memory_space<vmem>>, vector<1x1x512xf32>
    %99 = vector.shape_cast %98 : vector<1x1x512xf32> to vector<1x512xf32>
    %100 = vector.broadcast %99 : vector<1x512xf32> to vector<4x512xf32>
    %101 = arith.mulf %97, %100 : vector<4x512xf32>
    %c64_78 = arith.constant 64 : index
    %c0_79 = arith.constant 0 : index
    %102 = vector.load %arg9[%c64_78, %c0_79] : memref<108x512xf32, #tpu.memory_space<vmem>>, vector<4x512xf32>
    tpu.vector_store %arg9[%c64_78, %c0_79], %101 {strides = array<i32>} : memref<108x512xf32, #tpu.memory_space<vmem>>, vector<4x512xf32>,
    %c0_80 = arith.constant 0 : index
    %c137 = arith.constant 137 : index
    %103 = vector.load %arg8[%c0_80, %c137] : memref<4x768xf32, #tpu.memory_space<vmem>>, vector<4x512xf32>
    %c17 = arith.constant 17 : index
    %c0_81 = arith.constant 0 : index
    %c0_82 = arith.constant 0 : index
    %104 = vector.load %arg6[%c17, %c0_81, %c0_82] : memref<27x1x512xf32, #tpu.memory_space<vmem>>, vector<1x1x512xf32>
    %105 = vector.shape_cast %104 : vector<1x1x512xf32> to vector<1x512xf32>
    %106 = vector.broadcast %105 : vector<1x512xf32> to vector<4x512xf32>
    %107 = arith.mulf %103, %106 : vector<4x512xf32>
    %c68 = arith.constant 68 : index
    %c0_83 = arith.constant 0 : index
    %108 = vector.load %arg9[%c68, %c0_83] : memref<108x512xf32, #tpu.memory_space<vmem>>, vector<4x512xf32>
    tpu.vector_store %arg9[%c68, %c0_83], %107 {strides = array<i32>} : memref<108x512xf32, #tpu.memory_space<vmem>>, vector<4x512xf32>,
    %c0_84 = arith.constant 0 : index
    %c183 = arith.constant 183 : index
    %109 = vector.load %arg8[%c0_84, %c183] : memref<4x768xf32, #tpu.memory_space<vmem>>, vector<4x512xf32>
    %c18 = arith.constant 18 : index
    %c0_85 = arith.constant 0 : index
    %c0_86 = arith.constant 0 : index
    %110 = vector.load %arg6[%c18, %c0_85, %c0_86] : memref<27x1x512xf32, #tpu.memory_space<vmem>>, vector<1x1x512xf32>
    %111 = vector.shape_cast %110 : vector<1x1x512xf32> to vector<1x512xf32>
    %112 = vector.broadcast %111 : vector<1x512xf32> to vector<4x512xf32>
    %113 = arith.mulf %109, %112 : vector<4x512xf32>
    %c72_87 = arith.constant 72 : index
    %c0_88 = arith.constant 0 : index
    %114 = vector.load %arg9[%c72_87, %c0_88] : memref<108x512xf32, #tpu.memory_space<vmem>>, vector<4x512xf32>
    tpu.vector_store %arg9[%c72_87, %c0_88], %113 {strides = array<i32>} : memref<108x512xf32, #tpu.memory_space<vmem>>, vector<4x512xf32>,
    %c0_89 = arith.constant 0 : index
    %c184 = arith.constant 184 : index
    %115 = vector.load %arg8[%c0_89, %c184] : memref<4x768xf32, #tpu.memory_space<vmem>>, vector<4x512xf32>
    %c19 = arith.constant 19 : index
    %c0_90 = arith.constant 0 : index
    %c0_91 = arith.constant 0 : index
    %116 = vector.load %arg6[%c19, %c0_90, %c0_91] : memref<27x1x512xf32, #tpu.memory_space<vmem>>, vector<1x1x512xf32>
    %117 = vector.shape_cast %116 : vector<1x1x512xf32> to vector<1x512xf32>
    %118 = vector.broadcast %117 : vector<1x512xf32> to vector<4x512xf32>
    %119 = arith.mulf %115, %118 : vector<4x512xf32>
    %c76 = arith.constant 76 : index
    %c0_92 = arith.constant 0 : index
    %120 = vector.load %arg9[%c76, %c0_92] : memref<108x512xf32, #tpu.memory_space<vmem>>, vector<4x512xf32>
    tpu.vector_store %arg9[%c76, %c0_92], %119 {strides = array<i32>} : memref<108x512xf32, #tpu.memory_space<vmem>>, vector<4x512xf32>,
    %c0_93 = arith.constant 0 : index
    %c185 = arith.constant 185 : index
    %121 = vector.load %arg8[%c0_93, %c185] : memref<4x768xf32, #tpu.memory_space<vmem>>, vector<4x512xf32>
    %c20_94 = arith.constant 20 : index
    %c0_95 = arith.constant 0 : index
    %c0_96 = arith.constant 0 : index
    %122 = vector.load %arg6[%c20_94, %c0_95, %c0_96] : memref<27x1x512xf32, #tpu.memory_space<vmem>>, vector<1x1x512xf32>
    %123 = vector.shape_cast %122 : vector<1x1x512xf32> to vector<1x512xf32>
    %124 = vector.broadcast %123 : vector<1x512xf32> to vector<4x512xf32>
    %125 = arith.mulf %121, %124 : vector<4x512xf32>
    %c80 = arith.constant 80 : index
    %c0_97 = arith.constant 0 : index
    %126 = vector.load %arg9[%c80, %c0_97] : memref<108x512xf32, #tpu.memory_space<vmem>>, vector<4x512xf32>
    tpu.vector_store %arg9[%c80, %c0_97], %125 {strides = array<i32>} : memref<108x512xf32, #tpu.memory_space<vmem>>, vector<4x512xf32>,
    %c0_98 = arith.constant 0 : index
    %c191 = arith.constant 191 : index
    %127 = vector.load %arg8[%c0_98, %c191] : memref<4x768xf32, #tpu.memory_space<vmem>>, vector<4x512xf32>
    %c21 = arith.constant 21 : index
    %c0_99 = arith.constant 0 : index
    %c0_100 = arith.constant 0 : index
    %128 = vector.load %arg6[%c21, %c0_99, %c0_100] : memref<27x1x512xf32, #tpu.memory_space<vmem>>, vector<1x1x512xf32>
    %129 = vector.shape_cast %128 : vector<1x1x512xf32> to vector<1x512xf32>
    %130 = vector.broadcast %129 : vector<1x512xf32> to vector<4x512xf32>
    %131 = arith.mulf %127, %130 : vector<4x512xf32>
    %c84 = arith.constant 84 : index
    %c0_101 = arith.constant 0 : index
    %132 = vector.load %arg9[%c84, %c0_101] : memref<108x512xf32, #tpu.memory_space<vmem>>, vector<4x512xf32>
    tpu.vector_store %arg9[%c84, %c0_101], %131 {strides = array<i32>} : memref<108x512xf32, #tpu.memory_space<vmem>>, vector<4x512xf32>,
    %c0_102 = arith.constant 0 : index
    %c192 = arith.constant 192 : index
    %133 = vector.load %arg8[%c0_102, %c192] : memref<4x768xf32, #tpu.memory_space<vmem>>, vector<4x512xf32>
    %c22 = arith.constant 22 : index
    %c0_103 = arith.constant 0 : index
    %c0_104 = arith.constant 0 : index
    %134 = vector.load %arg6[%c22, %c0_103, %c0_104] : memref<27x1x512xf32, #tpu.memory_space<vmem>>, vector<1x1x512xf32>
    %135 = vector.shape_cast %134 : vector<1x1x512xf32> to vector<1x512xf32>
    %136 = vector.broadcast %135 : vector<1x512xf32> to vector<4x512xf32>
    %137 = arith.mulf %133, %136 : vector<4x512xf32>
    %c88 = arith.constant 88 : index
    %c0_105 = arith.constant 0 : index
    %138 = vector.load %arg9[%c88, %c0_105] : memref<108x512xf32, #tpu.memory_space<vmem>>, vector<4x512xf32>
    tpu.vector_store %arg9[%c88, %c0_105], %137 {strides = array<i32>} : memref<108x512xf32, #tpu.memory_space<vmem>>, vector<4x512xf32>,
    %c0_106 = arith.constant 0 : index
    %c193 = arith.constant 193 : index
    %139 = vector.load %arg8[%c0_106, %c193] : memref<4x768xf32, #tpu.memory_space<vmem>>, vector<4x512xf32>
    %c23 = arith.constant 23 : index
    %c0_107 = arith.constant 0 : index
    %c0_108 = arith.constant 0 : index
    %140 = vector.load %arg6[%c23, %c0_107, %c0_108] : memref<27x1x512xf32, #tpu.memory_space<vmem>>, vector<1x1x512xf32>
    %141 = vector.shape_cast %140 : vector<1x1x512xf32> to vector<1x512xf32>
    %142 = vector.broadcast %141 : vector<1x512xf32> to vector<4x512xf32>
    %143 = arith.mulf %139, %142 : vector<4x512xf32>
    %c92 = arith.constant 92 : index
    %c0_109 = arith.constant 0 : index
    %144 = vector.load %arg9[%c92, %c0_109] : memref<108x512xf32, #tpu.memory_space<vmem>>, vector<4x512xf32>
    tpu.vector_store %arg9[%c92, %c0_109], %143 {strides = array<i32>} : memref<108x512xf32, #tpu.memory_space<vmem>>, vector<4x512xf32>,
    %c0_110 = arith.constant 0 : index
    %c199 = arith.constant 199 : index
    %145 = vector.load %arg8[%c0_110, %c199] : memref<4x768xf32, #tpu.memory_space<vmem>>, vector<4x512xf32>
    %c24_111 = arith.constant 24 : index
    %c0_112 = arith.constant 0 : index
    %c0_113 = arith.constant 0 : index
    %146 = vector.load %arg6[%c24_111, %c0_112, %c0_113] : memref<27x1x512xf32, #tpu.memory_space<vmem>>, vector<1x1x512xf32>
    %147 = vector.shape_cast %146 : vector<1x1x512xf32> to vector<1x512xf32>
    %148 = vector.broadcast %147 : vector<1x512xf32> to vector<4x512xf32>
    %149 = arith.mulf %145, %148 : vector<4x512xf32>
    %c96 = arith.constant 96 : index
    %c0_114 = arith.constant 0 : index
    %150 = vector.load %arg9[%c96, %c0_114] : memref<108x512xf32, #tpu.memory_space<vmem>>, vector<4x512xf32>
    tpu.vector_store %arg9[%c96, %c0_114], %149 {strides = array<i32>} : memref<108x512xf32, #tpu.memory_space<vmem>>, vector<4x512xf32>,
    %c0_115 = arith.constant 0 : index
    %c200 = arith.constant 200 : index
    %151 = vector.load %arg8[%c0_115, %c200] : memref<4x768xf32, #tpu.memory_space<vmem>>, vector<4x512xf32>
    %c25 = arith.constant 25 : index
    %c0_116 = arith.constant 0 : index
    %c0_117 = arith.constant 0 : index
    %152 = vector.load %arg6[%c25, %c0_116, %c0_117] : memref<27x1x512xf32, #tpu.memory_space<vmem>>, vector<1x1x512xf32>
    %153 = vector.shape_cast %152 : vector<1x1x512xf32> to vector<1x512xf32>
    %154 = vector.broadcast %153 : vector<1x512xf32> to vector<4x512xf32>
    %155 = arith.mulf %151, %154 : vector<4x512xf32>
    %c100 = arith.constant 100 : index
    %c0_118 = arith.constant 0 : index
    %156 = vector.load %arg9[%c100, %c0_118] : memref<108x512xf32, #tpu.memory_space<vmem>>, vector<4x512xf32>
    tpu.vector_store %arg9[%c100, %c0_118], %155 {strides = array<i32>} : memref<108x512xf32, #tpu.memory_space<vmem>>, vector<4x512xf32>,
    %c0_119 = arith.constant 0 : index
    %c201 = arith.constant 201 : index
    %157 = vector.load %arg8[%c0_119, %c201] : memref<4x768xf32, #tpu.memory_space<vmem>>, vector<4x512xf32>
    %c26 = arith.constant 26 : index
    %c0_120 = arith.constant 0 : index
    %c0_121 = arith.constant 0 : index
    %158 = vector.load %arg6[%c26, %c0_120, %c0_121] : memref<27x1x512xf32, #tpu.memory_space<vmem>>, vector<1x1x512xf32>
    %159 = vector.shape_cast %158 : vector<1x1x512xf32> to vector<1x512xf32>
    %160 = vector.broadcast %159 : vector<1x512xf32> to vector<4x512xf32>
    %161 = arith.mulf %157, %160 : vector<4x512xf32>
    %c104 = arith.constant 104 : index
    %c0_122 = arith.constant 0 : index
    %162 = vector.load %arg9[%c104, %c0_122] : memref<108x512xf32, #tpu.memory_space<vmem>>, vector<4x512xf32>
    tpu.vector_store %arg9[%c104, %c0_122], %161 {strides = array<i32>} : memref<108x512xf32, #tpu.memory_space<vmem>>, vector<4x512xf32>,
    %c0_123 = arith.constant 0 : index
    %c0_124 = arith.constant 0 : index
    %163 = vector.load %arg2[%c0_123, %c0_124] : memref<4x108xf32, #tpu.memory_space<vmem>>, vector<4x108xf32>
    %c0_125 = arith.constant 0 : index
    %c0_126 = arith.constant 0 : index
    %164 = vector.load %arg9[%c0_125, %c0_126] : memref<108x512xf32, #tpu.memory_space<vmem>>, vector<108x512xf32>
    %cst_127 = arith.constant dense<0.000000e+00> : vector<4x512xf32>
    %165 = tpu.matmul %163, %164, %cst_127 {dimension_numbers = #tpu.dot_dimension_numbers<[1], [0], [0], [1], [0, 0, 1, 1], [], []>} : vector<4x108xf32>, vector<108x512xf32>, vector<4x512xf32> -> vector<4x512xf32>
    %c0_128 = arith.constant 0 : index
    %c0_129 = arith.constant 0 : index
    %166 = vector.load %arg3[%c0_128, %c0_129] : memref<4x1xf32, #tpu.memory_space<vmem>>, vector<4x1xf32>
    %167 = vector.broadcast %166 : vector<4x1xf32> to vector<4x512xf32>
    %168 = arith.addf %165, %167 : vector<4x512xf32>
    %cst_130 = arith.constant 0.000000e+00 : f32
    %169 = vector.broadcast %cst_130 : f32 to vector<4x512xf32>
    %170 = arith.maximumf %168, %169 : vector<4x512xf32>
    %c0_131 = arith.constant 0 : index
    %c128_132 = arith.constant 128 : index
    %171 = vector.load %arg8[%c0_131, %c128_132] : memref<4x768xf32, #tpu.memory_space<vmem>>, vector<4x512xf32>
    tpu.vector_store %arg8[%c0_131, %c128_132], %170 {strides = array<i32>} : memref<4x768xf32, #tpu.memory_space<vmem>>, vector<4x512xf32>,
    %c0_133 = arith.constant 0 : index
    %c55_134 = arith.constant 55 : index
    %172 = vector.load %arg8[%c0_133, %c55_134] : memref<4x768xf32, #tpu.memory_space<vmem>>, vector<4x512xf32>
    %c0_135 = arith.constant 0 : index
    %c0_136 = arith.constant 0 : index
    %c0_137 = arith.constant 0 : index
    %173 = vector.load %arg6[%c0_135, %c0_136, %c0_137] : memref<27x1x512xf32, #tpu.memory_space<vmem>>, vector<1x1x512xf32>
    %174 = vector.shape_cast %173 : vector<1x1x512xf32> to vector<1x512xf32>
    %175 = vector.broadcast %174 : vector<1x512xf32> to vector<4x512xf32>
    %176 = arith.mulf %172, %175 : vector<4x512xf32>
    %c0_138 = arith.constant 0 : index
    %c0_139 = arith.constant 0 : index
    %177 = vector.load %arg9[%c0_138, %c0_139] : memref<108x512xf32, #tpu.memory_space<vmem>>, vector<4x512xf32>
    tpu.vector_store %arg9[%c0_138, %c0_139], %176 {strides = array<i32>} : memref<108x512xf32, #tpu.memory_space<vmem>>, vector<4x512xf32>,
    %c0_140 = arith.constant 0 : index
    %c56_141 = arith.constant 56 : index
    %178 = vector.load %arg8[%c0_140, %c56_141] : memref<4x768xf32, #tpu.memory_space<vmem>>, vector<4x512xf32>
    %c1_142 = arith.constant 1 : index
    %c0_143 = arith.constant 0 : index
    %c0_144 = arith.constant 0 : index
    %179 = vector.load %arg6[%c1_142, %c0_143, %c0_144] : memref<27x1x512xf32, #tpu.memory_space<vmem>>, vector<1x1x512xf32>
    %180 = vector.shape_cast %179 : vector<1x1x512xf32> to vector<1x512xf32>
    %181 = vector.broadcast %180 : vector<1x512xf32> to vector<4x512xf32>
    %182 = arith.mulf %178, %181 : vector<4x512xf32>
    %c4_145 = arith.constant 4 : index
    %c0_146 = arith.constant 0 : index
    %183 = vector.load %arg9[%c4_145, %c0_146] : memref<108x512xf32, #tpu.memory_space<vmem>>, vector<4x512xf32>
    tpu.vector_store %arg9[%c4_145, %c0_146], %182 {strides = array<i32>} : memref<108x512xf32, #tpu.memory_space<vmem>>, vector<4x512xf32>,
    %c0_147 = arith.constant 0 : index
    %c57_148 = arith.constant 57 : index
    %184 = vector.load %arg8[%c0_147, %c57_148] : memref<4x768xf32, #tpu.memory_space<vmem>>, vector<4x512xf32>
    %c2_149 = arith.constant 2 : index
    %c0_150 = arith.constant 0 : index
    %c0_151 = arith.constant 0 : index
    %185 = vector.load %arg6[%c2_149, %c0_150, %c0_151] : memref<27x1x512xf32, #tpu.memory_space<vmem>>, vector<1x1x512xf32>
    %186 = vector.shape_cast %185 : vector<1x1x512xf32> to vector<1x512xf32>
    %187 = vector.broadcast %186 : vector<1x512xf32> to vector<4x512xf32>
    %188 = arith.mulf %184, %187 : vector<4x512xf32>
    %c8_152 = arith.constant 8 : index
    %c0_153 = arith.constant 0 : index
    %189 = vector.load %arg9[%c8_152, %c0_153] : memref<108x512xf32, #tpu.memory_space<vmem>>, vector<4x512xf32>
    tpu.vector_store %arg9[%c8_152, %c0_153], %188 {strides = array<i32>} : memref<108x512xf32, #tpu.memory_space<vmem>>, vector<4x512xf32>,
    %c0_154 = arith.constant 0 : index
    %c63_155 = arith.constant 63 : index
    %190 = vector.load %arg8[%c0_154, %c63_155] : memref<4x768xf32, #tpu.memory_space<vmem>>, vector<4x512xf32>
    %c3_156 = arith.constant 3 : index
    %c0_157 = arith.constant 0 : index
    %c0_158 = arith.constant 0 : index
    %191 = vector.load %arg6[%c3_156, %c0_157, %c0_158] : memref<27x1x512xf32, #tpu.memory_space<vmem>>, vector<1x1x512xf32>
    %192 = vector.shape_cast %191 : vector<1x1x512xf32> to vector<1x512xf32>
    %193 = vector.broadcast %192 : vector<1x512xf32> to vector<4x512xf32>
    %194 = arith.mulf %190, %193 : vector<4x512xf32>
    %c12_159 = arith.constant 12 : index
    %c0_160 = arith.constant 0 : index
    %195 = vector.load %arg9[%c12_159, %c0_160] : memref<108x512xf32, #tpu.memory_space<vmem>>, vector<4x512xf32>
    tpu.vector_store %arg9[%c12_159, %c0_160], %194 {strides = array<i32>} : memref<108x512xf32, #tpu.memory_space<vmem>>, vector<4x512xf32>,
    %c0_161 = arith.constant 0 : index
    %c64_162 = arith.constant 64 : index
    %196 = vector.load %arg8[%c0_161, %c64_162] : memref<4x768xf32, #tpu.memory_space<vmem>>, vector<4x512xf32>
    %c4_163 = arith.constant 4 : index
    %c0_164 = arith.constant 0 : index
    %c0_165 = arith.constant 0 : index
    %197 = vector.load %arg6[%c4_163, %c0_164, %c0_165] : memref<27x1x512xf32, #tpu.memory_space<vmem>>, vector<1x1x512xf32>
    %198 = vector.shape_cast %197 : vector<1x1x512xf32> to vector<1x512xf32>
    %199 = vector.broadcast %198 : vector<1x512xf32> to vector<4x512xf32>
    %200 = arith.mulf %196, %199 : vector<4x512xf32>
    %c16_166 = arith.constant 16 : index
    %c0_167 = arith.constant 0 : index
    %201 = vector.load %arg9[%c16_166, %c0_167] : memref<108x512xf32, #tpu.memory_space<vmem>>, vector<4x512xf32>
    tpu.vector_store %arg9[%c16_166, %c0_167], %200 {strides = array<i32>} : memref<108x512xf32, #tpu.memory_space<vmem>>, vector<4x512xf32>,
    %c0_168 = arith.constant 0 : index
    %c65_169 = arith.constant 65 : index
    %202 = vector.load %arg8[%c0_168, %c65_169] : memref<4x768xf32, #tpu.memory_space<vmem>>, vector<4x512xf32>
    %c5_170 = arith.constant 5 : index
    %c0_171 = arith.constant 0 : index
    %c0_172 = arith.constant 0 : index
    %203 = vector.load %arg6[%c5_170, %c0_171, %c0_172] : memref<27x1x512xf32, #tpu.memory_space<vmem>>, vector<1x1x512xf32>
    %204 = vector.shape_cast %203 : vector<1x1x512xf32> to vector<1x512xf32>
    %205 = vector.broadcast %204 : vector<1x512xf32> to vector<4x512xf32>
    %206 = arith.mulf %202, %205 : vector<4x512xf32>
    %c20_173 = arith.constant 20 : index
    %c0_174 = arith.constant 0 : index
    %207 = vector.load %arg9[%c20_173, %c0_174] : memref<108x512xf32, #tpu.memory_space<vmem>>, vector<4x512xf32>
    tpu.vector_store %arg9[%c20_173, %c0_174], %206 {strides = array<i32>} : memref<108x512xf32, #tpu.memory_space<vmem>>, vector<4x512xf32>,
    %c0_175 = arith.constant 0 : index
    %c71_176 = arith.constant 71 : index
    %208 = vector.load %arg8[%c0_175, %c71_176] : memref<4x768xf32, #tpu.memory_space<vmem>>, vector<4x512xf32>
    %c6_177 = arith.constant 6 : index
    %c0_178 = arith.constant 0 : index
    %c0_179 = arith.constant 0 : index
    %209 = vector.load %arg6[%c6_177, %c0_178, %c0_179] : memref<27x1x512xf32, #tpu.memory_space<vmem>>, vector<1x1x512xf32>
    %210 = vector.shape_cast %209 : vector<1x1x512xf32> to vector<1x512xf32>
    %211 = vector.broadcast %210 : vector<1x512xf32> to vector<4x512xf32>
    %212 = arith.mulf %208, %211 : vector<4x512xf32>
    %c24_180 = arith.constant 24 : index
    %c0_181 = arith.constant 0 : index
    %213 = vector.load %arg9[%c24_180, %c0_181] : memref<108x512xf32, #tpu.memory_space<vmem>>, vector<4x512xf32>
    tpu.vector_store %arg9[%c24_180, %c0_181], %212 {strides = array<i32>} : memref<108x512xf32, #tpu.memory_space<vmem>>, vector<4x512xf32>,
    %c0_182 = arith.constant 0 : index
    %c72_183 = arith.constant 72 : index
    %214 = vector.load %arg8[%c0_182, %c72_183] : memref<4x768xf32, #tpu.memory_space<vmem>>, vector<4x512xf32>
    %c7_184 = arith.constant 7 : index
    %c0_185 = arith.constant 0 : index
    %c0_186 = arith.constant 0 : index
    %215 = vector.load %arg6[%c7_184, %c0_185, %c0_186] : memref<27x1x512xf32, #tpu.memory_space<vmem>>, vector<1x1x512xf32>
    %216 = vector.shape_cast %215 : vector<1x1x512xf32> to vector<1x512xf32>
    %217 = vector.broadcast %216 : vector<1x512xf32> to vector<4x512xf32>
    %218 = arith.mulf %214, %217 : vector<4x512xf32>
    %c28_187 = arith.constant 28 : index
    %c0_188 = arith.constant 0 : index
    %219 = vector.load %arg9[%c28_187, %c0_188] : memref<108x512xf32, #tpu.memory_space<vmem>>, vector<4x512xf32>
    tpu.vector_store %arg9[%c28_187, %c0_188], %218 {strides = array<i32>} : memref<108x512xf32, #tpu.memory_space<vmem>>, vector<4x512xf32>,
    %c0_189 = arith.constant 0 : index
    %c73_190 = arith.constant 73 : index
    %220 = vector.load %arg8[%c0_189, %c73_190] : memref<4x768xf32, #tpu.memory_space<vmem>>, vector<4x512xf32>
    %c8_191 = arith.constant 8 : index
    %c0_192 = arith.constant 0 : index
    %c0_193 = arith.constant 0 : index
    %221 = vector.load %arg6[%c8_191, %c0_192, %c0_193] : memref<27x1x512xf32, #tpu.memory_space<vmem>>, vector<1x1x512xf32>
    %222 = vector.shape_cast %221 : vector<1x1x512xf32> to vector<1x512xf32>
    %223 = vector.broadcast %222 : vector<1x512xf32> to vector<4x512xf32>
    %224 = arith.mulf %220, %223 : vector<4x512xf32>
    %c32_194 = arith.constant 32 : index
    %c0_195 = arith.constant 0 : index
    %225 = vector.load %arg9[%c32_194, %c0_195] : memref<108x512xf32, #tpu.memory_space<vmem>>, vector<4x512xf32>
    tpu.vector_store %arg9[%c32_194, %c0_195], %224 {strides = array<i32>} : memref<108x512xf32, #tpu.memory_space<vmem>>, vector<4x512xf32>,
    %c0_196 = arith.constant 0 : index
    %c119_197 = arith.constant 119 : index
    %226 = vector.load %arg8[%c0_196, %c119_197] : memref<4x768xf32, #tpu.memory_space<vmem>>, vector<4x512xf32>
    %c9_198 = arith.constant 9 : index
    %c0_199 = arith.constant 0 : index
    %c0_200 = arith.constant 0 : index
    %227 = vector.load %arg6[%c9_198, %c0_199, %c0_200] : memref<27x1x512xf32, #tpu.memory_space<vmem>>, vector<1x1x512xf32>
    %228 = vector.shape_cast %227 : vector<1x1x512xf32> to vector<1x512xf32>
    %229 = vector.broadcast %228 : vector<1x512xf32> to vector<4x512xf32>
    %230 = arith.mulf %226, %229 : vector<4x512xf32>
    %c36_201 = arith.constant 36 : index
    %c0_202 = arith.constant 0 : index
    %231 = vector.load %arg9[%c36_201, %c0_202] : memref<108x512xf32, #tpu.memory_space<vmem>>, vector<4x512xf32>
    tpu.vector_store %arg9[%c36_201, %c0_202], %230 {strides = array<i32>} : memref<108x512xf32, #tpu.memory_space<vmem>>, vector<4x512xf32>,
    %c0_203 = arith.constant 0 : index
    %c120_204 = arith.constant 120 : index
    %232 = vector.load %arg8[%c0_203, %c120_204] : memref<4x768xf32, #tpu.memory_space<vmem>>, vector<4x512xf32>
    %c10_205 = arith.constant 10 : index
    %c0_206 = arith.constant 0 : index
    %c0_207 = arith.constant 0 : index
    %233 = vector.load %arg6[%c10_205, %c0_206, %c0_207] : memref<27x1x512xf32, #tpu.memory_space<vmem>>, vector<1x1x512xf32>
    %234 = vector.shape_cast %233 : vector<1x1x512xf32> to vector<1x512xf32>
    %235 = vector.broadcast %234 : vector<1x512xf32> to vector<4x512xf32>
    %236 = arith.mulf %232, %235 : vector<4x512xf32>
    %c40_208 = arith.constant 40 : index
    %c0_209 = arith.constant 0 : index
    %237 = vector.load %arg9[%c40_208, %c0_209] : memref<108x512xf32, #tpu.memory_space<vmem>>, vector<4x512xf32>
    tpu.vector_store %arg9[%c40_208, %c0_209], %236 {strides = array<i32>} : memref<108x512xf32, #tpu.memory_space<vmem>>, vector<4x512xf32>,
    %c0_210 = arith.constant 0 : index
    %c121_211 = arith.constant 121 : index
    %238 = vector.load %arg8[%c0_210, %c121_211] : memref<4x768xf32, #tpu.memory_space<vmem>>, vector<4x512xf32>
    %c11_212 = arith.constant 11 : index
    %c0_213 = arith.constant 0 : index
    %c0_214 = arith.constant 0 : index
    %239 = vector.load %arg6[%c11_212, %c0_213, %c0_214] : memref<27x1x512xf32, #tpu.memory_space<vmem>>, vector<1x1x512xf32>
    %240 = vector.shape_cast %239 : vector<1x1x512xf32> to vector<1x512xf32>
    %241 = vector.broadcast %240 : vector<1x512xf32> to vector<4x512xf32>
    %242 = arith.mulf %238, %241 : vector<4x512xf32>
    %c44_215 = arith.constant 44 : index
    %c0_216 = arith.constant 0 : index
    %243 = vector.load %arg9[%c44_215, %c0_216] : memref<108x512xf32, #tpu.memory_space<vmem>>, vector<4x512xf32>
    tpu.vector_store %arg9[%c44_215, %c0_216], %242 {strides = array<i32>} : memref<108x512xf32, #tpu.memory_space<vmem>>, vector<4x512xf32>,
    %c0_217 = arith.constant 0 : index
    %c127_218 = arith.constant 127 : index
    %244 = vector.load %arg8[%c0_217, %c127_218] : memref<4x768xf32, #tpu.memory_space<vmem>>, vector<4x512xf32>
    %c12_219 = arith.constant 12 : index
    %c0_220 = arith.constant 0 : index
    %c0_221 = arith.constant 0 : index
    %245 = vector.load %arg6[%c12_219, %c0_220, %c0_221] : memref<27x1x512xf32, #tpu.memory_space<vmem>>, vector<1x1x512xf32>
    %246 = vector.shape_cast %245 : vector<1x1x512xf32> to vector<1x512xf32>
    %247 = vector.broadcast %246 : vector<1x512xf32> to vector<4x512xf32>
    %248 = arith.mulf %244, %247 : vector<4x512xf32>
    %c48_222 = arith.constant 48 : index
    %c0_223 = arith.constant 0 : index
    %249 = vector.load %arg9[%c48_222, %c0_223] : memref<108x512xf32, #tpu.memory_space<vmem>>, vector<4x512xf32>
    tpu.vector_store %arg9[%c48_222, %c0_223], %248 {strides = array<i32>} : memref<108x512xf32, #tpu.memory_space<vmem>>, vector<4x512xf32>,
    %c0_224 = arith.constant 0 : index
    %c128_225 = arith.constant 128 : index
    %250 = vector.load %arg8[%c0_224, %c128_225] : memref<4x768xf32, #tpu.memory_space<vmem>>, vector<4x512xf32>
    %c52_226 = arith.constant 52 : index
    %c0_227 = arith.constant 0 : index
    %251 = vector.load %arg9[%c52_226, %c0_227] : memref<108x512xf32, #tpu.memory_space<vmem>>, vector<4x512xf32>
    tpu.vector_store %arg9[%c52_226, %c0_227], %250 {strides = array<i32>} : memref<108x512xf32, #tpu.memory_space<vmem>>, vector<4x512xf32>,
    %c0_228 = arith.constant 0 : index
    %c129_229 = arith.constant 129 : index
    %252 = vector.load %arg8[%c0_228, %c129_229] : memref<4x768xf32, #tpu.memory_space<vmem>>, vector<4x512xf32>
    %c14_230 = arith.constant 14 : index
    %c0_231 = arith.constant 0 : index
    %c0_232 = arith.constant 0 : index
    %253 = vector.load %arg6[%c14_230, %c0_231, %c0_232] : memref<27x1x512xf32, #tpu.memory_space<vmem>>, vector<1x1x512xf32>
    %254 = vector.shape_cast %253 : vector<1x1x512xf32> to vector<1x512xf32>
    %255 = vector.broadcast %254 : vector<1x512xf32> to vector<4x512xf32>
    %256 = arith.mulf %252, %255 : vector<4x512xf32>
    %c56_233 = arith.constant 56 : index
    %c0_234 = arith.constant 0 : index
    %257 = vector.load %arg9[%c56_233, %c0_234] : memref<108x512xf32, #tpu.memory_space<vmem>>, vector<4x512xf32>
    tpu.vector_store %arg9[%c56_233, %c0_234], %256 {strides = array<i32>} : memref<108x512xf32, #tpu.memory_space<vmem>>, vector<4x512xf32>,
    %c0_235 = arith.constant 0 : index
    %c135_236 = arith.constant 135 : index
    %258 = vector.load %arg8[%c0_235, %c135_236] : memref<4x768xf32, #tpu.memory_space<vmem>>, vector<4x512xf32>
    %c15_237 = arith.constant 15 : index
    %c0_238 = arith.constant 0 : index
    %c0_239 = arith.constant 0 : index
    %259 = vector.load %arg6[%c15_237, %c0_238, %c0_239] : memref<27x1x512xf32, #tpu.memory_space<vmem>>, vector<1x1x512xf32>
    %260 = vector.shape_cast %259 : vector<1x1x512xf32> to vector<1x512xf32>
    %261 = vector.broadcast %260 : vector<1x512xf32> to vector<4x512xf32>
    %262 = arith.mulf %258, %261 : vector<4x512xf32>
    %c60_240 = arith.constant 60 : index
    %c0_241 = arith.constant 0 : index
    %263 = vector.load %arg9[%c60_240, %c0_241] : memref<108x512xf32, #tpu.memory_space<vmem>>, vector<4x512xf32>
    tpu.vector_store %arg9[%c60_240, %c0_241], %262 {strides = array<i32>} : memref<108x512xf32, #tpu.memory_space<vmem>>, vector<4x512xf32>,
    %c0_242 = arith.constant 0 : index
    %c136_243 = arith.constant 136 : index
    %264 = vector.load %arg8[%c0_242, %c136_243] : memref<4x768xf32, #tpu.memory_space<vmem>>, vector<4x512xf32>
    %c16_244 = arith.constant 16 : index
    %c0_245 = arith.constant 0 : index
    %c0_246 = arith.constant 0 : index
    %265 = vector.load %arg6[%c16_244, %c0_245, %c0_246] : memref<27x1x512xf32, #tpu.memory_space<vmem>>, vector<1x1x512xf32>
    %266 = vector.shape_cast %265 : vector<1x1x512xf32> to vector<1x512xf32>
    %267 = vector.broadcast %266 : vector<1x512xf32> to vector<4x512xf32>
    %268 = arith.mulf %264, %267 : vector<4x512xf32>
    %c64_247 = arith.constant 64 : index
    %c0_248 = arith.constant 0 : index
    %269 = vector.load %arg9[%c64_247, %c0_248] : memref<108x512xf32, #tpu.memory_space<vmem>>, vector<4x512xf32>
    tpu.vector_store %arg9[%c64_247, %c0_248], %268 {strides = array<i32>} : memref<108x512xf32, #tpu.memory_space<vmem>>, vector<4x512xf32>,
    %c0_249 = arith.constant 0 : index
    %c137_250 = arith.constant 137 : index
    %270 = vector.load %arg8[%c0_249, %c137_250] : memref<4x768xf32, #tpu.memory_space<vmem>>, vector<4x512xf32>
    %c17_251 = arith.constant 17 : index
    %c0_252 = arith.constant 0 : index
    %c0_253 = arith.constant 0 : index
    %271 = vector.load %arg6[%c17_251, %c0_252, %c0_253] : memref<27x1x512xf32, #tpu.memory_space<vmem>>, vector<1x1x512xf32>
    %272 = vector.shape_cast %271 : vector<1x1x512xf32> to vector<1x512xf32>
    %273 = vector.broadcast %272 : vector<1x512xf32> to vector<4x512xf32>
    %274 = arith.mulf %270, %273 : vector<4x512xf32>
    %c68_254 = arith.constant 68 : index
    %c0_255 = arith.constant 0 : index
    %275 = vector.load %arg9[%c68_254, %c0_255] : memref<108x512xf32, #tpu.memory_space<vmem>>, vector<4x512xf32>
    tpu.vector_store %arg9[%c68_254, %c0_255], %274 {strides = array<i32>} : memref<108x512xf32, #tpu.memory_space<vmem>>, vector<4x512xf32>,
    %c0_256 = arith.constant 0 : index
    %c183_257 = arith.constant 183 : index
    %276 = vector.load %arg8[%c0_256, %c183_257] : memref<4x768xf32, #tpu.memory_space<vmem>>, vector<4x512xf32>
    %c18_258 = arith.constant 18 : index
    %c0_259 = arith.constant 0 : index
    %c0_260 = arith.constant 0 : index
    %277 = vector.load %arg6[%c18_258, %c0_259, %c0_260] : memref<27x1x512xf32, #tpu.memory_space<vmem>>, vector<1x1x512xf32>
    %278 = vector.shape_cast %277 : vector<1x1x512xf32> to vector<1x512xf32>
    %279 = vector.broadcast %278 : vector<1x512xf32> to vector<4x512xf32>
    %280 = arith.mulf %276, %279 : vector<4x512xf32>
    %c72_261 = arith.constant 72 : index
    %c0_262 = arith.constant 0 : index
    %281 = vector.load %arg9[%c72_261, %c0_262] : memref<108x512xf32, #tpu.memory_space<vmem>>, vector<4x512xf32>
    tpu.vector_store %arg9[%c72_261, %c0_262], %280 {strides = array<i32>} : memref<108x512xf32, #tpu.memory_space<vmem>>, vector<4x512xf32>,
    %c0_263 = arith.constant 0 : index
    %c184_264 = arith.constant 184 : index
    %282 = vector.load %arg8[%c0_263, %c184_264] : memref<4x768xf32, #tpu.memory_space<vmem>>, vector<4x512xf32>
    %c19_265 = arith.constant 19 : index
    %c0_266 = arith.constant 0 : index
    %c0_267 = arith.constant 0 : index
    %283 = vector.load %arg6[%c19_265, %c0_266, %c0_267] : memref<27x1x512xf32, #tpu.memory_space<vmem>>, vector<1x1x512xf32>
    %284 = vector.shape_cast %283 : vector<1x1x512xf32> to vector<1x512xf32>
    %285 = vector.broadcast %284 : vector<1x512xf32> to vector<4x512xf32>
    %286 = arith.mulf %282, %285 : vector<4x512xf32>
    %c76_268 = arith.constant 76 : index
    %c0_269 = arith.constant 0 : index
    %287 = vector.load %arg9[%c76_268, %c0_269] : memref<108x512xf32, #tpu.memory_space<vmem>>, vector<4x512xf32>
    tpu.vector_store %arg9[%c76_268, %c0_269], %286 {strides = array<i32>} : memref<108x512xf32, #tpu.memory_space<vmem>>, vector<4x512xf32>,
    %c0_270 = arith.constant 0 : index
    %c185_271 = arith.constant 185 : index
    %288 = vector.load %arg8[%c0_270, %c185_271] : memref<4x768xf32, #tpu.memory_space<vmem>>, vector<4x512xf32>
    %c20_272 = arith.constant 20 : index
    %c0_273 = arith.constant 0 : index
    %c0_274 = arith.constant 0 : index
    %289 = vector.load %arg6[%c20_272, %c0_273, %c0_274] : memref<27x1x512xf32, #tpu.memory_space<vmem>>, vector<1x1x512xf32>
    %290 = vector.shape_cast %289 : vector<1x1x512xf32> to vector<1x512xf32>
    %291 = vector.broadcast %290 : vector<1x512xf32> to vector<4x512xf32>
    %292 = arith.mulf %288, %291 : vector<4x512xf32>
    %c80_275 = arith.constant 80 : index
    %c0_276 = arith.constant 0 : index
    %293 = vector.load %arg9[%c80_275, %c0_276] : memref<108x512xf32, #tpu.memory_space<vmem>>, vector<4x512xf32>
    tpu.vector_store %arg9[%c80_275, %c0_276], %292 {strides = array<i32>} : memref<108x512xf32, #tpu.memory_space<vmem>>, vector<4x512xf32>,
    %c0_277 = arith.constant 0 : index
    %c191_278 = arith.constant 191 : index
    %294 = vector.load %arg8[%c0_277, %c191_278] : memref<4x768xf32, #tpu.memory_space<vmem>>, vector<4x512xf32>
    %c21_279 = arith.constant 21 : index
    %c0_280 = arith.constant 0 : index
    %c0_281 = arith.constant 0 : index
    %295 = vector.load %arg6[%c21_279, %c0_280, %c0_281] : memref<27x1x512xf32, #tpu.memory_space<vmem>>, vector<1x1x512xf32>
    %296 = vector.shape_cast %295 : vector<1x1x512xf32> to vector<1x512xf32>
    %297 = vector.broadcast %296 : vector<1x512xf32> to vector<4x512xf32>
    %298 = arith.mulf %294, %297 : vector<4x512xf32>
    %c84_282 = arith.constant 84 : index
    %c0_283 = arith.constant 0 : index
    %299 = vector.load %arg9[%c84_282, %c0_283] : memref<108x512xf32, #tpu.memory_space<vmem>>, vector<4x512xf32>
    tpu.vector_store %arg9[%c84_282, %c0_283], %298 {strides = array<i32>} : memref<108x512xf32, #tpu.memory_space<vmem>>, vector<4x512xf32>,
    %c0_284 = arith.constant 0 : index
    %c192_285 = arith.constant 192 : index
    %300 = vector.load %arg8[%c0_284, %c192_285] : memref<4x768xf32, #tpu.memory_space<vmem>>, vector<4x512xf32>
    %c22_286 = arith.constant 22 : index
    %c0_287 = arith.constant 0 : index
    %c0_288 = arith.constant 0 : index
    %301 = vector.load %arg6[%c22_286, %c0_287, %c0_288] : memref<27x1x512xf32, #tpu.memory_space<vmem>>, vector<1x1x512xf32>
    %302 = vector.shape_cast %301 : vector<1x1x512xf32> to vector<1x512xf32>
    %303 = vector.broadcast %302 : vector<1x512xf32> to vector<4x512xf32>
    %304 = arith.mulf %300, %303 : vector<4x512xf32>
    %c88_289 = arith.constant 88 : index
    %c0_290 = arith.constant 0 : index
    %305 = vector.load %arg9[%c88_289, %c0_290] : memref<108x512xf32, #tpu.memory_space<vmem>>, vector<4x512xf32>
    tpu.vector_store %arg9[%c88_289, %c0_290], %304 {strides = array<i32>} : memref<108x512xf32, #tpu.memory_space<vmem>>, vector<4x512xf32>,
    %c0_291 = arith.constant 0 : index
    %c193_292 = arith.constant 193 : index
    %306 = vector.load %arg8[%c0_291, %c193_292] : memref<4x768xf32, #tpu.memory_space<vmem>>, vector<4x512xf32>
    %c23_293 = arith.constant 23 : index
    %c0_294 = arith.constant 0 : index
    %c0_295 = arith.constant 0 : index
    %307 = vector.load %arg6[%c23_293, %c0_294, %c0_295] : memref<27x1x512xf32, #tpu.memory_space<vmem>>, vector<1x1x512xf32>
    %308 = vector.shape_cast %307 : vector<1x1x512xf32> to vector<1x512xf32>
    %309 = vector.broadcast %308 : vector<1x512xf32> to vector<4x512xf32>
    %310 = arith.mulf %306, %309 : vector<4x512xf32>
    %c92_296 = arith.constant 92 : index
    %c0_297 = arith.constant 0 : index
    %311 = vector.load %arg9[%c92_296, %c0_297] : memref<108x512xf32, #tpu.memory_space<vmem>>, vector<4x512xf32>
    tpu.vector_store %arg9[%c92_296, %c0_297], %310 {strides = array<i32>} : memref<108x512xf32, #tpu.memory_space<vmem>>, vector<4x512xf32>,
    %c0_298 = arith.constant 0 : index
    %c199_299 = arith.constant 199 : index
    %312 = vector.load %arg8[%c0_298, %c199_299] : memref<4x768xf32, #tpu.memory_space<vmem>>, vector<4x512xf32>
    %c24_300 = arith.constant 24 : index
    %c0_301 = arith.constant 0 : index
    %c0_302 = arith.constant 0 : index
    %313 = vector.load %arg6[%c24_300, %c0_301, %c0_302] : memref<27x1x512xf32, #tpu.memory_space<vmem>>, vector<1x1x512xf32>
    %314 = vector.shape_cast %313 : vector<1x1x512xf32> to vector<1x512xf32>
    %315 = vector.broadcast %314 : vector<1x512xf32> to vector<4x512xf32>
    %316 = arith.mulf %312, %315 : vector<4x512xf32>
    %c96_303 = arith.constant 96 : index
    %c0_304 = arith.constant 0 : index
    %317 = vector.load %arg9[%c96_303, %c0_304] : memref<108x512xf32, #tpu.memory_space<vmem>>, vector<4x512xf32>
    tpu.vector_store %arg9[%c96_303, %c0_304], %316 {strides = array<i32>} : memref<108x512xf32, #tpu.memory_space<vmem>>, vector<4x512xf32>,
    %c0_305 = arith.constant 0 : index
    %c200_306 = arith.constant 200 : index
    %318 = vector.load %arg8[%c0_305, %c200_306] : memref<4x768xf32, #tpu.memory_space<vmem>>, vector<4x512xf32>
    %c25_307 = arith.constant 25 : index
    %c0_308 = arith.constant 0 : index
    %c0_309 = arith.constant 0 : index
    %319 = vector.load %arg6[%c25_307, %c0_308, %c0_309] : memref<27x1x512xf32, #tpu.memory_space<vmem>>, vector<1x1x512xf32>
    %320 = vector.shape_cast %319 : vector<1x1x512xf32> to vector<1x512xf32>
    %321 = vector.broadcast %320 : vector<1x512xf32> to vector<4x512xf32>
    %322 = arith.mulf %318, %321 : vector<4x512xf32>
    %c100_310 = arith.constant 100 : index
    %c0_311 = arith.constant 0 : index
    %323 = vector.load %arg9[%c100_310, %c0_311] : memref<108x512xf32, #tpu.memory_space<vmem>>, vector<4x512xf32>
    tpu.vector_store %arg9[%c100_310, %c0_311], %322 {strides = array<i32>} : memref<108x512xf32, #tpu.memory_space<vmem>>, vector<4x512xf32>,
    %c0_312 = arith.constant 0 : index
    %c201_313 = arith.constant 201 : index
    %324 = vector.load %arg8[%c0_312, %c201_313] : memref<4x768xf32, #tpu.memory_space<vmem>>, vector<4x512xf32>
    %c26_314 = arith.constant 26 : index
    %c0_315 = arith.constant 0 : index
    %c0_316 = arith.constant 0 : index
    %325 = vector.load %arg6[%c26_314, %c0_315, %c0_316] : memref<27x1x512xf32, #tpu.memory_space<vmem>>, vector<1x1x512xf32>
    %326 = vector.shape_cast %325 : vector<1x1x512xf32> to vector<1x512xf32>
    %327 = vector.broadcast %326 : vector<1x512xf32> to vector<4x512xf32>
    %328 = arith.mulf %324, %327 : vector<4x512xf32>
    %c104_317 = arith.constant 104 : index
    %c0_318 = arith.constant 0 : index
    %329 = vector.load %arg9[%c104_317, %c0_318] : memref<108x512xf32, #tpu.memory_space<vmem>>, vector<4x512xf32>
    tpu.vector_store %arg9[%c104_317, %c0_318], %328 {strides = array<i32>} : memref<108x512xf32, #tpu.memory_space<vmem>>, vector<4x512xf32>,
    %c0_319 = arith.constant 0 : index
    %c0_320 = arith.constant 0 : index
    %330 = vector.load %arg4[%c0_319, %c0_320] : memref<4x108xf32, #tpu.memory_space<vmem>>, vector<4x108xf32>
    %c0_321 = arith.constant 0 : index
    %c0_322 = arith.constant 0 : index
    %331 = vector.load %arg9[%c0_321, %c0_322] : memref<108x512xf32, #tpu.memory_space<vmem>>, vector<108x512xf32>
    %cst_323 = arith.constant dense<0.000000e+00> : vector<4x512xf32>
    %332 = tpu.matmul %330, %331, %cst_323 {dimension_numbers = #tpu.dot_dimension_numbers<[1], [0], [0], [1], [0, 0, 1, 1], [], []>} : vector<4x108xf32>, vector<108x512xf32>, vector<4x512xf32> -> vector<4x512xf32>
    %c0_324 = arith.constant 0 : index
    %c0_325 = arith.constant 0 : index
    %333 = vector.load %arg5[%c0_324, %c0_325] : memref<4x1xf32, #tpu.memory_space<vmem>>, vector<4x1xf32>
    %334 = vector.broadcast %333 : vector<4x1xf32> to vector<4x512xf32>
    %335 = arith.addf %332, %334 : vector<4x512xf32>
    %336 = arith.addf %335, %1 : vector<4x512xf32>
    %cst_326 = arith.constant 0.000000e+00 : f32
    %337 = vector.broadcast %cst_326 : f32 to vector<4x512xf32>
    %338 = arith.maximumf %336, %337 : vector<4x512xf32>
    %c0_327 = arith.constant 0 : index
    %c0_328 = arith.constant 0 : index
    %c0_329 = arith.constant 0 : index
    %339 = vector.load %arg7[%c0_327, %c0_328, %c0_329] : memref<1x4x512xf32, #tpu.memory_space<vmem>>, vector<1x4x512xf32>
    %340 = vector.shape_cast %339 : vector<1x4x512xf32> to vector<4x512xf32>
    %341 = vector.shape_cast %338 : vector<4x512xf32> to vector<1x4x512xf32>
    tpu.vector_store %arg7[%c0_327, %c0_328, %c0_329], %341 {strides = array<i32>} : memref<1x4x512xf32, #tpu.memory_space<vmem>>, vector<1x4x512xf32>,
    return
  }
  func.func @transform_0(%arg0: i32) -> (i32, i32, i32) {
    %c0_i32 = arith.constant 0 : i32
    %c0_i32_0 = arith.constant 0 : i32
    %c0_i32_1 = arith.constant 0 : i32
    return %arg0, %c0_i32, %c0_i32_0 : i32, i32, i32
  }
  func.func @transform_1(%arg0: i32) -> (i32, i32) {
    %c0_i32 = arith.constant 0 : i32
    %c0_i32_0 = arith.constant 0 : i32
    %c0_i32_1 = arith.constant 0 : i32
    return %c0_i32, %c0_i32_0 : i32, i32
  }
  func.func @transform_2(%arg0: i32) -> (i32, i32) {
    %c0_i32 = arith.constant 0 : i32
    %c0_i32_0 = arith.constant 0 : i32
    %c0_i32_1 = arith.constant 0 : i32
    return %c0_i32, %c0_i32_0 : i32, i32
  }
  func.func @transform_3(%arg0: i32) -> (i32, i32) {
    %c0_i32 = arith.constant 0 : i32
    %c0_i32_0 = arith.constant 0 : i32
    %c0_i32_1 = arith.constant 0 : i32
    return %c0_i32, %c0_i32_0 : i32, i32
  }
  func.func @transform_4(%arg0: i32) -> (i32, i32) {
    %c0_i32 = arith.constant 0 : i32
    %c0_i32_0 = arith.constant 0 : i32
    %c0_i32_1 = arith.constant 0 : i32
    return %c0_i32, %c0_i32_0 : i32, i32
  }
  func.func @transform_5(%arg0: i32) -> (i32, i32, i32) {
    %c0_i32 = arith.constant 0 : i32
    %c0_i32_0 = arith.constant 0 : i32
    %c0_i32_1 = arith.constant 0 : i32
    %c0_i32_2 = arith.constant 0 : i32
    return %c0_i32, %c0_i32_0, %c0_i32_1 : i32, i32, i32
  }
  func.func @transform_6(%arg0: i32) -> (i32, i32, i32) {
    %c0_i32 = arith.constant 0 : i32
    %c0_i32_0 = arith.constant 0 : i32
    %c0_i32_1 = arith.constant 0 : i32
    return %arg0, %c0_i32, %c0_i32_0 : i32, i32, i32
  }
}

</mosaic_0001>

<bundles_post_ra>
// kernel: basic_block.1
= control target key start
LH: loop header
LB: loop body
LE: loop exit
PB: predicated region body
PF: predicated region fallthrough
CT: control target
= control target key end

     0   :  { %s4561_s21 = smov 0   ;;  %s6536_s0 = inlined_call_operand.vmem [shape: f32[2,4,512], index: 0, kind: input, shape index: {}]   ;;  %s6537_s1 = inlined_call_operand.vmem [shape: f32[4,108], index: 1, kind: input, shape index: {}]   ;;  %s6538_s2 = inlined_call_operand.vmem [shape: f32[4,1], index: 2, kind: input, shape index: {}]   ;;  %s6539_s3 = inlined_call_operand.vmem [shape: f32[4,108], index: 3, kind: input, shape index: {}]   ;;  %s6540_s4 = inlined_call_operand.vmem [shape: f32[4,1], index: 4, kind: input, shape index: {}]   ;;  %s6541_s5 = inlined_call_operand.vmem [shape: f32[27,1,512], index: 5, kind: input, shape index: {}]   ;;  %s6542_s6 = inlined_call_operand.vmem [shape: f32[2,4,512], index: 6, kind: output, shape index: {}]  }
   0x1 LB: > { %s4264_s22 = sadd.s32 4294967295, %s4504_s21   ;;  %p4268_p0 = scmp.ge.s32.totalorder %s4504_s21, 1  ;;  %s4504_s21 = sphi %s4561_s21, %s16_s21  }
   0x2   : > { %p212_p1 = scmp.lt.s32.totalorder %s4504_s21, 3 }
   0x4   : > { %p213_p2 = pnand %p4268_p0, %p212_p1 }
   0x5   : > { %v264_v0 = vlaneseq (!%p213_p2)  ;;  %v4273_v2 = vld [vmem:[%s6541_s5 + $0x4] sm:$0xf] (!%p213_p2)  ;;  %v262_v3 = vld [vmem:[%s6541_s5] sm:$0xf] (!%p213_p2)  ;;  %v4274_v8 = vld [vmem:[%s6541_s5 + $0x8] sm:$0xf] (!%p213_p2) }
   0x6   : > { %216 = sbr.rel (%p213_p2) target bundleno = 1364 (0x554), region = 44  ;;  %p4598_p3 = scmp.lt.s32.totalorder (!%p213_p2), %s4264_s22, 1  ;;  %v4275_v23 = vld [vmem:[%s6541_s5 + $0xc] sm:$0xf] (!%p213_p2)  ;;  %v4276_v26 = vld [vmem:[%s6541_s5 + $0x10] sm:$0xf] (!%p213_p2) }
   0x7   : > { %v265_v1 = vshrl.u32 (!%p213_p2), %v264_v0, 7  ;;  %s4506_s30 = smov (!%p213_p2), 56   ;;  %s4507_s7 = smov (!%p213_p2), 55   ;;  %v4277_v33 = vld [vmem:[%s6541_s5 + $0x14] sm:$0xf] (!%p213_p2)  ;;  %v4510_v43 = vmov (!%p213_p2), 0.0  }
   0x8   : > { %s4508_s12 = smov (!%p213_p2), 57   ;;  %s4509_s19 = smov (!%p213_p2), 63   ;;  %v4278_v42 = vld [vmem:[%s6541_s5 + $0x18] sm:$0xf] (!%p213_p2)  ;;  %255 = vst [vmem:[#allocation2 + $0x8] sm:$0xff] (!%p213_p2), %v4510_v43  ;;  %256 = vst [vmem:[#allocation2 + $0x10] sm:$0xff] (!%p213_p2), %v4510_v43  ;;  %2230 = vmatprep.mubr.f32.mxu1 (!%p213_p2), %v4510_v43  ;;  %2159 = vmatprep.mubr.f32.mxu0 (!%p213_p2), %v4510_v43 }
   0x9   : > { %v4575_v4 = vsub.s32 (!%p213_p2), 0, %v265_v1  ;;  %v4577_v5 = vsub.s32 (!%p213_p2), 1, %v265_v1  ;;  %v4579_v6 = vsub.s32 (!%p213_p2), 2, %v265_v1  ;;  %v4581_v7 = vsub.s32 (!%p213_p2), 3, %v265_v1  ;;  %254 = vst [vmem:[#allocation2] sm:$0xff] (!%p213_p2), %v4510_v43  ;;  %s4511_s24 = smov (!%p213_p2), 64  }
   0xa   : > { %v4279_v50 = vld [vmem:[%s6541_s5 + $0x1c] sm:$0xf] (!%p213_p2)  ;;  %s4512_s27 = smov (!%p213_p2), 65   ;;  %v4280_v57 = vld [vmem:[%s6541_s5 + $0x20] sm:$0xf] (!%p213_p2)  ;;  %s4513_s8 = smov (!%p213_p2), 71  }
   0xb   : > { %v336_v9 = vrot.slane (!%p213_p2), %v4273_v2, %v4575_v4  ;;  %v340_v10 = vrot.slane (!%p213_p2), %v4273_v2, %v4577_v5  ;;  %v267_v11 = vrot.slane (!%p213_p2), %v262_v3, %v4575_v4  ;;  %v271_v12 = vrot.slane (!%p213_p2), %v262_v3, %v4577_v5  ;;  %v4281_v0 = vld [vmem:[%s6541_s5 + $0x24] sm:$0xf] (!%p213_p2)  ;;  %s4514_s11 = smov (!%p213_p2), 72   ;;  %s4515_s16 = smov (!%p213_p2), 73  }
   0xc   : > { %v413_v13 = vrot.slane (!%p213_p2), %v4274_v8, %v4579_v6  ;;  %v417_v14 = vrot.slane (!%p213_p2), %v4274_v8, %v4581_v7  ;;  %v275_v15 = vrot.slane (!%p213_p2), %v262_v3, %v4579_v6  ;;  %v279_v16 = vrot.slane (!%p213_p2), %v262_v3, %v4581_v7  ;;  %s4516_s20 = smov (!%p213_p2), 119   ;;  %s4517_s26 = smov (!%p213_p2), 120  }
   0xd   : > { %v349_v17 = vcombine.low %v336_v9, %v340_v10  ;;  %v280_v18 = vcombine.low %v267_v11, %v271_v12  ;;  %v344_v19 = vrot.slane %v4273_v2, %v4579_v6  ;;  %v348_v20 = vrot.slane %v4273_v2, %v4581_v7  ;;  %s6598_s22 = smov (!%p4598_p3, %s4264_s22), 1  ;;  %v4282_v11 = vld [vmem:[%s6541_s5 + $0x28] sm:$0xf]  ;;  %s4518_s9 = smov 121  }
   0xe   : > { %v419_v21 = vcombine.low %v413_v13, %v417_v14  ;;  %v281_v22 = vcombine.low %v275_v15, %v279_v16  ;;  %v481_v24 = vrot.slane %v4275_v23, %v4579_v6  ;;  %v485_v25 = vrot.slane %v4275_v23, %v4581_v7  ;;  %s4337_s15 = sshll.u32 %s6598_s22, 4  ;;  %s4519_s14 = smov 127  }
   0xf   : > { %351 = vrot.lane.b32.xlu1 %v349_v17, %s4506_s30  ;;  %282 = vrot.lane.b32.xlu0 %v280_v18, %s4507_s7  ;;  %v350_v27 = vcombine.low %v344_v19, %v348_v20  ;;  %v405_v28 = vrot.slane %v4274_v8, %v4575_v4  ;;  %v409_v29 = vrot.slane %v4274_v8, %v4577_v5  ;;  %s246_s18 = scalar_lea.vmem %s6536_s0, %s4337_s15  ;;  %v4283_v18 = vld [vmem:[%s6541_s5 + $0x2c] sm:$0xf]  ;;  %s4520_s23 = smov 1   ;;  %vm357_vm0 = vcmask 457728  }
  0x10   : > { %v487_v30 = vcombine.low %v481_v24, %v485_v25  ;;  %v550_v31 = vrot.slane %v4276_v26, %v4579_v6  ;;  %v554_v32 = vrot.slane %v4276_v26, %v4581_v7  ;;  %v473_v35 = vrot.slane %v4275_v23, %v4575_v4  ;;  %v4635_v37 = vld [vmem:[%s246_s18 + $0x8] sm:$0xff]  ;;  %v4637_v38 = vld [vmem:[%s246_s18] sm:$0xff]  ;;  %v4284_v25 = vld [vmem:[%s6541_s5 + $0x30] sm:$0xf]  ;;  %s4521_s29 = smov 7   ;;  %s4522_s17 = smov 8  }
  0x11   : > { %v418_v34 = vcombine.low %v405_v28, %v409_v29  ;;  %v477_v36 = vrot.slane %v4275_v23, %v4577_v5  ;;  %v617_v40 = vrot.slane %v4277_v33, %v4579_v6  ;;  %v621_v41 = vrot.slane %v4277_v33, %v4581_v7  ;;  %258 = vst [vmem:[#allocation2 + $0xc] sm:$0xff] %v4635_v37  ;;  %s4523_s28 = smov 9  }
  0x12   : > { %v556_v39 = vcombine.low %v550_v31, %v554_v32  ;;  %257 = vst [vmem:[#allocation2 + $0x4] sm:$0xff] %v4637_v38  ;;  %v542_v45 = vrot.slane %v4276_v26, %v4575_v4  ;;  %v546_v46 = vrot.slane %v4276_v26, %v4577_v5  ;;  %v684_v48 = vrot.slane %v4278_v42, %v4579_v6  ;;  %v4285_v32 = vld [vmem:[%s6541_s5 + $0x38] sm:$0xf] }
  0x13   : > { %422 = vrot.lane.b32.xlu1 %v419_v21, %s4508_s12  ;;  %284 = vrot.lane.b32.xlu0 %v281_v22, %s4507_s7  ;;  %v486_v44 = vcombine.low %v473_v35, %v477_v36  ;;  %v623_v47 = vcombine.low %v617_v40, %v621_v41  ;;  %v688_v49 = vrot.slane %v4278_v42, %v4581_v7  ;;  %v4286_v41 = vld [vmem:[%s6541_s5 + $0x3c] sm:$0xf]  ;;  %vm288_vm1 = vcmask 449536  }
  0x14   : > { %v555_v51 = vcombine.low %v542_v45, %v546_v46  ;;  %v609_v52 = vrot.slane %v4277_v33, %v4575_v4  ;;  %v613_v53 = vrot.slane %v4277_v33, %v4577_v5  ;;  %v750_v55 = vrot.slane %v4279_v50, %v4579_v6 }
  0x15   : > { %v690_v54 = vcombine.low %v684_v48, %v688_v49  ;;  %v754_v56 = vrot.slane %v4279_v50, %v4581_v7  ;;  %v676_v59 = vrot.slane %v4278_v42, %v4575_v4  ;;  %v680_v60 = vrot.slane %v4278_v42, %v4577_v5  ;;  %v4287_v49 = vld [vmem:[%s6541_s5 + $0x40] sm:$0xf] }
  0x16   : > { %v622_v58 = vcombine.low %v609_v52, %v613_v53  ;;  %v817_v62 = vrot.slane %v4280_v57, %v4579_v6  ;;  %v821_v63 = vrot.slane %v4280_v57, %v4581_v7  ;;  %v742_v2 = vrot.slane %v4279_v50, %v4575_v4 }
  0x17   : > { %353 = vrot.lane.b32.xlu0 %v350_v27, %s4506_s30  ;;  %490 = vrot.lane.b32.xlu1 %v487_v30, %s4509_s19  ;;  %v756_v61 = vcombine.low %v750_v55, %v754_v56  ;;  %v689_v1 = vcombine.low %v676_v59, %v680_v60  ;;  %v746_v3 = vrot.slane %v4279_v50, %v4577_v5  ;;  %v4288_v56 = vld [vmem:[%s6541_s5 + $0x44] sm:$0xf]  ;;  %vm6548_vm2 = vcmask 465920  }
  0x18   : > { %v823_v8 = vcombine.low %v817_v62, %v821_v63  ;;  %v883_v9 = vrot.slane %v4281_v0, %v4579_v6  ;;  %v887_v10 = vrot.slane %v4281_v0, %v4581_v7  ;;  %v809_v13 = vrot.slane %v4280_v57, %v4575_v4  ;;  %v4289_v63 = vld [vmem:[%s6541_s5 + $0x48] sm:$0xf] }
  0x19   : > { %v755_v12 = vcombine.low %v742_v2, %v746_v3  ;;  %v813_v14 = vrot.slane %v4280_v57, %v4577_v5  ;;  %v952_v16 = vrot.slane %v4282_v11, %v4579_v6  ;;  %v956_v17 = vrot.slane %v4282_v11, %v4581_v7 }
  0x1a   : > { %v889_v15 = vcombine.low %v883_v9, %v887_v10  ;;  %v875_v20 = vrot.slane %v4281_v0, %v4575_v4  ;;  %v879_v21 = vrot.slane %v4281_v0, %v4577_v5  ;;  %v1020_v23 = vrot.slane %v4283_v18, %v4579_v6  ;;  %v4290_v10 = vld [vmem:[%s6541_s5 + $0x4c] sm:$0xf] }
  0x1b   : > { %420 = vrot.lane.b32.xlu0 %v418_v34, %s4508_s12  ;;  %559 = vrot.lane.b32.xlu1 %v556_v39, %s4511_s24  ;;  %v822_v19 = vcombine.low %v809_v13, %v813_v14  ;;  %v958_v22 = vcombine.low %v952_v16, %v956_v17  ;;  %v1024_v24 = vrot.slane %v4283_v18, %v4581_v7  ;;  %v4291_v17 = vld [vmem:[%s6541_s5 + $0x50] sm:$0xf]  ;;  %vm290_vm3 = vcmask 1043456  }
  0x1c   : > { %v888_v26 = vcombine.low %v875_v20, %v879_v21  ;;  %v944_v27 = vrot.slane %v4282_v11, %v4575_v4  ;;  %v948_v28 = vrot.slane %v4282_v11, %v4577_v5  ;;  %v1089_v30 = vrot.slane %v4284_v25, %v4579_v6 }
  0x1d   : > { %v1026_v29 = vcombine.low %v1020_v23, %v1024_v24  ;;  %v1093_v31 = vrot.slane %v4284_v25, %v4581_v7  ;;  %v1012_v34 = vrot.slane %v4283_v18, %v4575_v4  ;;  %v1016_v35 = vrot.slane %v4283_v18, %v4577_v5  ;;  %v4292_v24 = vld [vmem:[%s6541_s5 + $0x54] sm:$0xf] }
  0x1e   : > { %v957_v33 = vcombine.low %v944_v27, %v948_v28  ;;  %v1169_v39 = vrot.slane %v4285_v32, %v4579_v6  ;;  %v1173_v40 = vrot.slane %v4285_v32, %v4581_v7  ;;  %v1085_v45 = vrot.slane %v4284_v25, %v4577_v5 }
  0x1f   : > { %488 = vrot.lane.b32.xlu0 %v486_v44, %s4509_s19  ;;  %626 = vrot.lane.b32.xlu1 %v623_v47, %s4512_s27  ;;  %v1095_v36 = vcombine.low %v1089_v30, %v1093_v31  ;;  %v1025_v42 = vcombine.low %v1012_v34, %v1016_v35  ;;  %v1081_v44 = vrot.slane %v4284_v25, %v4575_v4  ;;  %v4293_v31 = vld [vmem:[%s6541_s5 + $0x58] sm:$0xf]  ;;  %vm494_vm4 = vcmask 515072  }
  0x20   : > { %v1175_v46 = vcombine.low %v1169_v39, %v1173_v40  ;;  %v1235_v47 = vrot.slane %v4286_v41, %v4579_v6  ;;  %v1239_v48 = vrot.slane %v4286_v41, %v4581_v7  ;;  %v1165_v52 = vrot.slane %v4285_v32, %v4577_v5 }
  0x21   : > { %v1094_v50 = vcombine.low %v1081_v44, %v1085_v45  ;;  %v1306_v55 = vrot.slane %v4287_v49, %v4581_v7  ;;  %v1231_v59 = vrot.slane %v4286_v41, %v4577_v5  ;;  %v1372_v62 = vrot.slane %v4288_v56, %v4581_v7 }
  0x22   : > { %v1241_v53 = vcombine.low %v1235_v47, %v1239_v48  ;;  %v1298_v2 = vrot.slane %v4287_v49, %v4577_v5  ;;  %v1439_v9 = vrot.slane %v4289_v63, %v4581_v7  ;;  %v1364_v13 = vrot.slane %v4288_v56, %v4577_v5 }
  0x23   : > { %557 = vrot.lane.b32.xlu0 %v555_v51, %s4511_s24  ;;  %693 = vrot.lane.b32.xlu1 %v690_v54, %s4513_s8  ;;  %v1161_v51 = vrot.slane %v4285_v32, %v4575_v4  ;;  %v1302_v54 = vrot.slane %v4287_v49, %v4579_v6  ;;  %v1505_v16 = vrot.slane %v4290_v10, %v4581_v7  ;;  %v4788_v32 = vld [vmem:[#allocation2 + $0xc] sm:$0xff]  ;;  %vm563_vm5 = vcmask 523264  }
  0x24   : > { %v1431_v20 = vrot.slane %v4289_v63, %v4577_v5  ;;  %v1572_v23 = vrot.slane %v4291_v17, %v4581_v7  ;;  %v1497_v27 = vrot.slane %v4290_v10, %v4577_v5  ;;  %v1638_v30 = vrot.slane %v4292_v24, %v4581_v7  ;;  %1151 = vst [vmem:[#allocation3 + $0xd8] sm:$0xf0] %v4788_v32 }
  0x25   : > { %v1174_v57 = vcombine.low %v1161_v51, %v1165_v52  ;;  %v1308_v60 = vcombine.low %v1302_v54, %v1306_v55  ;;  %v1560_v34 = vrot.slane %v4291_v17, %v4575_v4  ;;  %v1564_v35 = vrot.slane %v4291_v17, %v4577_v5 }
  0x26   : > { %v1701_v39 = vrot.slane %v4293_v31, %v4579_v6  ;;  %v1705_v40 = vrot.slane %v4293_v31, %v4581_v7  ;;  %v1626_v44 = vrot.slane %v4292_v24, %v4575_v4  ;;  %v1630_v45 = vrot.slane %v4292_v24, %v4577_v5 }
  0x27   : > { %624 = vrot.lane.b32.xlu0 %v622_v58, %s4512_s27  ;;  %759 = vrot.lane.b32.xlu1 %v756_v61, %s4514_s11  ;;  %v1227_v58 = vrot.slane %v4286_v41, %v4575_v4  ;;  %v1368_v61 = vrot.slane %v4288_v56, %v4579_v6  ;;  %v4294_v41 = vld [vmem:[%s6541_s5 + $0x5c] sm:$0xf]  ;;  %v1693_v51 = vrot.slane %v4293_v31, %v4575_v4  ;;  %vm520_vm6 = vcmask 531456  }
  0x28   : > { %v1767_v47 = vrot.slane %v4294_v41, %v4579_v6  ;;  %v1771_v48 = vrot.slane %v4294_v41, %v4581_v7  ;;  %v1697_v52 = vrot.slane %v4293_v31, %v4577_v5  ;;  %vm451_vm7 = vcmask 580608  }
  0x29   : > { %v1240_v0 = vcombine.low %v1227_v58, %v1231_v59  ;;  %v1374_v3 = vcombine.low %v1368_v61, %v1372_v62  ;;  %v1759_v58 = vrot.slane %v4294_v41, %v4575_v4  ;;  %v1763_v59 = vrot.slane %v4294_v41, %v4577_v5 }
  0x2a   : > { %vm383_vm8 = vcmask 588800   ;;  %vm314_vm9 = vcmask 596992   ;;  %vm6543_vm10 = vcmask 973824   ;;  %vm6544_vm11 = vcmask 982016  }
  0x2b   : > { %691 = vrot.lane.b32.xlu0 %v689_v1, %s4513_s8  ;;  %826 = vrot.lane.b32.xlu1 %v823_v8, %s4515_s16  ;;  %v1294_v1 = vrot.slane %v4287_v49, %v4575_v4  ;;  %v1435_v8 = vrot.slane %v4289_v63, %v4579_v6  ;;  %v4295_v49 = vld [vmem:[%s6541_s5 + $0x60] sm:$0xf]  ;;  %vm6549_vm12 = vcmask 990208   ;;  %vm1102_vm13 = vcmask 1039360  }
  0x2c   : > { %v1834_v54 = vrot.slane %v4295_v49, %v4579_v6  ;;  %v1838_v55 = vrot.slane %v4295_v49, %v4581_v7  ;;  %vm1127_vm14 = vcmask 7168   ;;  %vm1059_vm15 = vcmask 56320  }
  0x2d   : > { %v1307_v11 = vcombine.low %v1294_v1, %v1298_v2  ;;  %v1441_v14 = vcombine.low %v1435_v8, %v1439_v9  ;;  %v1826_v1 = vrot.slane %v4295_v49, %v4575_v4  ;;  %v1830_v2 = vrot.slane %v4295_v49, %v4577_v5 }
  0x2f   : > { %757 = vrot.lane.b32.xlu0 %v755_v12, %s4514_s11  ;;  %892 = vrot.lane.b32.xlu1 %v889_v15, %s4516_s20  ;;  %v1360_v12 = vrot.slane %v4288_v56, %v4575_v4  ;;  %v1501_v15 = vrot.slane %v4290_v10, %v4579_v6  ;;  %v4296_v56 = vld [vmem:[%s6541_s5 + $0x64] sm:$0xf] }
  0x30   : > { %v1900_v61 = vrot.slane %v4296_v56, %v4579_v6  ;;  %v1904_v62 = vrot.slane %v4296_v56, %v4581_v7 }
  0x31   : > { %v1373_v18 = vcombine.low %v1360_v12, %v1364_v13  ;;  %v1507_v21 = vcombine.low %v1501_v15, %v1505_v16  ;;  %v1896_v12 = vrot.slane %v4296_v56, %v4577_v5 }
  0x33   : > { %824 = vrot.lane.b32.xlu0 %v822_v19, %s4515_s16  ;;  %961 = vrot.lane.b32.xlu1 %v958_v22, %s4517_s26  ;;  %v1427_v19 = vrot.slane %v4289_v63, %v4575_v4  ;;  %v1568_v22 = vrot.slane %v4291_v17, %v4579_v6  ;;  %v4297_v63 = vld [vmem:[%s6541_s5 + $0x68] sm:$0xf] }
  0x34   : > { %v1967_v8 = vrot.slane %v4297_v63, %v4579_v6  ;;  %v1971_v9 = vrot.slane %v4297_v63, %v4581_v7  ;;  %v1959_v15 = vrot.slane %v4297_v63, %v4575_v4  ;;  %v1963_v16 = vrot.slane %v4297_v63, %v4577_v5 }
  0x35   : > { %v1440_v25 = vcombine.low %v1427_v19, %v1431_v20  ;;  %v1574_v28 = vcombine.low %v1568_v22, %v1572_v23 }
  0x36   : > { %v1973_v13 = vcombine.low %v1967_v8, %v1971_v9  ;;  %v1972_v17 = vcombine.low %v1959_v15, %v1963_v16 }
  0x37   : > { %890 = vrot.lane.b32.xlu0 %v888_v26, %s4516_s20  ;;  %1029 = vrot.lane.b32.xlu1 %v1026_v29, %s4518_s9  ;;  %v1493_v26 = vrot.slane %v4290_v10, %v4575_v4  ;;  %v1634_v29 = vrot.slane %v4292_v24, %v4579_v6  ;;  %v1892_v10 = vrot.slane %v4296_v56, %v4575_v4  ;;  %v398_v24 = vld [vmem:[#allocation2 + $0x10] sm:$0xf] }
  0x3b   : > { %959 = vrot.lane.b32.xlu0 %v957_v33, %s4517_s26  ;;  %1098 = vrot.lane.b32.xlu1 %v1095_v36, %s4519_s14  ;;  %v1506_v33 = vcombine.low %v1493_v26, %v1497_v27  ;;  %v1640_v36 = vcombine.low %v1634_v29, %v1638_v30 }
  0x3f   : > { %1027 = vrot.lane.b32.xlu0 %v1025_v42, %s4518_s9  ;;  %1178 = vrot.lane.b32.xlu1 %v1175_v46, %s4520_s23  ;;  %v1573_v42 = vcombine.low %v1560_v34, %v1564_v35  ;;  %v1707_v46 = vcombine.low %v1701_v39, %v1705_v40  ;;  %v4845_v34 = vld [vmem:[#allocation2] sm:$0xff]  ;;  %v329_v35 = vld [vmem:[#allocation2 + $0x10] sm:$0xf] }
  0x43   : > { %1096 = vrot.lane.b32.xlu0 %v1094_v50, %s4519_s14  ;;  %1244 = vrot.lane.b32.xlu1 %v1241_v53, %s4521_s29  ;;  %v1639_v50 = vcombine.low %v1626_v44, %v1630_v45  ;;  %v1773_v53 = vcombine.low %v1767_v47, %v1771_v48 }
  0x47   : > { %1176 = vrot.lane.b32.xlu0 %v1174_v57, %s4520_s23  ;;  %1311 = vrot.lane.b32.xlu1 %v1308_v60, %s4522_s17  ;;  %v1706_v57 = vcombine.low %v1693_v51, %v1697_v52  ;;  %v1840_v60 = vcombine.low %v1834_v54, %v1838_v55  ;;  %v4863_v54 = vld [vmem:[#allocation2 + $0x8] sm:$0xff] }
  0x4b   : > { %1242 = vrot.lane.b32.xlu0 %v1240_v0, %s4521_s29  ;;  %1377 = vrot.lane.b32.xlu1 %v1374_v3, %s4523_s28  ;;  %v1772_v0 = vcombine.low %v1759_v58, %v1763_v59  ;;  %v1906_v3 = vcombine.low %v1900_v61, %v1904_v62 }
  0x4f   : > { %1309 = vrot.lane.b32.xlu0 %v1307_v11, %s4522_s17  ;;  %1444 = vrot.lane.b32.xlu1 %v1441_v14, %s4507_s7  ;;  %v1839_v11 = vcombine.low %v1826_v1, %v1830_v2  ;;  %v1905_v14 = vcombine.low %v1892_v10, %v1896_v12 }
  0x53   : > { %1375 = vrot.lane.b32.xlu0 %v1373_v18, %s4523_s28  ;;  %1510 = vrot.lane.b32.xlu1 %v1507_v21, %s4506_s30 }
  0x57   : > { %1442 = vrot.lane.b32.xlu0 %v1440_v25, %s4507_s7  ;;  %1577 = vrot.lane.b32.xlu1 %v1574_v28, %s4508_s12  ;;  %v261_v25 = vld [vmem:[#allocation2 + $0x10] sm:$0xf] }
  0x5b   : > { %1508 = vrot.lane.b32.xlu0 %v1506_v33, %s4506_s30  ;;  %1643 = vrot.lane.b32.xlu1 %v1640_v36, %s4509_s19 }
  0x5f   : > { %1575 = vrot.lane.b32.xlu0 %v1573_v42, %s4508_s12  ;;  %1710 = vrot.lane.b32.xlu1 %v1707_v46, %s4511_s24 }
  0x63   : > { %1641 = vrot.lane.b32.xlu0 %v1639_v50, %s4509_s19  ;;  %1776 = vrot.lane.b32.xlu1 %v1773_v53, %s4512_s27 }
  0x67   : > { %1708 = vrot.lane.b32.xlu0 %v1706_v57, %s4511_s24  ;;  %1843 = vrot.lane.b32.xlu1 %v1840_v60, %s4513_s8 }
  0x6b   : > { %1774 = vrot.lane.b32.xlu0 %v1772_v0, %s4512_s27  ;;  %1909 = vrot.lane.b32.xlu1 %v1906_v3, %s4514_s11 }
  0x6f   : > { %1841 = vrot.lane.b32.xlu0 %v1839_v11, %s4513_s8  ;;  %1976 = vrot.lane.b32.xlu1 %v1973_v13, %s4515_s16 }
  0x73   : > { %1907 = vrot.lane.b32.xlu0 %v1905_v14, %s4514_s11 }
  0x77   : > { %1974 = vrot.lane.b32.xlu0 %v1972_v17, %s4515_s16 }
  0x81   : > { %v352_v18 = vpop.permute.xlu1 %351  ;;  %v283_v19 = vpop.permute.xlu0 %282 }
  0x82   : > { %v355_v20 = vrot.slane %v352_v18, 4  ;;  %v286_v21 = vrot.slane %v283_v19, 4 }
  0x84   : > { %v358_v30 = vsel %vm357_vm0, %v355_v20, %v352_v18  ;;  %v289_v31 = vsel %vm288_vm1, %v286_v21, %v283_v19 }
  0x85   : > { %v423_v22 = vpop.permute.xlu1 %422  ;;  %v285_v23 = vpop.permute.xlu0 %284  ;;  %v364_v40 = vmul.f32 %v4845_v34, %v358_v30  ;;  %v296_v41 = vmul.f32 %v4845_v34, %v289_v31 }
  0x86   : > { %v425_v26 = vrot.slane %v423_v22, 4  ;;  %v287_v27 = vrot.slane %v285_v23, 4 }
  0x87   : > { %v302_v62 = vcombine.high %v296_v41, %v296_v41  ;;  %v370_v9 = vcombine.low %v364_v40, %v364_v40 }
  0x88   : > { %v435_v28 = vmul.f32 %v425_v26, %v398_v24  ;;  %v298_v29 = vmul.f32 %v287_v27, %v261_v25  ;;  %v291_v53 = vsel %vm290_vm3, %v286_v21, %v287_v27 }
  0x89   : > { %v354_v33 = vpop.permute.xlu0 %353  ;;  %v4847_v36 = vpop.permute.xlu1 %490  ;;  %v292_v60 = vsel %vm288_vm1, %v291_v53, %v285_v23  ;;  %v466_v23 = vld [vmem:[#allocation2 + $0x10] sm:$0xf] }
  0x8a   : > { %v356_v39 = vrot.slane %v354_v33, 4  ;;  %449 = vrot.lane.b32.xlu1 %v435_v28, %s4513_s8  ;;  %312 = vrot.lane.b32.xlu0 %v298_v29, %s4515_s16  ;;  %v297_v63 = vmul.f32 %v4863_v54, %v292_v60  ;;  %v493_v8 = vrot.slane %v4847_v36, 4 }
  0x8c   : > { %v366_v42 = vmul.f32 %v356_v39, %v329_v35  ;;  %v359_v61 = vsel %vm290_vm3, %v355_v20, %v356_v39  ;;  %v303_v15 = vcombine.high %v297_v63, %v297_v63  ;;  %v503_v30 = vmul.f32 %v493_v8, %v466_v23 }
  0x8d   : > { %v421_v44 = vpop.permute.xlu0 %420  ;;  %v4853_v45 = vpop.permute.xlu1 %559  ;;  %v360_v2 = vsel %vm357_vm0, %v359_v61, %v354_v33 }
  0x8e   : > { %v424_v46 = vrot.slane %v421_v44, 4  ;;  %375 = vrot.lane.b32.xlu0 %v364_v40, %s4514_s11  ;;  %304 = vrot.lane.b32.xlu1 %v296_v41, %s4515_s16  ;;  %v372_v47 = vcombine.low %v366_v42, %v366_v42  ;;  %v365_v11 = vmul.f32 %v4863_v54, %v360_v2  ;;  %v562_v27 = vrot.slane %v4853_v45, 4 }
  0x8f   : > { %v509_v39 = vcombine.low %v503_v30, %v503_v30  ;;  %v669_v30 = vld [vmem:[#allocation2 + $0x10] sm:$0xf] }
  0x90   : > { %v428_v48 = vsel %vm290_vm3, %v424_v46, %v425_v26  ;;  %v427_v3 = vsel %vm6548_vm2, %v424_v46, %v421_v44  ;;  %v371_v21 = vcombine.low %v365_v11, %v365_v11 }
  0x91   : > { %v489_v49 = vpop.permute.xlu0 %488  ;;  %v429_v50 = vsel %vm6548_vm2, %v428_v48, %v423_v22  ;;  %v4859_v51 = vpop.permute.xlu1 %626  ;;  %v433_v10 = vmul.f32 %v427_v3, %v4845_v34  ;;  %v602_v3 = vld [vmem:[#allocation2 + $0x10] sm:$0xf] }
  0x92   : > { %v492_v52 = vrot.slane %v489_v49, 4  ;;  %381 = vrot.lane.b32.xlu1 %v372_v47, %s4514_s11  ;;  %v434_v56 = vmul.f32 %v4863_v54, %v429_v50  ;;  %v629_v42 = vrot.slane %v4859_v51, 4 }
  0x93   : > { %v439_v17 = vcombine.high %v433_v10, %v433_v10 }
  0x94   : > { %v495_v55 = vsel %vm494_vm4, %v492_v52, %v489_v49  ;;  %v496_v14 = vsel %vm290_vm3, %v492_v52, %v493_v8  ;;  %v440_v22 = vcombine.high %v434_v56, %v434_v56 }
  0x95   : > { %v4868_v57 = vmul.f32 %v495_v55, %v4845_v34  ;;  %v558_v58 = vpop.permute.xlu0 %557  ;;  %v4870_v59 = vpop.permute.xlu1 %693  ;;  %v497_v16 = vsel %vm494_vm4, %v496_v14, %v4847_v36  ;;  %v535_v55 = vld [vmem:[#allocation2 + $0x10] sm:$0xf] }
  0x96   : > { %445 = vrot.lane.b32.xlu1 %v434_v56, %s4513_s8  ;;  %v502_v20 = vmul.f32 %v497_v16, %v4863_v54  ;;  %v561_v26 = vrot.slane %v558_v58, 4  ;;  %v696_v61 = vrot.slane %v4870_v59, 4 }
  0x97   : > { %512 = vrot.lane.b32.xlu0 %v4868_v57, %s4512_s27  ;;  %v507_v48 = vcombine.low %v4868_v57, %v4868_v57 }
  0x98   : > { %v564_v28 = vsel %vm563_vm5, %v561_v26, %v558_v58  ;;  %v508_v29 = vcombine.low %v502_v20, %v502_v20  ;;  %v565_v36 = vsel %vm290_vm3, %v561_v26, %v562_v27 }
  0x99   : > { %v4878_v0 = vpop.permute.xlu0 %624  ;;  %v4880_v1 = vpop.permute.xlu1 %759  ;;  %v4919_v35 = vmul.f32 %v564_v28, %v4845_v34  ;;  %v566_v46 = vsel %vm563_vm5, %v565_v36, %v4853_v45 }
  0x9a   : > { %306 = vrot.lane.b32.xlu1 %v302_v62, %s4515_s16  ;;  %v628_v44 = vrot.slane %v4878_v0, 4  ;;  %v571_v49 = vmul.f32 %v566_v46, %v4863_v54 }
  0x9b   : > { %308 = vrot.lane.b32.xlu0 %v297_v63, %s4515_s16  ;;  %v576_v47 = vcombine.high %v4919_v35, %v4919_v35  ;;  %v572_v63 = vmul.f32 %v562_v27, %v535_v55 }
  0x9c   : > { %v631_v53 = vsel %vm290_vm3, %v628_v44, %v629_v42  ;;  %v577_v45 = vcombine.high %v571_v49, %v571_v49  ;;  %v630_v57 = vsel %vm520_vm6, %v628_v44, %v4878_v0 }
  0x9d   : > { %v4889_v12 = vpop.permute.xlu0 %691  ;;  %v4891_v13 = vpop.permute.xlu1 %826  ;;  %v632_v56 = vsel %vm520_vm6, %v631_v53, %v4859_v51  ;;  %v636_v51 = vmul.f32 %v630_v57, %v4845_v34 }
  0x9e   : > { %373 = vrot.lane.b32.xlu1 %v370_v9, %s4514_s11  ;;  %v695_v62 = vrot.slane %v4889_v12, 4  ;;  %v637_v2 = vmul.f32 %v632_v56, %v4863_v54 }
  0x9f   : > { %379 = vrot.lane.b32.xlu0 %v365_v11, %s4514_s11  ;;  %v638_v11 = vmul.f32 %v629_v42, %v602_v3  ;;  %v705_v42 = vmul.f32 %v696_v61, %v669_v30 }
  0xa0   : > { %v697_v0 = vsel %vm451_vm7, %v695_v62, %v4889_v12  ;;  %v698_v9 = vsel %vm290_vm3, %v695_v62, %v696_v61 }
  0xa1   : > { %v4898_v18 = vpop.permute.xlu0 %757  ;;  %v4900_v19 = vpop.permute.xlu1 %892  ;;  %v699_v12 = vsel %vm451_vm7, %v698_v9, %v4870_v59 }
  0xa2   : > { %310 = vrot.lane.b32.xlu1 %v303_v15, %s4515_s16  ;;  %v703_v15 = vmul.f32 %v697_v0, %v4845_v34  ;;  %v704_v23 = vmul.f32 %v699_v12, %v4863_v54  ;;  %v895_v0 = vrot.slane %v4900_v19, 4 }
  0xa3   : > { %443 = vrot.lane.b32.xlu0 %v439_v17, %s4513_s8  ;;  %v762_v17 = vrot.slane %v4880_v1, 4 }
  0xa5   : > { %v4905_v24 = vpop.permute.xlu0 %824  ;;  %v4907_v25 = vpop.permute.xlu1 %961 }
  0xa6   : > { %377 = vrot.lane.b32.xlu1 %v371_v21, %s4514_s11  ;;  %v644_v21 = vcombine.low %v638_v11, %v638_v11  ;;  %v828_v55 = vrot.slane %v4905_v24, 4 }
  0xa7   : > { %447 = vrot.lane.b32.xlu0 %v440_v22, %s4513_s8  ;;  %v709_v22 = vcombine.high %v703_v15, %v703_v15 }
  0xa8   : > { %v830_v61 = vsel %vm314_vm9, %v828_v55, %v4905_v24 }
  0xa9   : > { %v4913_v31 = vpop.permute.xlu0 %890  ;;  %v4915_v33 = vpop.permute.xlu1 %1029  ;;  %v5018_v3 = vmul.f32 %v830_v61, %v4845_v34 }
  0xaa   : > { %514 = vrot.lane.b32.xlu1 %v508_v29, %s4512_s27  ;;  %v710_v29 = vcombine.high %v704_v23, %v704_v23  ;;  %v894_v9 = vrot.slane %v4913_v31, 4 }
  0xab   : > { %516 = vrot.lane.b32.xlu0 %v502_v20, %s4512_s27  ;;  %v761_v20 = vrot.slane %v4898_v18, 4 }
  0xad   : > { %v4923_v40 = vpop.permute.xlu0 %959  ;;  %v4925_v41 = vpop.permute.xlu1 %1098  ;;  %v764_v27 = vsel %vm290_vm3, %v761_v20, %v762_v17 }
  0xae   : > { %518 = vrot.lane.b32.xlu1 %v509_v39, %s4512_s27  ;;  %v765_v59 = vsel %vm383_vm8, %v764_v27, %v4880_v1  ;;  %v763_v39 = vsel %vm383_vm8, %v761_v20, %v4898_v18  ;;  %v963_v27 = vrot.slane %v4923_v40, 4 }
  0xaf   : > { %441 = vrot.lane.b32.xlu0 %v433_v10, %s4513_s8  ;;  %v643_v10 = vcombine.low %v637_v2, %v637_v2  ;;  %v770_v44 = vmul.f32 %v765_v59, %v4863_v54 }
  0xb1   : > { %v4938_v50 = vpop.permute.xlu0 %1027  ;;  %v4940_v52 = vpop.permute.xlu1 %1178 }
  0xb2   : > { %510 = vrot.lane.b32.xlu1 %v507_v48, %s4512_s27  ;;  %v735_v48 = vld [vmem:[#allocation2 + $0x10] sm:$0xf] }
  0xb3   : > { %580 = vrot.lane.b32.xlu0 %v576_v47, %s4511_s24  ;;  %v769_v47 = vmul.f32 %v763_v39, %v4845_v34  ;;  %v771_v18 = vmul.f32 %v762_v17, %v735_v48  ;;  %v898_v17 = vsel %vm290_vm3, %v894_v9, %v895_v0  ;;  %v868_v39 = vld [vmem:[#allocation2 + $0x10] sm:$0xf] }
  0xb5   : > { %v4947_v58 = vpop.permute.xlu0 %1096  ;;  %v4952_v60 = vpop.permute.xlu1 %1244  ;;  %v777_v56 = vcombine.low %v771_v18, %v771_v18  ;;  %v1032_v18 = vrot.slane %v4915_v33, 4 }
  0xb6   : > { %582 = vrot.lane.b32.xlu1 %v571_v49, %s4511_s24  ;;  %v776_v49 = vcombine.low %v770_v44, %v770_v44 }
  0xb7   : > { %584 = vrot.lane.b32.xlu0 %v577_v45, %s4511_s24  ;;  %v829_v45 = vrot.slane %v4891_v13, 4 }
  0xb9   : > { %v4959_v8 = vpop.permute.xlu0 %1176  ;;  %v4966_v14 = vpop.permute.xlu1 %1311  ;;  %v831_v62 = vsel %vm290_vm3, %v828_v55, %v829_v45 }
  0xba   : > { %586 = vrot.lane.b32.xlu1 %v572_v63, %s4511_s24  ;;  %v642_v63 = vcombine.low %v636_v51, %v636_v51  ;;  %v832_v24 = vsel %vm314_vm9, %v831_v62, %v4891_v13 }
  0xbb   : > { %647 = vrot.lane.b32.xlu0 %v636_v51, %s4509_s19  ;;  %v842_v51 = vcombine.high %v5018_v3, %v5018_v3  ;;  %v837_v11 = vmul.f32 %v832_v24, %v4863_v54  ;;  %v937_v24 = vld [vmem:[#allocation2 + $0x10] sm:$0xf] }
  0xbd   : > { %v4969_v16 = vpop.permute.xlu0 %1242  ;;  %v4982_v28 = vpop.permute.xlu1 %1377  ;;  %v843_v13 = vcombine.high %v837_v11, %v837_v11 }
  0xbe   : > { %649 = vrot.lane.b32.xlu1 %v643_v10, %s4509_s19  ;;  %v775_v10 = vcombine.low %v769_v47, %v769_v47 }
  0xbf   : > { %651 = vrot.lane.b32.xlu0 %v637_v2, %s4509_s19 }
  0xc1   : > { %v4978_v26 = vpop.permute.xlu0 %1309  ;;  %v4994_v46 = vpop.permute.xlu1 %1444 }
  0xc2   : > { %653 = vrot.lane.b32.xlu1 %v644_v21, %s4509_s19  ;;  %v899_v21 = vsel %vm6543_vm10, %v898_v17, %v4900_v19 }
  0xc3   : > { %713 = vrot.lane.b32.xlu0 %v709_v22, %s4508_s12  ;;  %v897_v22 = vsel %vm6543_vm10, %v894_v9, %v4913_v31  ;;  %v904_v59 = vmul.f32 %v899_v21, %v4863_v54  ;;  %v966_v31 = vsel %vm6544_vm11, %v963_v27, %v4923_v40  ;;  %vm6546_vm10 = vcmask 64512  }
  0xc4   : > { %v903_v19 = vmul.f32 %v897_v22, %v4845_v34 }
  0xc5   : > { %v4987_v36 = vpop.permute.xlu0 %1375  ;;  %v5002_v53 = vpop.permute.xlu1 %1510  ;;  %v910_v48 = vcombine.low %v904_v59, %v904_v59 }
  0xc6   : > { %715 = vrot.lane.b32.xlu1 %v704_v23, %s4508_s12  ;;  %v964_v23 = vrot.slane %v4907_v25, 4 }
  0xc7   : > { %717 = vrot.lane.b32.xlu0 %v710_v29, %s4508_s12 }
  0xc8   : > { %v974_v17 = vmul.f32 %v964_v23, %v937_v24 }
  0xc9   : > { %v4999_v1 = vpop.permute.xlu0 %1442  ;;  %v5015_v2 = vpop.permute.xlu1 %1577 }
  0xca   : > { %719 = vrot.lane.b32.xlu1 %v705_v42, %s4508_s12  ;;  %v967_v42 = vsel %vm290_vm3, %v963_v27, %v964_v23  ;;  %v1100_v23 = vrot.slane %v4947_v58, 4 }
  0xcb   : > { %780 = vrot.lane.b32.xlu0 %v769_v47, %s4506_s30  ;;  %v905_v47 = vmul.f32 %v895_v0, %v868_v39  ;;  %v968_v40 = vsel %vm6544_vm11, %v967_v42, %v4907_v25  ;;  %v1145_v42 = vcombine.low %v4788_v32, %v4788_v32  ;;  %vm6545_vm11 = vcmask 72704  }
  0xcd   : > { %v5007_v57 = vpop.permute.xlu0 %1508  ;;  %v5033_v20 = vpop.permute.xlu1 %1643  ;;  %1150 = vst [vmem:[#allocation3 + $0xd0] sm:$0xf0] %v1145_v42 }
  0xce   : > { %782 = vrot.lane.b32.xlu1 %v776_v49, %s4506_s30  ;;  %v972_v49 = vmul.f32 %v966_v31, %v4845_v34  ;;  %v1140_v31 = vld [vmem:[#allocation2 + $0x4] sm:$0xff] }
  0xcf   : > { %784 = vrot.lane.b32.xlu0 %v770_v44, %s4506_s30  ;;  %1149 = vst [vmem:[#allocation3 + $0xc8] sm:$0xf0] %v1140_v31 }
  0xd0   : > { %v978_v61 = vcombine.high %v972_v49, %v972_v49 }
  0xd1   : > { %v5046_v30 = vpop.permute.xlu1 %1710 }
  0xd2   : > { %786 = vrot.lane.b32.xlu1 %v777_v56, %s4506_s30  ;;  %v911_v56 = vcombine.low %v905_v47, %v905_v47  ;;  %v1103_v47 = vsel %vm1102_vm13, %v1100_v23, %v4947_v58 }
  0xd3   : > { %578 = vrot.lane.b32.xlu0 %v4919_v35, %s4511_s24  ;;  %v5026_v35 = vpop.permute.xlu0 %1575 }
  0xd5   : > { %v5061_v55 = vpop.permute.xlu1 %1776 }
  0xd6   : > { %645 = vrot.lane.b32.xlu1 %v642_v63, %s4509_s19  ;;  %v973_v63 = vmul.f32 %v968_v40, %v4863_v54 }
  0xd7   : > { %711 = vrot.lane.b32.xlu0 %v703_v15, %s4508_s12  ;;  %v5036_v12 = vpop.permute.xlu0 %1641  ;;  %v802_v15 = vld [vmem:[#allocation2 + $0x10] sm:$0xf] }
  0xd8   : > { %v838_v29 = vmul.f32 %v829_v45, %v802_v15  ;;  %v1031_v45 = vrot.slane %v4938_v50, 4  ;;  %v1005_v15 = vld [vmem:[#allocation2 + $0x10] sm:$0xf] }
  0xd9   : > { %v5072_v9 = vpop.permute.xlu1 %1843 }
  0xda   : > { %778 = vrot.lane.b32.xlu1 %v775_v10, %s4506_s30  ;;  %v1035_v0 = vsel %vm290_vm3, %v1031_v45, %v1032_v18  ;;  %v979_v10 = vcombine.high %v973_v63, %v973_v63 }
  0xdb   : > { %846 = vrot.lane.b32.xlu0 %v842_v51, %s4507_s7  ;;  %v5055_v44 = vpop.permute.xlu0 %1708  ;;  %v1036_v25 = vsel %vm6549_vm12, %v1035_v0, %v4915_v33  ;;  %v1034_v51 = vsel %vm6549_vm12, %v1031_v45, %v4938_v50  ;;  %v1042_v33 = vmul.f32 %v1032_v18, %v1005_v15  ;;  %v909_v45 = vcombine.low %v903_v19, %v903_v19 }
  0xdc   : > { %v1040_v21 = vmul.f32 %v1034_v51, %v4845_v34  ;;  %v1074_v51 = vld [vmem:[#allocation2 + $0x10] sm:$0xf]  ;;  %v1247_v15 = vrot.slane %v4952_v60, 4 }
  0xdd   : > { %v5084_v22 = vpop.permute.xlu1 %1909 }
  0xde   : > { %848 = vrot.lane.b32.xlu1 %v837_v11, %s4507_s7 }
  0xdf   : > { %850 = vrot.lane.b32.xlu0 %v843_v13, %s4507_s7  ;;  %v5066_v62 = vpop.permute.xlu0 %1774  ;;  %v1041_v13 = vmul.f32 %v1036_v25, %v4863_v54 }
  0xe1   : > { %v1047_v50 = vcombine.low %v1041_v13, %v1041_v13  ;;  %v5094_v39 = vpop.permute.xlu1 %1976 }
  0xe2   : > { %852 = vrot.lane.b32.xlu1 %v838_v29, %s4507_s7  ;;  %v1101_v29 = vrot.slane %v4925_v41, 4 }
  0xe3   : > { %914 = vrot.lane.b32.xlu0 %v903_v19, %s4523_s28  ;;  %v5079_v11 = vpop.permute.xlu0 %1841 }
  0xe6   : > { %916 = vrot.lane.b32.xlu1 %v910_v48, %s4523_s28  ;;  %v1104_v48 = vsel %vm290_vm3, %v1100_v23, %v1101_v29 }
  0xe7   : > { %918 = vrot.lane.b32.xlu0 %v904_v59, %s4523_s28  ;;  %v5088_v27 = vpop.permute.xlu0 %1907  ;;  %v1048_v59 = vcombine.low %v1042_v33, %v1042_v33  ;;  %v1105_v58 = vsel %vm1102_vm13, %v1104_v48, %v4925_v41 }
  0xea   : > { %920 = vrot.lane.b32.xlu1 %v911_v56, %s4523_s28  ;;  %v5109_v56 = vmul.f32 %v1103_v47, %v4845_v34  ;;  %v1110_v34 = vmul.f32 %v1105_v58, %v4863_v54  ;;  %v1246_v54 = vrot.slane %v4969_v16, 4  ;;  %v1144_v58 = vcombine.low %v1140_v31, %v1140_v31  ;;  %v5157_v31 = vld [vmem:[#allocation2 + $0x4] sm:$0xff] }
  0xeb   : > { %982 = vrot.lane.b32.xlu0 %v978_v61, %s4522_s17  ;;  %v5102_v18 = vpop.permute.xlu0 %1974  ;;  %v1181_v61 = vrot.slane %v4940_v52, 4 }
  0xec   : > { %v1115_v24 = vcombine.high %v5109_v56, %v5109_v56  ;;  %1148 = vst [vmem:[#allocation3 + $0xc0] sm:$0xf0] %v1144_v58 }
  0xee   : > { %984 = vrot.lane.b32.xlu1 %v973_v63, %s4522_s17  ;;  %v1180_v63 = vrot.slane %v4959_v8, 4 }
  0xef   : > { %986 = vrot.lane.b32.xlu0 %v979_v10, %s4522_s17 }
  0xf0   : > { %v1182_v25 = vsel %vm1127_vm14, %v1180_v63, %v4959_v8  ;;  %v1183_v41 = vsel %vm290_vm3, %v1180_v63, %v1181_v61 }
  0xf1   : > { %v1184_v8 = vsel %vm1127_vm14, %v1183_v41, %v4940_v52  ;;  %v1154_v52 = vld [vmem:[#allocation2 + $0x14] sm:$0xf] }
  0xf2   : > { %988 = vrot.lane.b32.xlu1 %v974_v17, %s4522_s17  ;;  %v1189_v23 = vmul.f32 %v1184_v8, %v4635_v37  ;;  %v1248_v37 = vsel %vm1059_vm15, %v1246_v54, %v4969_v16 }
  0xf3   : > { %1051 = vrot.lane.b32.xlu0 %v1040_v21, %s4521_s29  ;;  %v1254_v16 = vmul.f32 %v5157_v31, %v1248_v37  ;;  %v1380_v37 = vrot.slane %v4982_v28, 4 }
  0xf6   : > { %1053 = vrot.lane.b32.xlu1 %v1047_v50, %s4521_s29 }
  0xf7   : > { %1055 = vrot.lane.b32.xlu0 %v1041_v13, %s4521_s29  ;;  %v1116_v13 = vcombine.high %v1110_v34, %v1110_v34 }
  0xfa   : > { %1057 = vrot.lane.b32.xlu1 %v1048_v59, %s4521_s29  ;;  %v1249_v59 = vsel %vm290_vm3, %v1246_v54, %v1247_v15 }
  0xfb   : > { %844 = vrot.lane.b32.xlu0 %v5018_v3, %s4507_s7  ;;  %v1046_v3 = vcombine.low %v1040_v21, %v1040_v21  ;;  %v1111_v21 = vmul.f32 %v1101_v29, %v1074_v51  ;;  %v1250_v29 = vsel %vm1059_vm15, %v1249_v59, %v4952_v60  ;;  %v5154_v60 = vld [vmem:[#allocation2 + $0xc] sm:$0xff]  ;;  %v1313_v59 = vrot.slane %v4978_v26, 4 }
  0xfc   : > { %v5106_v40 = vpop.permute.xlu1 %449  ;;  %v5116_v0 = vpop.permute.xlu0 %312 }
  0xfe   : > { %912 = vrot.lane.b32.xlu1 %v909_v45, %s4523_s28  ;;  %v1195_v45 = vcombine.high %v1189_v23, %v1189_v23 }
  0xff   : > { %980 = vrot.lane.b32.xlu0 %v972_v49, %s4522_s17  ;;  %v5128_v49 = vmul.f32 %v1182_v25, %v4637_v38 }
 0x100   : > { %v305_v19 = vpop.permute.xlu1 %304  ;;  %v5130_v17 = vpop.permute.xlu0 %375 }
 0x101   : > { %v1194_v38 = vcombine.high %v5128_v49, %v5128_v49 }
 0x102   : > { %1049 = vrot.lane.b32.xlu1 %v1046_v3, %s4521_s29  ;;  %v1190_v3 = vmul.f32 %v1181_v61, %v1154_v52 }
 0x103   : > { %1119 = vrot.lane.b32.xlu0 %v1115_v24, %s4520_s23 }
 0x104   : > { %v382_v10 = vpop.permute.xlu1 %381 }
 0x106   : > { %1121 = vrot.lane.b32.xlu1 %v1110_v34, %s4520_s23  ;;  %v1220_v34 = vld [vmem:[#allocation2 + $0x14] sm:$0xf] }
 0x107   : > { %1123 = vrot.lane.b32.xlu0 %v1116_v13, %s4520_s23  ;;  %v1256_v61 = vmul.f32 %v1247_v15, %v1220_v34 }
 0x108   : > { %v446_v33 = vpop.permute.xlu1 %445 }
 0x109   : > { %v5140_v50 = vpop.permute.xlu0 %512  ;;  %v1262_v15 = vcombine.low %v1256_v61, %v1256_v61 }
 0x10a   : > { %1125 = vrot.lane.b32.xlu1 %v1111_v21, %s4520_s23 }
 0x10b   : > { %1198 = vrot.lane.b32.xlu0 %v1194_v38, %s4519_s14 }
 0x10c   : > { %v307_v42 = vpop.permute.xlu1 %306 }
 0x10d   : > { %v315_v47 = vsel %vm314_vm9, %v305_v19, %v307_v42  ;;  %v309_v48 = vpop.permute.xlu0 %308  ;;  %v1255_v19 = vmul.f32 %v5154_v60, %v1250_v29 }
 0x10e   : > { %323 = vst [vmem:[#allocation3] sm:$0xf] %v315_v47  ;;  %v316_v63 = vsel %vm314_vm9, %v307_v42, %v309_v48  ;;  %1200 = vrot.lane.b32.xlu1 %v1189_v23, %s4519_s14  ;;  %v1314_v23 = vrot.slane %v4966_v14, 4 }
 0x10f   : > { %324 = vst [vmem:[#allocation3 + $0x8] sm:$0xf] %v316_v63  ;;  %1202 = vrot.lane.b32.xlu0 %v1195_v45, %s4519_s14  ;;  %v1261_v54 = vcombine.low %v1255_v19, %v1255_v19 }
 0x110   : > { %v374_v24 = vpop.permute.xlu1 %373 }
 0x111   : > { %v384_v25 = vsel %vm383_vm8, %v374_v24, %v5130_v17  ;;  %v380_v41 = vpop.permute.xlu0 %379 }
 0x112   : > { %392 = vst [vmem:[#allocation3] sm:$0xf0] %v384_v25  ;;  %v387_v51 = vsel %vm383_vm8, %v380_v41, %v382_v10  ;;  %1204 = vrot.lane.b32.xlu1 %v1190_v3, %s4519_s14  ;;  %v1260_v3 = vcombine.low %v1254_v16, %v1254_v16 }
 0x113   : > { %395 = vst [vmem:[#allocation3 + $0x18] sm:$0xf0] %v387_v51  ;;  %1265 = vrot.lane.b32.xlu0 %v1254_v16, %s4518_s9  ;;  %v1287_v51 = vld [vmem:[#allocation2 + $0x14] sm:$0xf] }
 0x114   : > { %v311_v13 = vpop.permute.xlu1 %310 }
 0x115   : > { %v317_v8 = vsel %vm314_vm9, %v309_v48, %v311_v13  ;;  %v318_v21 = vsel %vm314_vm9, %v311_v13, %v5116_v0  ;;  %v444_v38 = vpop.permute.xlu0 %443  ;;  %v1315_v0 = vsel %vm6546_vm10, %v1313_v59, %v4978_v26  ;;  %v1316_v48 = vsel %vm290_vm3, %v1313_v59, %v1314_v23 }
 0x116   : > { %325 = vst [vmem:[#allocation3 + $0x10] sm:$0xf] %v317_v8  ;;  %326 = vst [vmem:[#allocation3 + $0x18] sm:$0xf] %v318_v21  ;;  %v453_v10 = vsel %vm451_vm7, %v444_v38, %v446_v33  ;;  %1267 = vrot.lane.b32.xlu1 %v1261_v54, %s4518_s9  ;;  %v1379_v26 = vrot.slane %v4987_v36, 4  ;;  %v1317_v24 = vsel %vm6546_vm10, %v1316_v48, %v4966_v14 }
 0x117   : > { %461 = vst [vmem:[#allocation3 + $0x28] sm:$0xf] %v453_v10  ;;  %1269 = vrot.lane.b32.xlu0 %v1255_v19, %s4518_s9  ;;  %v1322_v25 = vmul.f32 %v5154_v60, %v1317_v24  ;;  %v1323_v8 = vmul.f32 %v1314_v23, %v1287_v51 }
 0x118   : > { %v378_v42 = vpop.permute.xlu1 %377  ;;  %v1381_v21 = vsel %vm6545_vm11, %v1379_v26, %v4987_v36 }
 0x119   : > { %v385_v52 = vsel %vm383_vm8, %v5130_v17, %v378_v42  ;;  %v386_v29 = vsel %vm383_vm8, %v378_v42, %v380_v41  ;;  %v448_v47 = vpop.permute.xlu0 %447  ;;  %v5188_v17 = vmul.f32 %v5157_v31, %v1315_v0  ;;  %v1328_v54 = vcombine.high %v1322_v25, %v1322_v25  ;;  %v1353_v42 = vld [vmem:[#allocation2 + $0x14] sm:$0xf]  ;;  %v2017_v51 = vld [vmem:[#allocation3] sm:$0xff] }
 0x11a   : > { %393 = vst [vmem:[#allocation3 + $0x8] sm:$0xf0] %v385_v52  ;;  %394 = vst [vmem:[#allocation3 + $0x10] sm:$0xf0] %v386_v29  ;;  %v454_v45 = vsel %vm451_vm7, %v446_v33, %v448_v47  ;;  %v455_v58 = vsel %vm451_vm7, %v448_v47, %v5106_v40  ;;  %1271 = vrot.lane.b32.xlu1 %v1262_v15, %s4518_s9  ;;  %v1447_v0 = vrot.slane %v4994_v46, 4  ;;  %v1446_v52 = vrot.slane %v4999_v1, 4 }
 0x11b   : > { %462 = vst [vmem:[#allocation3 + $0x30] sm:$0xf] %v454_v45  ;;  %463 = vst [vmem:[#allocation3 + $0x38] sm:$0xf] %v455_v58  ;;  %1117 = vrot.lane.b32.xlu0 %v5109_v56, %s4520_s23  ;;  %v1382_v56 = vsel %vm290_vm3, %v1379_v26, %v1380_v37  ;;  %v1327_v34 = vcombine.high %v5188_v17, %v5188_v17  ;;  %v5220_v36 = vmul.f32 %v5157_v31, %v1381_v21 }
 0x11c   : > { %v515_v63 = vpop.permute.xlu1 %514  ;;  %v1383_v61 = vsel %vm6545_vm11, %v1382_v56, %v4982_v28  ;;  %v1389_v47 = vmul.f32 %v1380_v37, %v1353_v42  ;;  %v1448_v48 = vsel %vm288_vm1, %v1446_v52, %v4999_v1  ;;  %v1512_v1 = vrot.slane %v5007_v57, 4 }
 0x11d   : > { %v522_v33 = vsel %vm520_vm6, %v5140_v50, %v515_v63  ;;  %v517_v40 = vpop.permute.xlu0 %516 }
 0x11e   : > { %530 = vst [vmem:[#allocation3 + $0x28] sm:$0xf0] %v522_v33  ;;  %v523_v19 = vsel %vm520_vm6, %v515_v63, %v517_v40  ;;  %1196 = vrot.lane.b32.xlu1 %v5128_v49, %s4519_s14  ;;  %v2020_v63 = vld [vmem:[#allocation3 + $0x18] sm:$0xff]  ;;  %v1449_v33 = vsel %vm290_vm3, %v1446_v52, %v1447_v0 }
 0x11f   : > { %531 = vst [vmem:[#allocation3 + $0x30] sm:$0xf0] %v523_v19  ;;  %1263 = vrot.lane.b32.xlu0 %v1260_v3, %s4518_s9  ;;  %v1513_v19 = vrot.slane %v5002_v53, 4 }
 0x120   : > { %v519_v16 = vpop.permute.xlu1 %518 }
 0x121   : > { %v524_v14 = vsel %vm520_vm6, %v517_v40, %v519_v16  ;;  %v442_v41 = vpop.permute.xlu0 %441  ;;  %v2018_v28 = vld [vmem:[#allocation3 + $0x8] sm:$0xff]  ;;  %v2019_v37 = vld [vmem:[#allocation3 + $0x10] sm:$0xff] }
 0x122   : > { %532 = vst [vmem:[#allocation3 + $0x38] sm:$0xf0] %v524_v14  ;;  %v452_v49 = vsel %vm451_vm7, %v442_v41, %v444_v38  ;;  %1331 = vrot.lane.b32.xlu1 %v1327_v34, %s4517_s26  ;;  %v1388_v38 = vmul.f32 %v1383_v61, %v4788_v32  ;;  %v5234_v34 = vmul.f32 %v5157_v31, %v1448_v48 }
 0x123   : > { %460 = vst [vmem:[#allocation3 + $0x20] sm:$0xf] %v452_v49  ;;  %1333 = vrot.lane.b32.xlu0 %v1322_v25, %s4517_s26  ;;  %v1395_v25 = vcombine.low %v1389_v47, %v1389_v47  ;;  %v1450_v49 = vsel %vm288_vm1, %v1449_v33, %v4994_v46  ;;  %v1420_v46 = vld [vmem:[#allocation2 + $0x14] sm:$0xf] }
 0x124   : > { %v511_v13 = vpop.permute.xlu1 %510  ;;  %v1394_v26 = vcombine.low %v1388_v38, %v1388_v38 }
 0x125   : > { %v521_v59 = vsel %vm520_vm6, %v511_v13, %v5140_v50  ;;  %v5212_v10 = vpop.permute.xlu0 %580  ;;  %v2022_v15 = vld [vmem:[#allocation3 + $0x28] sm:$0xff] }
 0x126   : > { %529 = vst [vmem:[#allocation3 + $0x20] sm:$0xf0] %v521_v59  ;;  %1335 = vrot.lane.b32.xlu1 %v1328_v54, %s4517_s26  ;;  %v4339_v23 = vpack.c.bf16 %v2022_v15, %v2018_v28  ;;  %v2023_v29 = vld [vmem:[#allocation3 + $0x30] sm:$0xff]  ;;  %v1515_v54 = vsel %vm290_vm3, %v1512_v1, %v1513_v19  ;;  %v1455_v59 = vmul.f32 %v1450_v49, %v4788_v32 }
 0x127   : > { %1337 = vrot.lane.b32.xlu0 %v1323_v8, %s4517_s26  ;;  %v4371_v56 = vpack.c.bf16 %v2023_v29, %v2019_v37  ;;  %v1460_v8 = vcombine.high %v5234_v34, %v5234_v34  ;;  %v1514_v29 = vsel %vm357_vm0, %v1512_v1, %v5007_v57 }
 0x128   : > { %4340 = vmatprep.subr.bf16.mxu0 %v4339_v23  ;;  %v583_v50 = vpop.permute.xlu1 %582  ;;  %v1461_v23 = vcombine.high %v1455_v59, %v1455_v59 }
 0x129   : > { %v589_v45 = vsel %vm563_vm5, %v5212_v10, %v583_v50  ;;  %v585_v58 = vpop.permute.xlu0 %584  ;;  %v2024_v3 = vld [vmem:[#allocation3 + $0x38] sm:$0xff] }
 0x12a   : > { %597 = vst [vmem:[#allocation3 + $0x48] sm:$0xf] %v589_v45  ;;  %v590_v40 = vsel %vm563_vm5, %v583_v50, %v585_v58  ;;  %1398 = vrot.lane.b32.xlu1 %v5220_v36, %s4516_s20  ;;  %v4369_v24 = vpack.c.bf16 %v2024_v3, %v2020_v63  ;;  %v1456_v50 = vmul.f32 %v1447_v0, %v1420_v46 }
 0x12b   : > { %598 = vst [vmem:[#allocation3 + $0x50] sm:$0xf] %v590_v40  ;;  %1400 = vrot.lane.b32.xlu0 %v1394_v26, %s4516_s20 }
 0x12c   : > { %4370 = vmatprep.subr.bf16.mxu1 %v4369_v24  ;;  %v587_v16 = vpop.permute.xlu1 %586 }
 0x12d   : > { %v591_v14 = vsel %vm563_vm5, %v585_v58, %v587_v16  ;;  %v5237_v41 = vpop.permute.xlu0 %647  ;;  %4372 = vmatpush1.bf16.msra.mxu1 %v4371_v56  ;;  %v2021_v61 = vld [vmem:[#allocation3 + $0x20] sm:$0xff]  ;;  %v1520_v58 = vmul.f32 %v5157_v31, %v1514_v29  ;;  %v1580_v56 = vrot.slane %v5015_v2, 4  ;;  %v1553_v29 = vld [vmem:[#allocation2 + $0x14] sm:$0xf] }
 0x12e   : > { %599 = vst [vmem:[#allocation3 + $0x58] sm:$0xf] %v591_v14  ;;  %1402 = vrot.lane.b32.xlu1 %v1388_v38, %s4516_s20  ;;  %v4341_v13 = vpack.c.bf16 %v2021_v61, %v2017_v51  ;;  %v1516_v38 = vsel %vm357_vm0, %v1515_v54, %v5002_v53  ;;  %v1486_v53 = vld [vmem:[#allocation2 + $0x14] sm:$0xf]  ;;  %v1646_v54 = vrot.slane %v5033_v20, 4 }
 0x12f   : > { %1404 = vrot.lane.b32.xlu0 %v1395_v25, %s4516_s20  ;;  %v1521_v45 = vmul.f32 %v1516_v38, %v4788_v32  ;;  %v1522_v63 = vmul.f32 %v1513_v19, %v1486_v53  ;;  %v1579_v19 = vrot.slane %v5026_v35, 4  ;;  %v1393_v25 = vcombine.low %v5220_v36, %v5220_v36 }
 0x130   : > { %4342 = vmatpush1.bf16.msra.mxu0 %v4341_v13  ;;  %v650_v21 = vpop.permute.xlu1 %649 }
 0x131   : > { %v656_v28 = vsel %vm494_vm4, %v5237_v41, %v650_v21  ;;  %v652_v15 = vpop.permute.xlu0 %651  ;;  %v1527_v33 = vcombine.low %v1521_v45, %v1521_v45  ;;  %v1528_v24 = vcombine.low %v1522_v63, %v1522_v63  ;;  %v1581_v14 = vsel %vm6548_vm2, %v1579_v19, %v5026_v35 }
 0x132   : > { %664 = vst [vmem:[#allocation3 + $0x48] sm:$0xf0] %v656_v28  ;;  %v657_v42 = vsel %vm494_vm4, %v650_v21, %v652_v15  ;;  %1464 = vrot.lane.b32.xlu1 %v1460_v8, %s4515_s16  ;;  %v1582_v49 = vsel %vm290_vm3, %v1579_v19, %v1580_v56  ;;  %v1645_v8 = vrot.slane %v5036_v12, 4  ;;  %v5283_v35 = vmul.f32 %v5157_v31, %v1581_v14 }
 0x133   : > { %665 = vst [vmem:[#allocation3 + $0x50] sm:$0xf0] %v657_v42  ;;  %1466 = vrot.lane.b32.xlu0 %v1455_v59, %s4515_s16  ;;  %v1526_v21 = vcombine.low %v1520_v58, %v1520_v58 }
 0x134   : > { %v654_v52 = vpop.permute.xlu1 %653  ;;  %v1648_v46 = vsel %vm290_vm3, %v1645_v8, %v1646_v54  ;;  %v1593_v38 = vcombine.high %v5283_v35, %v5283_v35  ;;  %v1647_v63 = vsel %vm494_vm4, %v1645_v8, %v5036_v12  ;;  %v1779_v8 = vrot.slane %v5061_v55, 4 }
 0x135   : > { %v658_v47 = vsel %vm494_vm4, %v652_v15, %v654_v52  ;;  %v714_v48 = vpop.permute.xlu0 %713  ;;  %v1583_v15 = vsel %vm6548_vm2, %v1582_v49, %v5015_v2 }
 0x136   : > { %666 = vst [vmem:[#allocation3 + $0x58] sm:$0xf0] %v658_v47  ;;  %1468 = vrot.lane.b32.xlu1 %v1461_v23, %s4515_s16  ;;  %v1588_v52 = vmul.f32 %v1583_v15, %v4788_v32 }
 0x137   : > { %1470 = vrot.lane.b32.xlu0 %v1456_v50, %s4515_s16 }
 0x138   : > { %v716_v26 = vpop.permute.xlu1 %715 }
 0x139   : > { %v722_v0 = vsel %vm6548_vm2, %v714_v48, %v716_v26  ;;  %v718_v3 = vpop.permute.xlu0 %717  ;;  %v2026_v50 = vld [vmem:[#allocation3 + $0x48] sm:$0xff] }
 0x13a   : > { %730 = vst [vmem:[#allocation3 + $0x68] sm:$0xf] %v722_v0  ;;  %v723_v57 = vsel %vm6548_vm2, %v716_v26, %v718_v3  ;;  %1531 = vrot.lane.b32.xlu1 %v1520_v58, %s4514_s11  ;;  %v1594_v58 = vcombine.high %v1588_v52, %v1588_v52  ;;  %v1589_v26 = vmul.f32 %v1580_v56, %v1553_v29  ;;  %v2027_v56 = vld [vmem:[#allocation3 + $0x50] sm:$0xff] }
 0x13b   : > { %731 = vst [vmem:[#allocation3 + $0x70] sm:$0xf] %v723_v57  ;;  %1533 = vrot.lane.b32.xlu0 %v1527_v33, %s4514_s11  ;;  %v1619_v57 = vld [vmem:[#allocation2 + $0x14] sm:$0xf] }
 0x13c   : > { %v720_v40 = vpop.permute.xlu1 %719 }
 0x13d   : > { %v724_v37 = vsel %vm6548_vm2, %v718_v3, %v720_v40  ;;  %v781_v1 = vpop.permute.xlu0 %780  ;;  %v2028_v3 = vld [vmem:[#allocation3 + $0x58] sm:$0xff]  ;;  %v1713_v40 = vrot.slane %v5046_v30, 4 }
 0x13e   : > { %732 = vst [vmem:[#allocation3 + $0x78] sm:$0xf] %v724_v37  ;;  %1535 = vrot.lane.b32.xlu1 %v1521_v45, %s4514_s11 }
 0x13f   : > { %1537 = vrot.lane.b32.xlu0 %v1528_v24, %s4514_s11  ;;  %v1712_v24 = vrot.slane %v5055_v44, 4 }
 0x140   : > { %v783_v16 = vpop.permute.xlu1 %782 }
 0x141   : > { %v789_v51 = vsel %vm357_vm0, %v781_v1, %v783_v16  ;;  %v785_v61 = vpop.permute.xlu0 %784  ;;  %v1715_v49 = vsel %vm290_vm3, %v1712_v24, %v1713_v40 }
 0x142   : > { %797 = vst [vmem:[#allocation3 + $0x68] sm:$0xf0] %v789_v51  ;;  %v790_v13 = vsel %vm357_vm0, %v783_v16, %v785_v61  ;;  %1329 = vrot.lane.b32.xlu1 %v5188_v17, %s4517_s26  ;;  %v1655_v16 = vmul.f32 %v1646_v54, %v1619_v57  ;;  %v1778_v54 = vrot.slane %v5066_v62, 4 }
 0x143   : > { %798 = vst [vmem:[#allocation3 + $0x70] sm:$0xf0] %v790_v13  ;;  %1396 = vrot.lane.b32.xlu0 %v1393_v25, %s4516_s20  ;;  %v1714_v25 = vsel %vm563_vm5, %v1712_v24, %v5055_v44 }
 0x144   : > { %v787_v36 = vpop.permute.xlu1 %786  ;;  %v5329_v44 = vmul.f32 %v5157_v31, %v1714_v25 }
 0x145   : > { %v791_v59 = vsel %vm357_vm0, %v785_v61, %v787_v36  ;;  %v579_v28 = vpop.permute.xlu0 %578 }
 0x146   : > { %799 = vst [vmem:[#allocation3 + $0x78] sm:$0xf0] %v791_v59  ;;  %v588_v17 = vsel %vm563_vm5, %v579_v28, %v5212_v10  ;;  %1462 = vrot.lane.b32.xlu1 %v5234_v34, %s4515_s16  ;;  %v1649_v34 = vsel %vm494_vm4, %v1648_v46, %v5033_v20  ;;  %v1716_v46 = vsel %vm563_vm5, %v1715_v49, %v5046_v30  ;;  %v1686_v30 = vld [vmem:[#allocation2 + $0x14] sm:$0xf] }
 0x147   : > { %596 = vst [vmem:[#allocation3 + $0x40] sm:$0xf] %v588_v17  ;;  %1529 = vrot.lane.b32.xlu0 %v1526_v21, %s4514_s11  ;;  %v1654_v33 = vmul.f32 %v1649_v34, %v4788_v32  ;;  %v1661_v21 = vcombine.low %v1655_v16, %v1655_v16  ;;  %v1845_v16 = vrot.slane %v5079_v11, 4 }
 0x148   : > { %v646_v42 = vpop.permute.xlu1 %645 }
 0x149   : > { %v655_v2 = vsel %vm494_vm4, %v646_v42, %v5237_v41  ;;  %v712_v23 = vpop.permute.xlu0 %711  ;;  %v2030_v10 = vld [vmem:[#allocation3 + $0x68] sm:$0xff]  ;;  %v1660_v61 = vcombine.low %v1654_v33, %v1654_v33  ;;  %v1781_v42 = vsel %vm290_vm3, %v1778_v54, %v1779_v8 }
 0x14a   : > { %663 = vst [vmem:[#allocation3 + $0x40] sm:$0xf0] %v655_v2  ;;  %v721_v47 = vsel %vm6548_vm2, %v712_v23, %v714_v48  ;;  %1597 = vrot.lane.b32.xlu1 %v1593_v38, %s4513_s8  ;;  %v4343_v45 = vpack.c.bf16 %v2030_v10, %v2026_v50  ;;  %v2031_v41 = vld [vmem:[#allocation3 + $0x70] sm:$0xff]  ;;  %v1721_v23 = vmul.f32 %v1716_v46, %v4788_v32 }
 0x14b   : > { %729 = vst [vmem:[#allocation3 + $0x60] sm:$0xf] %v721_v47  ;;  %1599 = vrot.lane.b32.xlu0 %v1588_v52, %s4513_s8  ;;  %v4375_v12 = vpack.c.bf16 %v2031_v41, %v2027_v56  ;;  %v1726_v52 = vcombine.high %v5329_v44, %v5329_v44  ;;  %v1782_v29 = vsel %vm520_vm6, %v1781_v42, %v5061_v55  ;;  %v1752_v55 = vld [vmem:[#allocation2 + $0x14] sm:$0xf] }
 0x14c   : > { %4344 = vmatprep.subr.bf16.mxu0 %v4343_v45  ;;  %v779_v53 = vpop.permute.xlu1 %778  ;;  %v1727_v45 = vcombine.high %v1721_v23, %v1721_v23 }
 0x14d   : > { %v788_v0 = vsel %vm357_vm0, %v779_v53, %v781_v1  ;;  %v5307_v20 = vpop.permute.xlu0 %846  ;;  %v2032_v48 = vld [vmem:[#allocation3 + $0x78] sm:$0xff]  ;;  %v5315_v1 = vmul.f32 %v5157_v31, %v1647_v63  ;;  %v1722_v53 = vmul.f32 %v1713_v40, %v1686_v30  ;;  %v1787_v63 = vmul.f32 %v1782_v29, %v4788_v32 }
 0x14e   : > { %796 = vst [vmem:[#allocation3 + $0x60] sm:$0xf0] %v788_v0  ;;  %1601 = vrot.lane.b32.xlu1 %v1594_v58, %s4513_s8  ;;  %v4373_v37 = vpack.c.bf16 %v2032_v48, %v2028_v3  ;;  %v1780_v58 = vsel %vm520_vm6, %v1778_v54, %v5066_v62  ;;  %v1788_v48 = vmul.f32 %v1779_v8, %v1752_v55  ;;  %v1912_v54 = vrot.slane %v5084_v22, 4 }
 0x14f   : > { %1603 = vrot.lane.b32.xlu0 %v1589_v26, %s4513_s8  ;;  %v1786_v0 = vmul.f32 %v5157_v31, %v1780_v58  ;;  %v1793_v40 = vcombine.low %v1787_v63, %v1787_v63  ;;  %v1979_v55 = vrot.slane %v5094_v39, 4 }
 0x150   : > { %4374 = vmatprep.subr.bf16.mxu1 %v4373_v37  ;;  %v849_v19 = vpop.permute.xlu1 %848  ;;  %v1794_v37 = vcombine.low %v1788_v48, %v1788_v48 }
 0x151   : > { %v855_v14 = vsel %vm288_vm1, %v5307_v20, %v849_v19  ;;  %v851_v51 = vpop.permute.xlu0 %850  ;;  %4376 = vmatpush1.bf16.msra.mxu1 %v4375_v12  ;;  %v2025_v15 = vld [vmem:[#allocation3 + $0x40] sm:$0xff] }
 0x152   : > { %863 = vst [vmem:[#allocation3 + $0x88] sm:$0xf] %v855_v14  ;;  %v856_v13 = vsel %vm288_vm1, %v849_v19, %v851_v51  ;;  %1664 = vrot.lane.b32.xlu1 %v5315_v1, %s4512_s27  ;;  %v1846_v19 = vrot.slane %v5072_v9, 4  ;;  %v1659_v14 = vcombine.low %v5315_v1, %v5315_v1 }
 0x153   : > { %864 = vst [vmem:[#allocation3 + $0x90] sm:$0xf] %v856_v13  ;;  %1666 = vrot.lane.b32.xlu0 %v1660_v61, %s4512_s27 }
 0x154   : > { %v853_v36 = vpop.permute.xlu1 %852  ;;  %v1848_v13 = vsel %vm290_vm3, %v1845_v16, %v1846_v19 }
 0x155   : > { %v857_v59 = vsel %vm288_vm1, %v851_v51, %v853_v36  ;;  %v5332_v28 = vpop.permute.xlu0 %914  ;;  %v2029_v17 = vld [vmem:[#allocation3 + $0x60] sm:$0xff]  ;;  %v1847_v51 = vsel %vm451_vm7, %v1845_v16, %v5079_v11  ;;  %v1911_v36 = vrot.slane %v5088_v27, 4 }
 0x156   : > { %865 = vst [vmem:[#allocation3 + $0x98] sm:$0xf] %v857_v59  ;;  %1668 = vrot.lane.b32.xlu1 %v1654_v33, %s4512_s27  ;;  %v4345_v38 = vpack.c.bf16 %v2029_v17, %v2025_v15  ;;  %v5378_v11 = vmul.f32 %v5157_v31, %v1847_v51  ;;  %v1849_v17 = vsel %vm451_vm7, %v1848_v13, %v5072_v9 }
 0x157   : > { %1670 = vrot.lane.b32.xlu0 %v1661_v21, %s4512_s27  ;;  %v1792_v21 = vcombine.low %v1786_v0, %v1786_v0  ;;  %v1914_v46 = vsel %vm290_vm3, %v1911_v36, %v1912_v54 }
 0x158   : > { %4346 = vmatpush1.bf16.msra.mxu0 %v4345_v38  ;;  %v917_v2 = vpop.permute.xlu1 %916  ;;  %v1859_v38 = vcombine.high %v5378_v11, %v5378_v11 }
 0x159   : > { %v924_v50 = vsel %vm6545_vm11, %v5332_v28, %v917_v2  ;;  %v919_v10 = vpop.permute.xlu0 %918 }
 0x15a   : > { %932 = vst [vmem:[#allocation3 + $0x88] sm:$0xf0] %v924_v50  ;;  %v925_v34 = vsel %vm6545_vm11, %v917_v2, %v919_v10  ;;  %1730 = vrot.lane.b32.xlu1 %v1726_v52, %s4511_s24  ;;  %v1854_v52 = vmul.f32 %v1849_v17, %v4788_v32  ;;  %v1819_v50 = vld [vmem:[#allocation2 + $0x14] sm:$0xf] }
 0x15b   : > { %933 = vst [vmem:[#allocation3 + $0x90] sm:$0xf0] %v925_v34  ;;  %1732 = vrot.lane.b32.xlu0 %v1721_v23, %s4511_s24  ;;  %v1952_v17 = vld [vmem:[#allocation2 + $0x14] sm:$0xf] }
 0x15c   : > { %v921_v47 = vpop.permute.xlu1 %920  ;;  %v1860_v34 = vcombine.high %v1854_v52, %v1854_v52 }
 0x15d   : > { %v926_v41 = vsel %vm6545_vm11, %v919_v10, %v921_v47  ;;  %v983_v26 = vpop.permute.xlu0 %982  ;;  %v1855_v47 = vmul.f32 %v1846_v19, %v1819_v50 }
 0x15e   : > { %934 = vst [vmem:[#allocation3 + $0x98] sm:$0xf0] %v926_v41  ;;  %1734 = vrot.lane.b32.xlu1 %v1727_v45, %s4511_s24  ;;  %v1913_v45 = vsel %vm383_vm8, %v1911_v36, %v5088_v27 }
 0x15f   : > { %1736 = vrot.lane.b32.xlu0 %v1722_v53, %s4511_s24 }
 0x160   : > { %v985_v3 = vpop.permute.xlu1 %984 }
 0x161   : > { %v992_v33 = vsel %vm6546_vm10, %v983_v26, %v985_v3  ;;  %v987_v57 = vpop.permute.xlu0 %986  ;;  %v2034_v23 = vld [vmem:[#allocation3 + $0x88] sm:$0xff] }
 0x162   : > { %1000 = vst [vmem:[#allocation3 + $0xa8] sm:$0xf] %v992_v33  ;;  %v993_v62 = vsel %vm6546_vm10, %v985_v3, %v987_v57  ;;  %1797 = vrot.lane.b32.xlu1 %v1786_v0, %s4509_s19  ;;  %v1978_v0 = vrot.slane %v5102_v18, 4  ;;  %v2035_v48 = vld [vmem:[#allocation3 + $0x90] sm:$0xff]  ;;  %v1919_v33 = vmul.f32 %v5157_v31, %v1913_v45 }
 0x163   : > { %1001 = vst [vmem:[#allocation3 + $0xb0] sm:$0xf] %v993_v62  ;;  %1799 = vrot.lane.b32.xlu0 %v1793_v40, %s4509_s19 }
 0x164   : > { %v989_v24 = vpop.permute.xlu1 %988  ;;  %v1980_v62 = vsel %vm314_vm9, %v1978_v0, %v5102_v18 }
 0x165   : > { %v994_v56 = vsel %vm6546_vm10, %v987_v57, %v989_v24  ;;  %v1052_v12 = vpop.permute.xlu0 %1051  ;;  %v2036_v58 = vld [vmem:[#allocation3 + $0x98] sm:$0xff]  ;;  %v1986_v16 = vmul.f32 %v5157_v31, %v1980_v62 }
 0x166   : > { %1002 = vst [vmem:[#allocation3 + $0xb8] sm:$0xf] %v994_v56  ;;  %1801 = vrot.lane.b32.xlu1 %v1787_v63, %s4509_s19  ;;  %v1885_v63 = vld [vmem:[#allocation2 + $0x14] sm:$0xf] }
 0x167   : > { %1803 = vrot.lane.b32.xlu0 %v1794_v37, %s4509_s19  ;;  %v1921_v40 = vmul.f32 %v1912_v54, %v1885_v63  ;;  %v1992_v54 = vcombine.high %v1986_v16, %v1986_v16  ;;  %v4305_v63 = vld [vmem:[%s6541_s5 + $0x8] sm:$0xf] }
 0x168   : > { %v1054_v25 = vpop.permute.xlu1 %1053 }
 0x169   : > { %v1061_v61 = vsel %vm1059_vm15, %v1052_v12, %v1054_v25  ;;  %v1056_v49 = vpop.permute.xlu0 %1055  ;;  %v1927_v18 = vcombine.low %v1921_v40, %v1921_v40 }
 0x16a   : > { %1069 = vst [vmem:[#allocation3 + $0xa8] sm:$0xf0] %v1061_v61  ;;  %v1062_v8 = vsel %vm1059_vm15, %v1054_v25, %v1056_v49  ;;  %1595 = vrot.lane.b32.xlu1 %v5283_v35, %s4513_s8 }
 0x16b   : > { %1070 = vst [vmem:[#allocation3 + $0xb0] sm:$0xf0] %v1062_v8  ;;  %1662 = vrot.lane.b32.xlu0 %v1659_v14, %s4512_s27 }
 0x16c   : > { %v1058_v1 = vpop.permute.xlu1 %1057 }
 0x16d   : > { %v1063_v59 = vsel %vm1059_vm15, %v1056_v49, %v1058_v1  ;;  %v845_v15 = vpop.permute.xlu0 %844 }
 0x16e   : > { %1071 = vst [vmem:[#allocation3 + $0xb8] sm:$0xf0] %v1063_v59  ;;  %v854_v35 = vsel %vm288_vm1, %v845_v15, %v5307_v20  ;;  %1728 = vrot.lane.b32.xlu1 %v5329_v44, %s4511_s24  ;;  %v1915_v44 = vsel %vm383_vm8, %v1914_v46, %v5084_v22 }
 0x16f   : > { %862 = vst [vmem:[#allocation3 + $0x80] sm:$0xf] %v854_v35  ;;  %1795 = vrot.lane.b32.xlu0 %v1792_v21, %s4509_s19  ;;  %v4524_v21 = vmov 0  }
 0x170   : > { %v913_v42 = vpop.permute.xlu1 %912  ;;  %4487 = vset.pattern.permute.xlu0 %v4524_v21 }
 0x171   : > { %v923_v9 = vsel %vm6545_vm11, %v913_v42, %v5332_v28  ;;  %v981_v2 = vpop.permute.xlu0 %980  ;;  %v2038_v20 = vld [vmem:[#allocation3 + $0xa8] sm:$0xff]  ;;  %vm6551_vm11 = vcmask 982016  }
 0x172   : > { %931 = vst [vmem:[#allocation3 + $0x80] sm:$0xf0] %v923_v9  ;;  %v991_v10 = vsel %vm6546_vm10, %v981_v2, %v983_v26  ;;  %1863 = vrot.lane.b32.xlu1 %v1859_v38, %s4508_s12  ;;  %v4347_v30 = vpack.c.bf16 %v2038_v20, %v2034_v23  ;;  %v2039_v28 = vld [vmem:[#allocation3 + $0xb0] sm:$0xff]  ;;  %v1920_v26 = vmul.f32 %v1915_v44, %v4788_v32  ;;  %vm6552_vm10 = vmmov %vm6551_vm11 }
 0x173   : > { %999 = vst [vmem:[#allocation3 + $0xa0] sm:$0xf] %v991_v10  ;;  %1865 = vrot.lane.b32.xlu0 %v1854_v52, %s4508_s12  ;;  %v4379_v27 = vpack.c.bf16 %v2039_v28, %v2035_v48  ;;  %v1988_v38 = vmul.f32 %v1979_v55, %v1952_v17  ;;  %v2254_v52 = vld [vmem:[%s6541_s5] sm:$0xf]  ;;  %v1925_v2 = vcombine.low %v1919_v33, %v1919_v33 }
 0x174   : > { %4348 = vmatprep.subr.bf16.mxu0 %v4347_v30  ;;  %v1050_v29 = vpop.permute.xlu1 %1049  ;;  %v1926_v56 = vcombine.low %v1920_v26, %v1920_v26  ;;  %v2259_v44 = vrot.slane %v2254_v52, %v4575_v4  ;;  %v2263_v10 = vrot.slane %v2254_v52, %v4577_v5  ;;  %v2271_v45 = vrot.slane %v2254_v52, %v4581_v7 }
 0x175   : > { %v1060_v53 = vsel %vm1059_vm15, %v1050_v29, %v1052_v12  ;;  %v5402_v22 = vpop.permute.xlu0 %1119  ;;  %v2040_v41 = vld [vmem:[#allocation3 + $0xb8] sm:$0xff]  ;;  %v1981_v12 = vsel %vm290_vm3, %v1978_v0, %v1979_v55  ;;  %v2073_v29 = vld [vmem:[%s6538_s2] sm:$0xf]  ;;  %v2394_v48 = vrot.slane %v4305_v63, %v4577_v5 }
 0x176   : > { %1068 = vst [vmem:[#allocation3 + $0xa0] sm:$0xf0] %v1060_v53  ;;  %1867 = vrot.lane.b32.xlu1 %v1860_v34, %s4508_s12  ;;  %v4377_v3 = vpack.c.bf16 %v2040_v41, %v2036_v58  ;;  %v1982_v13 = vsel %vm314_vm9, %v1981_v12, %v5094_v39  ;;  %v2272_v58 = vcombine.low %v2259_v44, %v2263_v10 }
 0x177   : > { %1869 = vrot.lane.b32.xlu0 %v1855_v47, %s4508_s12  ;;  %v1987_v1 = vmul.f32 %v1982_v13, %v4788_v32  ;;  %v2267_v47 = vrot.slane %v2254_v52, %v4579_v6 }
 0x178   : > { %4378 = vmatprep.subr.bf16.mxu1 %v4377_v3  ;;  %v1122_v57 = vpop.permute.xlu1 %1121  ;;  %v2390_v3 = vrot.slane %v4305_v63, %v4575_v4 }
 0x179   : > { %v1129_v24 = vsel %vm1127_vm14, %v5402_v22, %v1122_v57  ;;  %v1124_v37 = vpop.permute.xlu0 %1123  ;;  %4380 = vmatpush1.bf16.msra.mxu1 %v4379_v27  ;;  %v2033_v61 = vld [vmem:[#allocation3 + $0x80] sm:$0xff]  ;;  %v1993_v46 = vcombine.high %v1987_v1, %v1987_v1  ;;  %v2273_v62 = vcombine.low %v2267_v47, %v2271_v45 }
 0x17a   : > { %1137 = vst [vmem:[#allocation3 + $0xc8] sm:$0xf] %v1129_v24  ;;  %v1130_v19 = vsel %vm1127_vm14, %v1122_v57, %v1124_v37  ;;  %1930 = vrot.lane.b32.xlu1 %v1919_v33, %s4506_s30 }
 0x17b   : > { %1138 = vst [vmem:[#allocation3 + $0xd0] sm:$0xf] %v1130_v19  ;;  %1932 = vrot.lane.b32.xlu0 %v1926_v56, %s4506_s30  ;;  %v2403_v19 = vcombine.low %v2390_v3, %v2394_v48 }
 0x17c   : > { %v1126_v25 = vpop.permute.xlu1 %1125 }
 0x17d   : > { %v1131_v14 = vsel %vm1127_vm14, %v1124_v37, %v1126_v25  ;;  %v5420_v51 = vpop.permute.xlu0 %1198  ;;  %v2037_v49 = vld [vmem:[#allocation3 + $0xa0] sm:$0xff] }
 0x17e   : > { %1139 = vst [vmem:[#allocation3 + $0xd8] sm:$0xf] %v1131_v14  ;;  %1934 = vrot.lane.b32.xlu1 %v1920_v26, %s4506_s30  ;;  %v4349_v8 = vpack.c.bf16 %v2037_v49, %v2033_v61 }
 0x17f   : > { %1936 = vrot.lane.b32.xlu0 %v1927_v18, %s4506_s30 }
 0x180   : > { %4350 = vmatpush1.bf16.msra.mxu0 %v4349_v8  ;;  %v1201_v36 = vpop.permute.xlu1 %1200  ;;  %v2398_v8 = vrot.slane %v4305_v63, %v4579_v6 }
 0x181   : > { %v1207_v59 = vsel %vm1102_vm13, %v5420_v51, %v1201_v36  ;;  %v1203_v15 = vpop.permute.xlu0 %1202  ;;  %v2042_v57 = vld [vmem:[#allocation3 + $0xc8] sm:$0xff] }
 0x182   : > { %1215 = vst [vmem:[#allocation3 + $0xe8] sm:$0xf] %v1207_v59  ;;  %v1208_v39 = vsel %vm1102_vm13, %v1201_v36, %v1203_v15  ;;  %1996 = vrot.lane.b32.xlu1 %v1992_v54, %s4507_s7  ;;  %v2402_v59 = vrot.slane %v4305_v63, %v4581_v7 }
 0x183   : > { %1216 = vst [vmem:[#allocation3 + $0xf0] sm:$0xf] %v1208_v39  ;;  %1998 = vrot.lane.b32.xlu0 %v1987_v1, %s4507_s7  ;;  %v2043_v1 = vld [vmem:[#allocation3 + $0xd0] sm:$0xff] }
 0x184   : > { %v1205_v35 = vpop.permute.xlu1 %1204 }
 0x185   : > { %v1209_v32 = vsel %vm1102_vm13, %v1203_v15, %v1205_v35  ;;  %v1266_v42 = vpop.permute.xlu0 %1265  ;;  %v2044_v49 = vld [vmem:[#allocation3 + $0xd8] sm:$0xff] }
 0x186   : > { %1217 = vst [vmem:[#allocation3 + $0xf8] sm:$0xf] %v1209_v32  ;;  %2000 = vrot.lane.b32.xlu1 %v1993_v46, %s4507_s7 }
 0x187   : > { %2002 = vrot.lane.b32.xlu0 %v1988_v38, %s4507_s7  ;;  %v4308_v38 = vld [vmem:[%s6541_s5 + $0x14] sm:$0xf] }
 0x188   : > { %v1268_v9 = vpop.permute.xlu1 %1267 }
 0x189   : > { %v1274_v23 = vsel %vm6549_vm12, %v1266_v42, %v1268_v9  ;;  %v1270_v20 = vpop.permute.xlu0 %1269 }
 0x18a   : > { %1282 = vst [vmem:[#allocation3 + $0xe8] sm:$0xf0] %v1274_v23  ;;  %v1275_v50 = vsel %vm6549_vm12, %v1268_v9, %v1270_v20  ;;  %1861 = vrot.lane.b32.xlu1 %v5378_v11, %s4508_s12  ;;  %v4304_v11 = vld [vmem:[%s6541_s5 + $0x4] sm:$0xf]  ;;  %v2404_v23 = vcombine.low %v2398_v8, %v2402_v59 }
 0x18b   : > { %1283 = vst [vmem:[#allocation3 + $0xf0] sm:$0xf0] %v1275_v50  ;;  %1928 = vrot.lane.b32.xlu0 %v1925_v2, %s4506_s30  ;;  %v2324_v41 = vrot.slane %v4304_v11, %v4575_v4  ;;  %v2328_v26 = vrot.slane %v4304_v11, %v4577_v5  ;;  %v2332_v56 = vrot.slane %v4304_v11, %v4579_v6  ;;  %v4312_v8 = vld [vmem:[%s6541_s5 + $0x24] sm:$0xf] }
 0x18c   : > { %v1272_v30 = vpop.permute.xlu1 %1271  ;;  %v2336_v12 = vrot.slane %v4304_v11, %v4581_v7 }
 0x18d   : > { %v1276_v34 = vsel %vm6549_vm12, %v1270_v20, %v1272_v30  ;;  %v1118_v28 = vpop.permute.xlu0 %1117  ;;  %v2337_v0 = vcombine.low %v2324_v41, %v2328_v26  ;;  %v2586_v30 = vrot.slane %v4308_v38, %v4575_v4 }
 0x18e   : > { %1284 = vst [vmem:[#allocation3 + $0xf8] sm:$0xf0] %v1276_v34  ;;  %v1128_v53 = vsel %vm1127_vm14, %v1118_v28, %v5402_v22  ;;  %1994 = vrot.lane.b32.xlu1 %v1986_v16, %s4507_s7  ;;  %v5467_v22 = vld [vmem:[%s6541_s5 + $0xc] sm:$0xf]  ;;  %v2338_v21 = vcombine.low %v2332_v56, %v2336_v12  ;;  %v4309_v28 = vld [vmem:[%s6541_s5 + $0x18] sm:$0xf] }
 0x18f   : > { %1136 = vst [vmem:[#allocation3 + $0xc0] sm:$0xf] %v1128_v53  ;;  %2076 = vperm.xlu0 %4487, %v2073_v29   ;;  %v2455_v16 = vrot.slane %v5467_v22, %v4575_v4  ;;  %v2459_v25 = vrot.slane %v5467_v22, %v4577_v5  ;;  %v2463_v20 = vrot.slane %v5467_v22, %v4579_v6  ;;  %v4311_v56 = vld [vmem:[%s6541_s5 + $0x20] sm:$0xf] }
 0x190   : > { %v1197_v55 = vpop.permute.xlu1 %1196  ;;  %v2467_v50 = vrot.slane %v5467_v22, %v4581_v7  ;;  %v2590_v29 = vrot.slane %v4308_v38, %v4577_v5  ;;  %v2652_v26 = vrot.slane %v4309_v28, %v4575_v4  ;;  %v2656_v63 = vrot.slane %v4309_v28, %v4577_v5 }
 0x191   : > { %v1206_v27 = vsel %vm1102_vm13, %v1197_v55, %v5420_v51  ;;  %v1264_v33 = vpop.permute.xlu0 %1263  ;;  %v2046_v40 = vld [vmem:[#allocation3 + $0xe8] sm:$0xff]  ;;  %v4307_v51 = vld [vmem:[%s6541_s5 + $0x10] sm:$0xf]  ;;  %v2468_v17 = vcombine.low %v2455_v16, %v2459_v25  ;;  %v2660_v25 = vrot.slane %v4309_v28, %v4579_v6 }
 0x192   : > { %1214 = vst [vmem:[#allocation3 + $0xe0] sm:$0xf] %v1206_v27  ;;  %v1273_v24 = vsel %vm6549_vm12, %v1264_v33, %v1266_v42  ;;  %v4351_v37 = vpack.c.bf16 %v2046_v40, %v2042_v57  ;;  %2274 = vrot.lane.b32.xlu1 %v2272_v58, %s4507_s7  ;;  %v2047_v14 = vld [vmem:[#allocation3 + $0xf0] sm:$0xff]  ;;  %v2521_v39 = vrot.slane %v4307_v51, %v4575_v4 }
 0x193   : > { %1281 = vst [vmem:[#allocation3 + $0xe0] sm:$0xf0] %v1273_v24  ;;  %2339 = vrot.lane.b32.xlu0 %v2337_v0, %s4506_s30  ;;  %v4383_v15 = vpack.c.bf16 %v2047_v14, %v2043_v1  ;;  %v2525_v35 = vrot.slane %v4307_v51, %v4577_v5  ;;  %v2469_v11 = vcombine.low %v2463_v20, %v2467_v50  ;;  %v4310_v0 = vld [vmem:[%s6541_s5 + $0x1c] sm:$0xf] }
 0x194   : > { %4352 = vmatprep.subr.bf16.mxu0 %v4351_v37  ;;  %v5480_v18 = vpop.permute.xlu1 %1331  ;;  %v2529_v53 = vrot.slane %v4307_v51, %v4579_v6  ;;  %v2533_v58 = vrot.slane %v4307_v51, %v4581_v7  ;;  %v2599_v41 = vcombine.low %v2586_v30, %v2590_v29  ;;  %v2594_v33 = vrot.slane %v4308_v38, %v4579_v6 }
 0x195   : > { %v1334_v61 = vpop.permute.xlu0 %1333  ;;  %v2048_v13 = vld [vmem:[#allocation3 + $0xf8] sm:$0xff]  ;;  %v2534_v10 = vcombine.low %v2521_v39, %v2525_v35  ;;  %v2598_v57 = vrot.slane %v4308_v38, %v4581_v7  ;;  %v2665_v40 = vcombine.low %v2652_v26, %v2656_v63  ;;  %v2721_v24 = vrot.slane %v4310_v0, %v4577_v5  ;;  %v4313_v38 = vld [vmem:[%s6541_s5 + $0x28] sm:$0xf] }
 0x196   : > { %v1340_v54 = vsel %vm6551_vm11, %v5480_v18, %v1334_v61  ;;  %v4381_v36 = vpack.c.bf16 %v2048_v13, %v2044_v49  ;;  %2276 = vrot.lane.b32.xlu1 %v2273_v62, %s4507_s7  ;;  %v2041_v9 = vld [vmem:[#allocation3 + $0xc0] sm:$0xff]  ;;  %v2535_v27 = vcombine.low %v2529_v53, %v2533_v58  ;;  %v2717_v62 = vrot.slane %v4310_v0, %v4575_v4  ;;  %v5582_v63 = vld [vmem:[%s6541_s5 + $0x30] sm:$0xf] }
 0x197   : > { %1348 = vst [vmem:[#allocation3 + $0x108] sm:$0xf] %v1340_v54  ;;  %2405 = vrot.lane.b32.xlu0 %v2403_v19, %s4508_s12  ;;  %v2600_v16 = vcombine.low %v2594_v33, %v2598_v57  ;;  %v2664_v14 = vrot.slane %v4309_v28, %v4581_v7  ;;  %v2787_v49 = vrot.slane %v4311_v56, %v4577_v5 }
 0x198   : > { %4382 = vmatprep.subr.bf16.mxu1 %v4381_v36  ;;  %v1336_v46 = vpop.permute.xlu1 %1335  ;;  %v2730_v51 = vcombine.low %v2717_v62, %v2721_v24  ;;  %v2725_v59 = vrot.slane %v4310_v0, %v4579_v6  ;;  %v2848_v39 = vrot.slane %v4312_v8, %v4575_v4  ;;  %v2852_v35 = vrot.slane %v4312_v8, %v4577_v5 }
 0x199   : > { %v1341_v32 = vsel %vm6551_vm11, %v1334_v61, %v1336_v46  ;;  %v1338_v42 = vpop.permute.xlu0 %1337  ;;  %4384 = vmatpush1.bf16.msra.mxu1 %v4383_v15  ;;  %v2783_v61 = vrot.slane %v4311_v56, %v4575_v4  ;;  %v2729_v15 = vrot.slane %v4310_v0, %v4581_v7  ;;  %v2914_v20 = vrot.slane %v4313_v38, %v4575_v4 }
 0x19a   : > { %1349 = vst [vmem:[#allocation3 + $0x110] sm:$0xf] %v1341_v32  ;;  %v1342_v52 = vsel %vm6552_vm10, %v1336_v46, %v1338_v42  ;;  %v2045_v2 = vld [vmem:[#allocation3 + $0xe0] sm:$0xff]  ;;  %2341 = vrot.lane.b32.xlu1 %v2338_v21, %s4506_s30  ;;  %vm6553_vm10 = vcmask 973824   ;;  %v2666_v21 = vcombine.low %v2660_v25, %v2664_v14  ;;  %v2918_v50 = vrot.slane %v4313_v38, %v4577_v5 }
 0x19b   : > { %1350 = vst [vmem:[#allocation3 + $0x118] sm:$0xf] %v1342_v52  ;;  %v4353_v44 = vpack.c.bf16 %v2045_v2, %v2041_v9  ;;  %2470 = vrot.lane.b32.xlu0 %v2468_v17, %s4509_s19  ;;  %vm6554_vm11 = vmmov %vm6553_vm10  ;;  %v2796_v17 = vcombine.low %v2783_v61, %v2787_v49  ;;  %v2731_v52 = vcombine.low %v2725_v59, %v2729_v15  ;;  %v4317_v15 = vld [vmem:[%s6541_s5 + $0x3c] sm:$0xf] }
 0x19c   : > { %v5506_v34 = vpop.permute.xlu1 %1398  ;;  %v2791_v9 = vrot.slane %v4311_v56, %v4579_v6  ;;  %v2795_v2 = vrot.slane %v4311_v56, %v4581_v7  ;;  %v2927_v53 = vcombine.low %v2914_v20, %v2918_v50  ;;  %v2922_v33 = vrot.slane %v4313_v38, %v4579_v6  ;;  %v4316_v56 = vld [vmem:[%s6541_s5 + $0x38] sm:$0xf] }
 0x19d   : > { %v1401_v47 = vpop.permute.xlu0 %1400  ;;  %4354 = vmatpush1.bf16.msra.mxu0 %v4353_v44  ;;  %v2926_v57 = vrot.slane %v4313_v38, %v4581_v7  ;;  %v3057_v38 = vrot.slane %v5582_v63, %v4581_v7 }
 0x19e   : > { %v1407_v45 = vsel %vm6553_vm10, %v5506_v34, %v1401_v47  ;;  %2407 = vrot.lane.b32.xlu1 %v2404_v23, %s4508_s12  ;;  %v2861_v23 = vcombine.low %v2848_v39, %v2852_v35  ;;  %v3053_v39 = vrot.slane %v5582_v63, %v4579_v6 }
 0x19f   : > { %1415 = vst [vmem:[#allocation3 + $0x108] sm:$0xf0] %v1407_v45  ;;  %2536 = vrot.lane.b32.xlu0 %v2534_v10, %s4511_s24  ;;  %v5567_v10 = vld [vmem:[%s6541_s5 + $0x2c] sm:$0xf]  ;;  %v2856_v45 = vrot.slane %v4312_v8, %v4579_v6  ;;  %v2928_v61 = vcombine.low %v2922_v33, %v2926_v57  ;;  %v4320_v57 = vld [vmem:[%s6541_s5 + $0x48] sm:$0xf] }
 0x1a0   : > { %v1403_v55 = vpop.permute.xlu1 %1402  ;;  %v2979_v58 = vrot.slane %v5567_v10, %v4575_v4  ;;  %v2987_v49 = vrot.slane %v5567_v10, %v4579_v6 }
 0x1a1   : > { %v1408_v3 = vsel %vm6554_vm11, %v1401_v47, %v1403_v55  ;;  %v1405_v48 = vpop.permute.xlu0 %1404  ;;  %v2797_v47 = vcombine.low %v2791_v9, %v2795_v2  ;;  %vm6555_vm11 = vcmask 982016   ;;  %v4318_v2 = vld [vmem:[%s6541_s5 + $0x40] sm:$0xf] }
 0x1a2   : > { %1416 = vst [vmem:[#allocation3 + $0x110] sm:$0xf0] %v1408_v3  ;;  %v1409_v22 = vsel %vm6553_vm10, %v1403_v55, %v1405_v48  ;;  %2472 = vrot.lane.b32.xlu1 %v2469_v11, %s4509_s19  ;;  %v2860_v11 = vrot.slane %v4312_v8, %v4581_v7 }
 0x1a3   : > { %1417 = vst [vmem:[#allocation3 + $0x118] sm:$0xf0] %v1409_v22  ;;  %2601 = vrot.lane.b32.xlu0 %v2599_v41, %s4512_s27  ;;  %v2983_v41 = vrot.slane %v5567_v10, %v4577_v5 }
 0x1a4   : > { %v5530_v37 = vpop.permute.xlu1 %1464 }
 0x1a5   : > { %v1467_v12 = vpop.permute.xlu0 %1466  ;;  %v2992_v62 = vcombine.low %v2979_v58, %v2983_v41  ;;  %v4319_v41 = vld [vmem:[%s6541_s5 + $0x44] sm:$0xf] }
 0x1a6   : > { %v1473_v19 = vsel %vm314_vm9, %v5530_v37, %v1467_v12  ;;  %2538 = vrot.lane.b32.xlu1 %v2535_v27, %s4511_s24  ;;  %v2050_v48 = vld [vmem:[#allocation3 + $0x108] sm:$0xff]  ;;  %v2862_v27 = vcombine.low %v2856_v45, %v2860_v11  ;;  %v3253_v11 = vrot.slane %v4318_v2, %v4575_v4 }
 0x1a7   : > { %1481 = vst [vmem:[#allocation3 + $0x128] sm:$0xf] %v1473_v19  ;;  %2667 = vrot.lane.b32.xlu0 %v2665_v40, %s4513_s8 }
 0x1a8   : > { %v1469_v13 = vpop.permute.xlu1 %1468 }
 0x1a9   : > { %v1474_v54 = vsel %vm314_vm9, %v1467_v12, %v1469_v13  ;;  %v1471_v36 = vpop.permute.xlu0 %1470 }
 0x1aa   : > { %1482 = vst [vmem:[#allocation3 + $0x130] sm:$0xf] %v1474_v54  ;;  %v1475_v1 = vsel %vm314_vm9, %v1469_v13, %v1471_v36  ;;  %2603 = vrot.lane.b32.xlu1 %v2600_v16, %s4512_s27  ;;  %v2052_v14 = vld [vmem:[#allocation3 + $0x118] sm:$0xff]  ;;  %v2991_v13 = vrot.slane %v5567_v10, %v4581_v7  ;;  %v3122_v36 = vrot.slane %v4316_v56, %v4575_v4 }
 0x1ab   : > { %1483 = vst [vmem:[#allocation3 + $0x138] sm:$0xf] %v1475_v1  ;;  %2732 = vrot.lane.b32.xlu0 %v2730_v51, %s4514_s11  ;;  %v3126_v1 = vrot.slane %v4316_v56, %v4577_v5 }
 0x1ac   : > { %v1532_v46 = vpop.permute.xlu1 %1531 }
 0x1ad   : > { %v1534_v32 = vpop.permute.xlu0 %1533 }
 0x1ae   : > { %v1540_v42 = vsel %vm383_vm8, %v1532_v46, %v1534_v32  ;;  %2669 = vrot.lane.b32.xlu1 %v2666_v21, %s4513_s8 }
 0x1af   : > { %1548 = vst [vmem:[#allocation3 + $0x128] sm:$0xf0] %v1540_v42  ;;  %2798 = vrot.lane.b32.xlu0 %v2796_v17, %s4515_s16  ;;  %v3187_v42 = vrot.slane %v4317_v15, %v4575_v4 }
 0x1b0   : > { %v1536_v44 = vpop.permute.xlu1 %1535 }
 0x1b1   : > { %v1541_v30 = vsel %vm383_vm8, %v1534_v32, %v1536_v44  ;;  %v1538_v29 = vpop.permute.xlu0 %1537  ;;  %v3135_v32 = vcombine.low %v3122_v36, %v3126_v1 }
 0x1b2   : > { %1549 = vst [vmem:[#allocation3 + $0x130] sm:$0xf0] %v1541_v30  ;;  %v1542_v28 = vsel %vm383_vm8, %v1536_v44, %v1538_v29  ;;  %2734 = vrot.lane.b32.xlu1 %v2731_v52, %s4514_s11  ;;  %v3191_v52 = vrot.slane %v4317_v15, %v4577_v5  ;;  %v3059_v30 = vcombine.low %v3053_v39, %v3057_v38 }
 0x1b3   : > { %1550 = vst [vmem:[#allocation3 + $0x138] sm:$0xf0] %v1542_v28  ;;  %2863 = vrot.lane.b32.xlu0 %v2861_v23, %s4516_s20  ;;  %v3130_v29 = vrot.slane %v4316_v56, %v4579_v6  ;;  %v3134_v28 = vrot.slane %v4316_v56, %v4581_v7  ;;  %v3265_v56 = vrot.slane %v4318_v2, %v4581_v7 }
 0x1b4   : > { %v1330_v26 = vpop.permute.xlu1 %1329  ;;  %v3200_v45 = vcombine.low %v3187_v42, %v3191_v52  ;;  %v3396_v38 = vrot.slane %v4320_v57, %v4581_v7 }
 0x1b5   : > { %v1339_v55 = vsel %vm6555_vm11, %v1330_v26, %v5480_v18  ;;  %v1397_v0 = vpop.permute.xlu0 %1396  ;;  %v3045_v18 = vrot.slane %v5582_v63, %v4575_v4  ;;  %vm4525_vm11 = vmmov 1  }
 0x1b6   : > { %1347 = vst [vmem:[#allocation3 + $0x100] sm:$0xf] %v1339_v55  ;;  %v1406_v3 = vsel %vm6553_vm10, %v1397_v0, %v5506_v34  ;;  %v2054_v22 = vld [vmem:[#allocation3 + $0x128] sm:$0xff]  ;;  %2800 = vrot.lane.b32.xlu1 %v2797_v47, %s4515_s16  ;;  %v3049_v34 = vrot.slane %v5582_v63, %v4577_v5  ;;  %v3136_v55 = vcombine.low %v3130_v29, %v3134_v28  ;;  %vm5780_vm10 = vmpackc.low %vm290_vm3, %vm4525_vm11  ;;  %vm6547_vm11 = vcmask 883712  }
 0x1b7   : > { %1414 = vst [vmem:[#allocation3 + $0x100] sm:$0xf0] %v1406_v3  ;;  %v4355_v40 = vpack.c.bf16 %v2054_v22, %v2050_v48  ;;  %2929 = vrot.lane.b32.xlu0 %v2927_v53, %s4517_s26  ;;  %v3257_v53 = vrot.slane %v4318_v2, %v4577_v5  ;;  %v3195_v0 = vrot.slane %v4317_v15, %v4579_v6 }
 0x1b8   : > { %v1463_v24 = vpop.permute.xlu1 %1462  ;;  %v3058_v54 = vcombine.low %v3045_v18, %v3049_v34  ;;  %v3199_v3 = vrot.slane %v4317_v15, %v4581_v7  ;;  %v3318_v22 = vrot.slane %v4319_v41, %v4575_v4 }
 0x1b9   : > { %v1472_v12 = vsel %vm314_vm9, %v1463_v24, %v5530_v37  ;;  %v1530_v19 = vpop.permute.xlu0 %1529  ;;  %4356 = vmatprep.subr.bf16.mxu0 %v4355_v40  ;;  %v2055_v16 = vld [vmem:[#allocation3 + $0x130] sm:$0xff]  ;;  %v3266_v48 = vcombine.low %v3253_v11, %v3257_v53  ;;  %v3261_v24 = vrot.slane %v4318_v2, %v4579_v6  ;;  %v4323_v2 = vld [vmem:[%s6541_s5 + $0x54] sm:$0xf] }
 0x1ba   : > { %1480 = vst [vmem:[#allocation3 + $0x120] sm:$0xf] %v1472_v12  ;;  %v1539_v25 = vsel %vm383_vm8, %v1530_v19, %v1532_v46  ;;  %v2056_v51 = vld [vmem:[#allocation3 + $0x138] sm:$0xff]  ;;  %2865 = vrot.lane.b32.xlu1 %v2862_v27, %s4516_s20  ;;  %v2051_v37 = vld [vmem:[#allocation3 + $0x110] sm:$0xff]  ;;  %v2993_v46 = vcombine.low %v2987_v49, %v2991_v13  ;;  %v3322_v27 = vrot.slane %v4319_v41, %v4577_v5 }
 0x1bb   : > { %1547 = vst [vmem:[#allocation3 + $0x120] sm:$0xf0] %v1539_v25  ;;  %v4385_v8 = vpack.c.bf16 %v2056_v51, %v2052_v14  ;;  %2994 = vrot.lane.b32.xlu0 %v2992_v62, %s4518_s9  ;;  %v4387_v59 = vpack.c.bf16 %v2055_v16, %v2051_v37  ;;  %v3201_v34 = vcombine.low %v3195_v0, %v3199_v3  ;;  %v4321_v14 = vld [vmem:[%s6541_s5 + $0x4c] sm:$0xf] }
 0x1bc   : > { %v5610_v21 = vpop.permute.xlu1 %1597  ;;  %v3331_v12 = vcombine.low %v3318_v22, %v3322_v27  ;;  %v3384_v19 = vrot.slane %v4320_v57, %v4575_v4  ;;  %v3388_v16 = vrot.slane %v4320_v57, %v4577_v5  ;;  %v3267_v49 = vcombine.low %v3261_v24, %v3265_v56  ;;  %v5708_v27 = vld [vmem:[%s6541_s5 + $0x5c] sm:$0xf] }
 0x1bd   : > { %v1600_v17 = vpop.permute.xlu0 %1599  ;;  %4386 = vmatprep.subr.bf16.mxu1 %v4385_v8  ;;  %v3326_v13 = vrot.slane %v4319_v41, %v4579_v6  ;;  %v3330_v8 = vrot.slane %v4319_v41, %v4581_v7  ;;  %v3453_v36 = vrot.slane %v4321_v14, %v4577_v5  ;;  %v3580_v29 = vrot.slane %v4323_v2, %v4575_v4 }
 0x1be   : > { %v1606_v35 = vsel %vm451_vm7, %v5610_v21, %v1600_v17  ;;  %4388 = vmatpush1.bf16.msra.mxu1 %v4387_v59  ;;  %2931 = vrot.lane.b32.xlu1 %v2928_v61, %s4517_s26  ;;  %v2049_v44 = vld [vmem:[#allocation3 + $0x100] sm:$0xff]  ;;  %v3397_v37 = vcombine.low %v3384_v19, %v3388_v16  ;;  %v4322_v59 = vld [vmem:[%s6541_s5 + $0x50] sm:$0xf]  ;;  %v3584_v28 = vrot.slane %v4323_v2, %v4577_v5 }
 0x1bf   : > { %1614 = vst [vmem:[#allocation3 + $0x148] sm:$0xf] %v1606_v35  ;;  %3060 = vrot.lane.b32.xlu0 %v3058_v54, %s4519_s14  ;;  %v3449_v54 = vrot.slane %v4321_v14, %v4575_v4  ;;  %v3332_v35 = vcombine.low %v3326_v13, %v3330_v8  ;;  %v3515_v42 = vrot.slane %v4322_v59, %v4575_v4 }
 0x1c0   : > { %v1602_v9 = vpop.permute.xlu1 %1601  ;;  %v3519_v52 = vrot.slane %v4322_v59, %v4577_v5  ;;  %v3593_v0 = vcombine.low %v3580_v29, %v3584_v28  ;;  %v3588_v24 = vrot.slane %v4323_v2, %v4579_v6  ;;  %v3592_v56 = vrot.slane %v4323_v2, %v4581_v7 }
 0x1c1   : > { %v1607_v23 = vsel %vm451_vm7, %v1600_v17, %v1602_v9  ;;  %v1604_v20 = vpop.permute.xlu0 %1603  ;;  %v3723_v2 = vrot.slane %v5708_v27, %v4581_v7 }
 0x1c2   : > { %1615 = vst [vmem:[#allocation3 + $0x150] sm:$0xf] %v1607_v23  ;;  %v1608_v50 = vsel %vm451_vm7, %v1602_v9, %v1604_v20  ;;  %v2053_v10 = vld [vmem:[#allocation3 + $0x120] sm:$0xff]  ;;  %2996 = vrot.lane.b32.xlu1 %v2993_v46, %s4518_s9  ;;  %v3392_v46 = vrot.slane %v4320_v57, %v4579_v6 }
 0x1c3   : > { %1616 = vst [vmem:[#allocation3 + $0x158] sm:$0xf] %v1608_v50  ;;  %v4357_v47 = vpack.c.bf16 %v2053_v10, %v2049_v44  ;;  %3137 = vrot.lane.b32.xlu0 %v3135_v32, %s4520_s23  ;;  %v3462_v32 = vcombine.low %v3449_v54, %v3453_v36  ;;  %v3457_v44 = vrot.slane %v4321_v14, %v4579_v6 }
 0x1c4   : > { %v5636_v58 = vpop.permute.xlu1 %1664  ;;  %v3398_v50 = vcombine.low %v3392_v46, %v3396_v38  ;;  %v3461_v10 = vrot.slane %v4321_v14, %v4581_v7  ;;  %v4326_v14 = vld [vmem:[%s6541_s5 + $0x60] sm:$0xf]  ;;  %v4327_v38 = vld [vmem:[%s6541_s5 + $0x64] sm:$0xf] }
 0x1c5   : > { %v1667_v26 = vpop.permute.xlu0 %1666  ;;  %4358 = vmatpush1.bf16.msra.mxu0 %v4357_v47 }
 0x1c6   : > { %v1673_v63 = vsel %vm520_vm6, %v5636_v58, %v1667_v26  ;;  %3062 = vrot.lane.b32.xlu1 %v3059_v30, %s4519_s14  ;;  %v3528_v30 = vcombine.low %v3515_v42, %v3519_v52 }
 0x1c7   : > { %1681 = vst [vmem:[#allocation3 + $0x148] sm:$0xf0] %v1673_v63  ;;  %3202 = vrot.lane.b32.xlu0 %v3200_v45, %s4521_s29  ;;  %v4324_v45 = vld [vmem:[%s6541_s5 + $0x58] sm:$0xf]  ;;  %v3523_v63 = vrot.slane %v4322_v59, %v4579_v6 }
 0x1c8   : > { %v1669_v33 = vpop.permute.xlu1 %1668  ;;  %v3646_v3 = vrot.slane %v4324_v45, %v4575_v4  ;;  %v3654_v13 = vrot.slane %v4324_v45, %v4579_v6  ;;  %v3658_v8 = vrot.slane %v4324_v45, %v4581_v7 }
 0x1c9   : > { %v1674_v40 = vsel %vm520_vm6, %v1667_v26, %v1669_v33  ;;  %v1671_v62 = vpop.permute.xlu0 %1670  ;;  %v3463_v26 = vcombine.low %v3457_v44, %v3461_v10  ;;  %v4328_v10 = vld [vmem:[%s6541_s5 + $0x68] sm:$0xf] }
 0x1ca   : > { %1682 = vst [vmem:[#allocation3 + $0x150] sm:$0xf0] %v1674_v40  ;;  %v1675_v18 = vsel %vm520_vm6, %v1669_v33, %v1671_v62  ;;  %3139 = vrot.lane.b32.xlu1 %v3136_v55, %s4520_s23  ;;  %v3527_v55 = vrot.slane %v4322_v59, %v4581_v7  ;;  %v3660_v42 = vcombine.low %v3654_v13, %v3658_v8 }
 0x1cb   : > { %1683 = vst [vmem:[#allocation3 + $0x158] sm:$0xf0] %v1675_v18  ;;  %3268 = vrot.lane.b32.xlu0 %v3266_v48, %s4522_s17  ;;  %v3650_v48 = vrot.slane %v4324_v45, %v4577_v5 }
 0x1cc   : > { %v5660_v25 = vpop.permute.xlu1 %1730 }
 0x1cd   : > { %v1733_v51 = vpop.permute.xlu0 %1732  ;;  %v3659_v19 = vcombine.low %v3646_v3, %v3650_v48 }
 0x1ce   : > { %v1739_v61 = vsel %vm563_vm5, %v5660_v25, %v1733_v51  ;;  %3204 = vrot.lane.b32.xlu1 %v3201_v34, %s4521_s29  ;;  %v2058_v62 = vld [vmem:[#allocation3 + $0x148] sm:$0xff]  ;;  %v3529_v34 = vcombine.low %v3523_v63, %v3527_v55  ;;  %v3908_v55 = vrot.slane %v4328_v10, %v4575_v4 }
 0x1cf   : > { %1747 = vst [vmem:[#allocation3 + $0x168] sm:$0xf] %v1739_v61  ;;  %3333 = vrot.lane.b32.xlu0 %v3331_v12, %s4523_s28 }
 0x1d0   : > { %v1735_v1 = vpop.permute.xlu1 %1734 }
 0x1d1   : > { %v1740_v15 = vsel %vm563_vm5, %v1733_v51, %v1735_v1  ;;  %v1737_v17 = vpop.permute.xlu0 %1736 }
 0x1d2   : > { %1748 = vst [vmem:[#allocation3 + $0x170] sm:$0xf] %v1740_v15  ;;  %v1741_v39 = vsel %vm563_vm5, %v1735_v1, %v1737_v17  ;;  %3270 = vrot.lane.b32.xlu1 %v3267_v49, %s4522_s17  ;;  %v2060_v54 = vld [vmem:[#allocation3 + $0x158] sm:$0xff]  ;;  %v3594_v1 = vcombine.low %v3588_v24, %v3592_v56  ;;  %v2059_v15 = vld [vmem:[#allocation3 + $0x150] sm:$0xff]  ;;  %v3777_v17 = vrot.slane %v4326_v14, %v4575_v4 }
 0x1d3   : > { %1749 = vst [vmem:[#allocation3 + $0x178] sm:$0xf] %v1741_v39  ;;  %3399 = vrot.lane.b32.xlu0 %v3397_v37, %s4507_s7  ;;  %v3781_v39 = vrot.slane %v4326_v14, %v4577_v5  ;;  %v3916_v24 = vrot.slane %v4328_v10, %v4579_v6  ;;  %v3920_v56 = vrot.slane %v4328_v10, %v4581_v7 }
 0x1d4   : > { %v1798_v9 = vpop.permute.xlu1 %1797 }
 0x1d5   : > { %v1800_v23 = vpop.permute.xlu0 %1799 }
 0x1d6   : > { %v1806_v20 = vsel %vm494_vm4, %v1798_v9, %v1800_v23  ;;  %3335 = vrot.lane.b32.xlu1 %v3332_v35, %s4523_s28 }
 0x1d7   : > { %1814 = vst [vmem:[#allocation3 + $0x168] sm:$0xf0] %v1806_v20  ;;  %3464 = vrot.lane.b32.xlu0 %v3462_v32, %s4506_s30  ;;  %v3842_v20 = vrot.slane %v4327_v38, %v4575_v4 }
 0x1d8   : > { %v1802_v47 = vpop.permute.xlu1 %1801 }
 0x1d9   : > { %v1807_v11 = vsel %vm494_vm4, %v1800_v23, %v1802_v47  ;;  %v1804_v53 = vpop.permute.xlu0 %1803  ;;  %v3790_v23 = vcombine.low %v3777_v17, %v3781_v39 }
 0x1da   : > { %1815 = vst [vmem:[#allocation3 + $0x170] sm:$0xf0] %v1807_v11  ;;  %v1808_v41 = vsel %vm494_vm4, %v1802_v47, %v1804_v53  ;;  %3401 = vrot.lane.b32.xlu1 %v3398_v50, %s4507_s7  ;;  %v3846_v50 = vrot.slane %v4327_v38, %v4577_v5  ;;  %v3785_v53 = vrot.slane %v4326_v14, %v4579_v6 }
 0x1db   : > { %1816 = vst [vmem:[#allocation3 + $0x178] sm:$0xf0] %v1808_v41  ;;  %3530 = vrot.lane.b32.xlu0 %v3528_v30, %s4508_s12  ;;  %v3789_v41 = vrot.slane %v4326_v14, %v4581_v7 }
 0x1dc   : > { %v1596_v22 = vpop.permute.xlu1 %1595  ;;  %v3855_v63 = vcombine.low %v3842_v20, %v3846_v50 }
 0x1dd   : > { %v1605_v33 = vsel %vm451_vm7, %v1596_v22, %v5610_v21  ;;  %v1663_v57 = vpop.permute.xlu0 %1662  ;;  %v3711_v21 = vrot.slane %v5708_v27, %v4575_v4 }
 0x1de   : > { %1613 = vst [vmem:[#allocation3 + $0x140] sm:$0xf] %v1605_v33  ;;  %v1672_v40 = vsel %vm520_vm6, %v1663_v57, %v5636_v58  ;;  %v2062_v18 = vld [vmem:[#allocation3 + $0x168] sm:$0xff]  ;;  %3466 = vrot.lane.b32.xlu1 %v3463_v26, %s4506_s30  ;;  %v3715_v58 = vrot.slane %v5708_v27, %v4577_v5  ;;  %v3850_v33 = vrot.slane %v4327_v38, %v4579_v6 }
 0x1df   : > { %1680 = vst [vmem:[#allocation3 + $0x140] sm:$0xf0] %v1672_v40  ;;  %v4359_v12 = vpack.c.bf16 %v2062_v18, %v2058_v62  ;;  %3595 = vrot.lane.b32.xlu0 %v3593_v0, %s4509_s19  ;;  %v3912_v0 = vrot.slane %v4328_v10, %v4577_v5  ;;  %v3854_v57 = vrot.slane %v4327_v38, %v4581_v7  ;;  %v2016_v38 = vld [vmem:[%s6537_s1] sm:$0xf] }
 0x1e0   : > { %v1729_v16 = vpop.permute.xlu1 %1728 }
 0x1e1   : > { %v1738_v51 = vsel %vm563_vm5, %v1729_v16, %v5660_v25  ;;  %v1796_v61 = vpop.permute.xlu0 %1795  ;;  %4360 = vmatprep.subr.bf16.mxu0 %v4359_v12  ;;  %v2063_v49 = vld [vmem:[#allocation3 + $0x170] sm:$0xff]  ;;  %v3724_v25 = vcombine.low %v3711_v21, %v3715_v58  ;;  %v3921_v40 = vcombine.low %v3908_v55, %v3912_v0  ;;  %v3922_v58 = vcombine.low %v3916_v24, %v3920_v56 }
 0x1e2   : > { %1746 = vst [vmem:[#allocation3 + $0x160] sm:$0xf] %v1738_v51  ;;  %v1805_v37 = vsel %vm494_vm4, %v1796_v61, %v1798_v9  ;;  %v2064_v36 = vld [vmem:[#allocation3 + $0x178] sm:$0xff]  ;;  %3532 = vrot.lane.b32.xlu1 %v3529_v34, %s4508_s12  ;;  %v4391_v46 = vpack.c.bf16 %v2063_v49, %v2059_v15  ;;  %v3719_v9 = vrot.slane %v5708_v27, %v4579_v6 }
 0x1e3   : > { %1813 = vst [vmem:[#allocation3 + $0x160] sm:$0xf0] %v1805_v37  ;;  %v4389_v59 = vpack.c.bf16 %v2064_v36, %v2060_v54  ;;  %3661 = vrot.lane.b32.xlu0 %v3659_v19, %s4511_s24  ;;  %v3791_v27 = vcombine.low %v3785_v53, %v3789_v41  ;;  %v3856_v34 = vcombine.low %v3850_v33, %v3854_v57 }
 0x1e4   : > { %v5734_v35 = vpop.permute.xlu1 %1863  ;;  %v3725_v11 = vcombine.low %v3719_v9, %v3723_v2 }
 0x1e5   : > { %v1866_v32 = vpop.permute.xlu0 %1865  ;;  %4390 = vmatprep.subr.bf16.mxu1 %v4389_v59 }
 0x1e6   : > { %v1872_v52 = vsel %vm6548_vm2, %v5734_v35, %v1866_v32  ;;  %4392 = vmatpush1.bf16.msra.mxu1 %v4391_v46  ;;  %3597 = vrot.lane.b32.xlu1 %v3594_v1, %s4509_s19  ;;  %v2057_v47 = vld [vmem:[#allocation3 + $0x140] sm:$0xff] }
 0x1e7   : > { %1880 = vst [vmem:[#allocation3 + $0x188] sm:$0xf] %v1872_v52  ;;  %3726 = vrot.lane.b32.xlu0 %v3724_v25, %s4512_s27 }
 0x1e8   : > { %v1868_v44 = vpop.permute.xlu1 %1867 }
 0x1e9   : > { %v1873_v30 = vsel %vm6548_vm2, %v1866_v32, %v1868_v44  ;;  %v1870_v29 = vpop.permute.xlu0 %1869 }
 0x1ea   : > { %1881 = vst [vmem:[#allocation3 + $0x190] sm:$0xf] %v1873_v30  ;;  %v1874_v28 = vsel %vm6548_vm2, %v1868_v44, %v1870_v29  ;;  %v2061_v45 = vld [vmem:[#allocation3 + $0x160] sm:$0xff]  ;;  %3663 = vrot.lane.b32.xlu1 %v3660_v42, %s4511_s24 }
 0x1eb   : > { %1882 = vst [vmem:[#allocation3 + $0x198] sm:$0xf] %v1874_v28  ;;  %v4361_v26 = vpack.c.bf16 %v2061_v45, %v2057_v47  ;;  %3792 = vrot.lane.b32.xlu0 %v3790_v23, %s4513_s8 }
 0x1ec   : > { %v1931_v3 = vpop.permute.xlu1 %1930 }
 0x1ed   : > { %v1933_v48 = vpop.permute.xlu0 %1932  ;;  %4362 = vmatpush1.bf16.msra.mxu0 %v4361_v26 }
 0x1ee   : > { %v1939_v22 = vsel %vm357_vm0, %v1931_v3, %v1933_v48  ;;  %3728 = vrot.lane.b32.xlu1 %v3725_v11, %s4512_s27 }
 0x1ef   : > { %1947 = vst [vmem:[#allocation3 + $0x188] sm:$0xf0] %v1939_v22  ;;  %3857 = vrot.lane.b32.xlu0 %v3855_v63, %s4514_s11 }
 0x1f0   : > { %v1935_v62 = vpop.permute.xlu1 %1934 }
 0x1f1   : > { %v1940_v4 = vsel %vm357_vm0, %v1933_v48, %v1935_v62  ;;  %v1937_v5 = vpop.permute.xlu0 %1936 }
 0x1f2   : > { %1948 = vst [vmem:[#allocation3 + $0x190] sm:$0xf0] %v1940_v4  ;;  %v1941_v18 = vsel %vm357_vm0, %v1935_v62, %v1937_v5  ;;  %3794 = vrot.lane.b32.xlu1 %v3791_v27, %s4513_s8 }
 0x1f3   : > { %1949 = vst [vmem:[#allocation3 + $0x198] sm:$0xf0] %v1941_v18  ;;  %3923 = vrot.lane.b32.xlu0 %v3921_v40, %s4515_s16 }
 0x1f4   : > { %v1997_v12 = vpop.permute.xlu1 %1996 }
 0x1f5   : > { %v1999_v19 = vpop.permute.xlu0 %1998 }
 0x1f6   : > { %v2005_v21 = vsel %vm288_vm1, %v1997_v12, %v1999_v19  ;;  %3859 = vrot.lane.b32.xlu1 %v3856_v34, %s4514_s11  ;;  %v2066_v8 = vld [vmem:[#allocation3 + $0x188] sm:$0xff] }
 0x1f7   : > { %2013 = vst [vmem:[#allocation3 + $0x1a8] sm:$0xf] %v2005_v21 }
 0x1f8   : > { %v2001_v16 = vpop.permute.xlu1 %2000 }
 0x1f9   : > { %v2006_v14 = vsel %vm288_vm1, %v1999_v19, %v2001_v16  ;;  %v2003_v51 = vpop.permute.xlu0 %2002 }
 0x1fa   : > { %2014 = vst [vmem:[#allocation3 + $0x1b0] sm:$0xf] %v2006_v14  ;;  %v2007_v6 = vsel %vm288_vm1, %v2001_v16, %v2003_v51  ;;  %3925 = vrot.lane.b32.xlu1 %v3922_v58, %s4515_s16  ;;  %v2068_v25 = vld [vmem:[#allocation3 + $0x198] sm:$0xff] }
 0x1fb   : > { %2015 = vst [vmem:[#allocation3 + $0x1b8] sm:$0xf] %v2007_v6 }
 0x1fc   : > { %v1862_v7 = vpop.permute.xlu1 %1861 }
 0x1fd   : > { %v1871_v61 = vsel %vm6548_vm2, %v1862_v7, %v5734_v35  ;;  %v1929_v49 = vpop.permute.xlu0 %1928  ;;  %v2067_v35 = vld [vmem:[#allocation3 + $0x190] sm:$0xff] }
 0x1fe   : > { %1879 = vst [vmem:[#allocation3 + $0x180] sm:$0xf] %v1871_v61  ;;  %v1938_v13 = vsel %vm357_vm0, %v1929_v49, %v1931_v3  ;;  %v2070_v37 = vld [vmem:[#allocation3 + $0x1a8] sm:$0xf] }
 0x1ff   : > { %1946 = vst [vmem:[#allocation3 + $0x180] sm:$0xf0] %v1938_v13  ;;  %v4363_v36 = vpack.c.bf16 %v2070_v37, %v2066_v8 }
 0x200   : > { %v1995_v1 = vpop.permute.xlu1 %1994 }
 0x201   : > { %v2004_v59 = vsel %vm288_vm1, %v1995_v1, %v1997_v12  ;;  %4365 = vmatprep.subr.msk.bf16.mxu0 %vm5780_vm10, %v4363_v36  ;;  %v2071_v15 = vld [vmem:[#allocation3 + $0x1b0] sm:$0xf] }
 0x202   : > { %2012 = vst [vmem:[#allocation3 + $0x1a0] sm:$0xf] %v2004_v59  ;;  %v2072_v17 = vld [vmem:[#allocation3 + $0x1b8] sm:$0xf]  ;;  %v4396_v46 = vpack.c.bf16 %v2071_v15, %v2067_v35 }
 0x203   : > { %v4393_v39 = vpack.c.bf16 %v2072_v17, %v2068_v25 }
 0x204   : > { %v5800_v9 = vpop.permute.xlu1 %2274 }
 0x205   : > { %4395 = vmatprep.subr.msk.bf16.mxu1 %vm5780_vm10, %v4393_v39  ;;  %v2278_v18 = vrot.slane %v5800_v9, 4 }
 0x206   : > { %4398 = vmatpush1.bf16.msk.msra.mxu1 %vm5780_vm10, %v4396_v46  ;;  %v2065_v32 = vld [vmem:[#allocation3 + $0x180] sm:$0xff] }
 0x208   : > { %v2277_v23 = vpop.permute.xlu1 %2276 }
 0x209   : > { %v2069_v42 = vld [vmem:[#allocation3 + $0x1a0] sm:$0xf]  ;;  %4303 = vmatmul.mubr.msk.f32.vlgmr.msra.gmra.mrb[0].mxu1 %vm6547_vm11, %v2016_v38  ;;  %v2279_v40 = vrot.slane %v2277_v23, 4 }
 0x20a   : > { %v4366_v52 = vpack.c.bf16 %v2069_v42, %v2065_v32  ;;  %4178 = vmatprep.mubr.f32.mxu1 %v4510_v43 }
 0x20b   : > { %v2281_v56 = vsel %vm290_vm3, %v2278_v18, %v2279_v40 }
 0x20c   : > { %4368 = vmatpush1.bf16.msk.msra.mxu0 %vm5780_vm10, %v4366_v52  ;;  %v5802_v50 = vpop.permute.xlu1 %2341  ;;  %v2282_v21 = vsel %vm288_vm1, %v2281_v56, %v2277_v23 }
 0x20d   : > { %v2344_v24 = vrot.slane %v5802_v50, 4 }
 0x20e   : > { %v2077_v2 = vpop.permute.xlu0 %2076 }
 0x20f   : > { %4300 = vmatmul.mubr.msk.f32.vlgmr.msra.gmra.mrb[0].mxu0 %vm6547_vm11, %v2016_v38  ;;  %vm6558_vm11 = vcmask 973824  }
 0x210   : > { %4107 = vmatprep.mubr.f32.mxu0 %v4510_v43  ;;  %v5806_v10 = vpop.permute.xlu1 %2407 }
 0x211   : > { %v2410_v14 = vrot.slane %v5806_v10, 4 }
 0x212   : > { %v2340_v20 = vpop.permute.xlu0 %2339 }
 0x213   : > { %v2343_v34 = vrot.slane %v2340_v20, 4 }
 0x214   : > { %v5808_v11 = vpop.permute.xlu1 %2472 }
 0x215   : > { %v2346_v12 = vsel %vm290_vm3, %v2343_v34, %v2344_v24  ;;  %v2345_v58 = vsel %vm357_vm0, %v2343_v34, %v2340_v20  ;;  %v2475_v37 = vrot.slane %v5808_v11, 4 }
 0x216   : > { %v5804_v44 = vpop.permute.xlu0 %2405  ;;  %v2347_v13 = vsel %vm357_vm0, %v2346_v12, %v5802_v50 }
 0x217   : > { %v2409_v16 = vrot.slane %v5804_v44, 4 }
 0x218   : > { %v5816_v22 = vpop.permute.xlu1 %2538 }
 0x219   : > { %v2412_v1 = vsel %vm290_vm3, %v2409_v16, %v2410_v14  ;;  %v2541_v32 = vrot.slane %v5816_v22, 4 }
 0x21a   : > { %v2471_v47 = vpop.permute.xlu0 %2470  ;;  %v2413_v35 = vsel %vm6548_vm2, %v2412_v1, %v5806_v10 }
 0x21b   : > { %v2474_v8 = vrot.slane %v2471_v47, 4 }
 0x21c   : > { %v5824_v5 = vpop.permute.xlu1 %2603 }
 0x21d   : > { %v2476_v25 = vsel %vm494_vm4, %v2474_v8, %v2471_v47  ;;  %v2477_v46 = vsel %vm290_vm3, %v2474_v8, %v2475_v37 }
 0x21e   : > { %v5812_v0 = vpop.permute.xlu0 %2536  ;;  %v2478_v52 = vsel %vm494_vm4, %v2477_v46, %v5808_v11 }
 0x21f   : > { %v2540_v38 = vrot.slane %v5812_v0, 4 }
 0x220   : > { %v5838_v51 = vpop.permute.xlu1 %2669 }
 0x221   : > { %v2543_v10 = vsel %vm290_vm3, %v2540_v38, %v2541_v32  ;;  %v2542_v50 = vsel %vm563_vm5, %v2540_v38, %v5812_v0 }
 0x222   : > { %v5820_v62 = vpop.permute.xlu0 %2601  ;;  %v2544_v47 = vsel %vm563_vm5, %v2543_v10, %v5816_v22 }
 0x224   : > { %v5859_v17 = vpop.permute.xlu1 %2734 }
 0x226   : > { %v5832_v19 = vpop.permute.xlu0 %2667 }
 0x22a   : > { %v5855_v59 = vpop.permute.xlu0 %2732 }
 0x22e   : > { %v5874_v23 = vpop.permute.xlu0 %2798 }
 0x232   : > { %v5889_v11 = vpop.permute.xlu0 %2863 }
 0x2dc   : > { %v2232_v30 = vpop.f32.mrb[0].mxu1 }
 0x2dd   : > { %v2233_v29 = vadd.f32 %v2232_v30, %v2077_v2  ;;  %v2234_v28 = vpop.f32.mrb[1].mxu1  ;;  %v5879_v30 = vpop.permute.xlu1 %2800 }
 0x2de   : > { %v2235_v45 = vadd.f32 %v2234_v28, %v2077_v2 }
 0x2df   : > { %v2239_v53 = vmax.f32 %v2233_v29, 0.0 }
 0x2e0   : > { %v2240_v43 = vmax.f32 %v2235_v45, 0.0  ;;  %v2280_v45 = vsel %vm288_vm1, %v2278_v18, %v5800_v9 }
 0x2e1   : > { %v4496_v48 = vcombine.low %v2239_v53, %v2239_v53 }
 0x2e2   : > { %v5810_v41 = vcombine.low %v2239_v53, %v2240_v43  ;;  %v2161_v26 = vpop.f32.mrb[0].mxu0  ;;  %v2411_v43 = vsel %vm6548_vm2, %v2409_v16, %v5804_v44  ;;  %vm6559_vm2 = vmmov %vm6558_vm11 }
 0x2e3   : > { %v2162_v63 = vadd.f32 %v2161_v26, %v2077_v2  ;;  %v2163_v55 = vpop.f32.mrb[1].mxu0  ;;  %3112 = vst [vmem:[#allocation3 + $0xd0] sm:$0xf0] %v4496_v48  ;;  %v5894_v26 = vpop.permute.xlu1 %2865 }
 0x2e4   : > { %2250 = vst [vmem:[#allocation2 + $0xc] sm:$0xff] %v5810_v41  ;;  %v2164_v3 = vadd.f32 %v2163_v55, %v2077_v2  ;;  %3113 = vst [vmem:[#allocation3 + $0xd8] sm:$0xf0] %v5810_v41  ;;  %v5900_v48 = vpop.permute.xlu0 %2929 }
 0x2e5   : > { %v2237_v27 = vmax.f32 %v2162_v63, 0.0 }
 0x2e6   : > { %v2238_v33 = vmax.f32 %v2164_v3, 0.0 }
 0x2e7   : > { %v4497_v4 = vcombine.low %v2237_v27, %v2237_v27 }
 0x2e8   : > { %v5818_v57 = vcombine.low %v2237_v27, %v2238_v33  ;;  %v5903_v27 = vpop.permute.xlu1 %2931 }
 0x2e9   : > { %3110 = vst [vmem:[#allocation3 + $0xc0] sm:$0xf0] %v4497_v4  ;;  %v5910_v4 = vpop.permute.xlu0 %2994 }
 0x2ea   : > { %2249 = vst [vmem:[#allocation2 + $0x4] sm:$0xff] %v5818_v57  ;;  %3111 = vst [vmem:[#allocation3 + $0xc8] sm:$0xf0] %v5818_v57 }
 0x2eb   : > { %v2253_v36 = vld [vmem:[#allocation2 + $0x10] sm:$0xf] }
 0x2ec   : > { %v2288_v39 = vmul.f32 %v2279_v40, %v2253_v36  ;;  %v2384_v20 = vld [vmem:[#allocation2 + $0x10] sm:$0xf]  ;;  %v5912_v34 = vpop.permute.xlu1 %2996 }
 0x2ed   : > { %v2419_v28 = vmul.f32 %v2410_v14, %v2384_v20  ;;  %v2515_v55 = vld [vmem:[#allocation2 + $0x10] sm:$0xf]  ;;  %v5918_v16 = vpop.permute.xlu0 %3060  ;;  %v2605_v14 = vrot.slane %v5820_v62, 4 }
 0x2ee   : > { %v2550_v3 = vmul.f32 %v2541_v32, %v2515_v55  ;;  %v2318_v22 = vld [vmem:[#allocation2 + $0x10] sm:$0xf]  ;;  %v2671_v32 = vrot.slane %v5832_v19, 4 }
 0x2ef   : > { %v2353_v33 = vmul.f32 %v2344_v24, %v2318_v22  ;;  %v2449_v12 = vld [vmem:[#allocation2 + $0x10] sm:$0xf]  ;;  %v2607_v38 = vsel %vm520_vm6, %v2605_v14, %v5820_v62 }
 0x2f0   : > { %v2484_v24 = vmul.f32 %v2475_v37, %v2449_v12 }
 0x2f1   : > { %v5840_v6 = vld [vmem:[#allocation2] sm:$0xff]  ;;  %v5842_v7 = vld [vmem:[#allocation2 + $0x8] sm:$0xff]  ;;  %v2359_v56 = vcombine.low %v2353_v33, %v2353_v33  ;;  %v5932_v37 = vpop.permute.xlu0 %3137 }
 0x2f2   : > { %v2287_v61 = vmul.f32 %v2282_v21, %v5842_v7  ;;  %v5846_v49 = vmul.f32 %v2345_v58, %v5840_v6  ;;  %v2352_v15 = vmul.f32 %v2347_v13, %v5842_v7  ;;  %v5869_v42 = vmul.f32 %v2476_v25, %v5840_v6  ;;  %v5923_v13 = vpop.permute.xlu1 %3062 }
 0x2f3   : > { %v2418_v2 = vmul.f32 %v2413_v35, %v5842_v7  ;;  %v2483_v29 = vmul.f32 %v2478_v52, %v5842_v7  ;;  %v2286_v53 = vmul.f32 %v2280_v45, %v5840_v6  ;;  %v2549_v63 = vmul.f32 %v2544_v47, %v5842_v7 }
 0x2f4   : > { %2362 = vrot.lane.b32.xlu0 %v5846_v49, %s4514_s11  ;;  %2298 = vrot.lane.b32.xlu1 %v2287_v61, %s4515_s16  ;;  %v2417_v9 = vmul.f32 %v2411_v43, %v5840_v6  ;;  %v2358_v40 = vcombine.low %v2352_v15, %v2352_v15  ;;  %v2293_v18 = vcombine.high %v2287_v61, %v2287_v61  ;;  %v2606_v61 = vrot.slane %v5824_v5, 4 }
 0x2f5   : > { %v2292_v44 = vcombine.high %v2286_v53, %v2286_v53  ;;  %v2489_v58 = vcombine.low %v2483_v29, %v2483_v29  ;;  %v5927_v8 = vmul.f32 %v2542_v50, %v5840_v6  ;;  %v2424_v36 = vcombine.high %v2418_v2, %v2418_v2  ;;  %v5951_v20 = vpop.permute.xlu0 %3202 }
 0x2f6   : > { %v2423_v21 = vcombine.high %v2417_v9, %v2417_v9  ;;  %v2490_v1 = vcombine.low %v2484_v24, %v2484_v24  ;;  %v2608_v0 = vsel %vm290_vm3, %v2605_v14, %v2606_v61  ;;  %v5936_v25 = vpop.permute.xlu1 %3139  ;;  %v2555_v46 = vcombine.high %v2549_v63, %v2549_v63  ;;  %v2711_v24 = vld [vmem:[#allocation2 + $0x10] sm:$0xf] }
 0x2f7   : > { %v2609_v35 = vsel %vm520_vm6, %v2608_v0, %v5824_v5  ;;  %v2580_v5 = vld [vmem:[#allocation2 + $0x10] sm:$0xf]  ;;  %v2613_v62 = vmul.f32 %v2607_v38, %v5840_v6  ;;  %v2736_v45 = vrot.slane %v5855_v59, 4  ;;  %v2803_v0 = vrot.slane %v5879_v30, 4 }
 0x2f8   : > { %2366 = vrot.lane.b32.xlu0 %v2352_v15, %s4514_s11  ;;  %2302 = vrot.lane.b32.xlu1 %v2288_v39, %s4515_s16  ;;  %v2554_v15 = vcombine.high %v5927_v8, %v5927_v8  ;;  %v2357_v39 = vcombine.low %v5846_v49, %v5846_v49  ;;  %v2614_v52 = vmul.f32 %v2609_v35, %v5842_v7  ;;  %v2672_v49 = vrot.slane %v5838_v51, 4 }
 0x2f9   : > { %v5965_v43 = vpop.permute.xlu0 %3268  ;;  %v2738_v12 = vsel %vm383_vm8, %v2736_v45, %v5855_v59  ;;  %v2802_v59 = vrot.slane %v5874_v23, 4 }
 0x2fa   : > { %v5954_v10 = vpop.permute.xlu1 %3204  ;;  %v2620_v47 = vcombine.low %v2614_v52, %v2614_v52 }
 0x2fb   : > { %v2804_v35 = vsel %vm314_vm9, %v2802_v59, %v5874_v23  ;;  %v2805_v38 = vsel %vm290_vm3, %v2802_v59, %v2803_v0 }
 0x2fc   : > { %2493 = vrot.lane.b32.xlu0 %v5869_v42, %s4512_s27  ;;  %2429 = vrot.lane.b32.xlu1 %v2418_v2, %s4513_s8  ;;  %v2488_v2 = vcombine.low %v5869_v42, %v5869_v42  ;;  %v2674_v42 = vsel %vm290_vm3, %v2671_v32, %v2672_v49  ;;  %v2806_v23 = vsel %vm314_vm9, %v2805_v38, %v5879_v30  ;;  %v2777_v30 = vld [vmem:[#allocation2 + $0x10] sm:$0xf] }
 0x2fd   : > { %v2675_v55 = vsel %vm451_vm7, %v2674_v42, %v5838_v51  ;;  %v2908_v38 = vld [vmem:[#allocation2 + $0x10] sm:$0xf] }
 0x2fe   : > { %v2680_v22 = vmul.f32 %v2675_v55, %v5842_v7  ;;  %v2933_v55 = vrot.slane %v5900_v48, 4 }
 0x300   : > { %2497 = vrot.lane.b32.xlu0 %v2483_v29, %s4512_s27  ;;  %2433 = vrot.lane.b32.xlu1 %v2419_v28, %s4513_s8  ;;  %v2673_v29 = vsel %vm451_vm7, %v2671_v32, %v5832_v19  ;;  %v2615_v28 = vmul.f32 %v2606_v61, %v2580_v5  ;;  %v5970_v19 = vpop.permute.xlu1 %3270  ;;  %v2867_v32 = vrot.slane %v5889_v11, 4 }
 0x304   : > { %2294 = vrot.lane.b32.xlu0 %v2286_v53, %s4515_s16  ;;  %2560 = vrot.lane.b32.xlu1 %v2549_v63, %s4511_s24  ;;  %v2737_v53 = vrot.slane %v5859_v17, 4  ;;  %v2679_v63 = vmul.f32 %v2673_v29, %v5840_v6  ;;  %v5981_v51 = vpop.permute.xlu1 %3335  ;;  %v2811_v29 = vmul.f32 %v2806_v23, %v5842_v7 }
 0x306   : > { %v2746_v61 = vmul.f32 %v2737_v53, %v2711_v24  ;;  %v2999_v24 = vrot.slane %v5912_v34, 4 }
 0x308   : > { %2425 = vrot.lane.b32.xlu0 %v2417_v9, %s4513_s8  ;;  %2564 = vrot.lane.b32.xlu1 %v2550_v3, %s4511_s24  ;;  %v2621_v9 = vcombine.low %v2615_v28, %v2615_v28  ;;  %v2739_v3 = vsel %vm290_vm3, %v2736_v45, %v2737_v53  ;;  %v5992_v14 = vpop.permute.xlu1 %3401  ;;  %v2817_v53 = vcombine.high %v2811_v29, %v2811_v29 }
 0x309   : > { %v2740_v33 = vsel %vm383_vm8, %v2739_v3, %v5859_v17 }
 0x30a   : > { %v2745_v50 = vmul.f32 %v2740_v33, %v5842_v7 }
 0x30c   : > { %2296 = vrot.lane.b32.xlu0 %v2292_v44, %s4515_s16  ;;  %2364 = vrot.lane.b32.xlu1 %v2358_v40, %s4514_s11  ;;  %v2685_v44 = vcombine.high %v2679_v63, %v2679_v63  ;;  %v5978_v40 = vpop.permute.xlu0 %3333 }
 0x310   : > { %2300 = vrot.lane.b32.xlu0 %v2293_v18, %s4515_s16  ;;  %2368 = vrot.lane.b32.xlu1 %v2359_v56, %s4514_s11  ;;  %v2646_v18 = vld [vmem:[#allocation2 + $0x10] sm:$0xf]  ;;  %v2686_v56 = vcombine.high %v2680_v22, %v2680_v22  ;;  %v5989_v17 = vpop.permute.xlu0 %3399 }
 0x314   : > { %2427 = vrot.lane.b32.xlu0 %v2423_v21, %s4513_s8  ;;  %2495 = vrot.lane.b32.xlu1 %v2489_v58, %s4512_s27  ;;  %v2681_v21 = vmul.f32 %v2672_v49, %v2646_v18  ;;  %v2744_v58 = vmul.f32 %v2738_v12, %v5840_v6  ;;  %v6015_v49 = vmul.f32 %v2804_v35, %v5840_v6 }
 0x316   : > { %v2816_v28 = vcombine.high %v6015_v49, %v6015_v49 }
 0x318   : > { %2431 = vrot.lane.b32.xlu0 %v2424_v36, %s4513_s8  ;;  %2499 = vrot.lane.b32.xlu1 %v2490_v1, %s4512_s27  ;;  %v2751_v36 = vcombine.low %v2745_v50, %v2745_v50  ;;  %v2752_v1 = vcombine.low %v2746_v61, %v2746_v61 }
 0x31c   : > { %2558 = vrot.lane.b32.xlu0 %v2554_v15, %s4511_s24  ;;  %2360 = vrot.lane.b32.xlu1 %v2357_v39, %s4514_s11  ;;  %v5998_v15 = vpop.permute.xlu0 %3464  ;;  %v6001_v39 = vpop.permute.xlu1 %3466 }
 0x320   : > { %2562 = vrot.lane.b32.xlu0 %v2555_v46, %s4511_s24  ;;  %2491 = vrot.lane.b32.xlu1 %v2488_v2, %s4512_s27  ;;  %v2619_v46 = vcombine.low %v2613_v62, %v2613_v62  ;;  %v6012_v2 = vpop.permute.xlu0 %3530  ;;  %v6019_v5 = vpop.permute.xlu1 %3532 }
 0x324   : > { %2624 = vrot.lane.b32.xlu0 %v2613_v62, %s4509_s19  ;;  %2626 = vrot.lane.b32.xlu1 %v2620_v47, %s4509_s19  ;;  %v2750_v62 = vcombine.low %v2744_v58, %v2744_v58  ;;  %v6029_v42 = vpop.permute.xlu0 %3595  ;;  %v6032_v45 = vpop.permute.xlu1 %3597 }
 0x328   : > { %2628 = vrot.lane.b32.xlu0 %v2614_v52, %s4509_s19  ;;  %2630 = vrot.lane.b32.xlu1 %v2621_v9, %s4509_s19  ;;  %v2868_v52 = vrot.slane %v5894_v26, 4  ;;  %v2812_v9 = vmul.f32 %v2803_v0, %v2777_v30 }
 0x32c   : > { %2689 = vrot.lane.b32.xlu0 %v2685_v44, %s4508_s12  ;;  %2691 = vrot.lane.b32.xlu1 %v2680_v22, %s4508_s12  ;;  %v2842_v22 = vld [vmem:[#allocation2 + $0x10] sm:$0xf]  ;;  %v6042_v44 = vpop.permute.xlu0 %3661 }
 0x330   : > { %2693 = vrot.lane.b32.xlu0 %v2686_v56, %s4508_s12  ;;  %2695 = vrot.lane.b32.xlu1 %v2681_v21, %s4508_s12  ;;  %v2877_v56 = vmul.f32 %v2868_v52, %v2842_v22 }
 0x334   : > { %2755 = vrot.lane.b32.xlu0 %v2744_v58, %s4506_s30  ;;  %2757 = vrot.lane.b32.xlu1 %v2751_v36, %s4506_s30  ;;  %v6057_v36 = vpop.permute.xlu0 %3726 }
 0x338   : > { %2759 = vrot.lane.b32.xlu0 %v2745_v50, %s4506_s30  ;;  %2761 = vrot.lane.b32.xlu1 %v2752_v1, %s4506_s30  ;;  %v2998_v50 = vrot.slane %v5910_v4, 4 }
 0x33a   : > { %v3001_v59 = vsel %vm290_vm3, %v2998_v50, %v2999_v24 }
 0x33c   : > { %2556 = vrot.lane.b32.xlu0 %v5927_v8, %s4511_s24  ;;  %2622 = vrot.lane.b32.xlu1 %v2619_v46, %s4509_s19  ;;  %v2870_v8 = vsel %vm290_vm3, %v2867_v32, %v2868_v52  ;;  %v3002_v46 = vsel %vm6549_vm12, %v3001_v59, %v5912_v34  ;;  %v3000_v52 = vsel %vm6549_vm12, %v2998_v50, %v5910_v4  ;;  %v3064_v4 = vrot.slane %v5918_v16, 4 }
 0x33d   : > { %v2871_v47 = vsel %vm6558_vm11, %v2870_v8, %v5894_v26  ;;  %v2934_v26 = vrot.slane %v5903_v27, 4  ;;  %vm6560_vm11 = vcmask 982016   ;;  %v3007_v8 = vmul.f32 %v3002_v46, %v5842_v7 }
 0x33e   : > { %v2876_v3 = vmul.f32 %v2871_v47, %v5842_v7  ;;  %v2935_v18 = vsel %vm6560_vm11, %v2933_v55, %v5900_v48  ;;  %v2883_v48 = vcombine.low %v2877_v56, %v2877_v56  ;;  %v3006_v34 = vmul.f32 %v3000_v52, %v5840_v6 }
 0x33f   : > { %v2936_v21 = vsel %vm290_vm3, %v2933_v55, %v2934_v26  ;;  %v2941_v58 = vmul.f32 %v2935_v18, %v5840_v6  ;;  %v2943_v23 = vmul.f32 %v2934_v26, %v2908_v38  ;;  %v3013_v47 = vcombine.low %v3007_v8, %v3007_v8 }
 0x340   : > { %2687 = vrot.lane.b32.xlu0 %v2679_v63, %s4508_s12  ;;  %2753 = vrot.lane.b32.xlu1 %v2750_v62, %s4506_s30  ;;  %v2869_v63 = vsel %vm6559_vm2, %v2867_v32, %v5889_v11  ;;  %v6047_v11 = vpop.permute.xlu1 %3663  ;;  %v2882_v12 = vcombine.low %v2876_v3, %v2876_v3  ;;  %vm6561_vm2 = vmmov %vm6560_vm11  ;;  %v3065_v55 = vrot.slane %v5923_v13, 4  ;;  %v3012_v50 = vcombine.low %v3006_v34, %v3006_v34 }
 0x341   : > { %v2875_v33 = vmul.f32 %v2869_v63, %v5840_v6  ;;  %v2937_v61 = vsel %vm6561_vm2, %v2936_v21, %v5903_v27  ;;  %v2947_v35 = vcombine.high %v2941_v58, %v2941_v58  ;;  %v6069_v27 = vpop.permute.xlu0 %3792  ;;  %vm6562_vm11 = vcmask 64512  }
 0x342   : > { %v2942_v0 = vmul.f32 %v2937_v61, %v5842_v7  ;;  %v3067_v18 = vsel %vm290_vm3, %v3064_v4, %v3065_v55  ;;  %vm6563_vm2 = vmmov %vm6562_vm11 }
 0x343   : > { %v2881_v26 = vcombine.low %v2875_v33, %v2875_v33  ;;  %v3068_v21 = vsel %vm1102_vm13, %v3067_v18, %v5923_v13 }
 0x344   : > { %2820 = vrot.lane.b32.xlu0 %v2816_v28, %s4507_s7  ;;  %2822 = vrot.lane.b32.xlu1 %v2811_v29, %s4507_s7  ;;  %v6061_v1 = vpop.permute.xlu1 %3728  ;;  %v2948_v32 = vcombine.high %v2942_v0, %v2942_v0  ;;  %v2973_v29 = vld [vmem:[#allocation2 + $0x10] sm:$0xf] }
 0x345   : > { %v3008_v28 = vmul.f32 %v2999_v24, %v2973_v29  ;;  %v6079_v30 = vpop.permute.xlu0 %3857  ;;  %v3142_v24 = vrot.slane %v5936_v25, 4 }
 0x347   : > { %v3014_v63 = vcombine.low %v3008_v28, %v3008_v28 }
 0x348   : > { %2824 = vrot.lane.b32.xlu0 %v2817_v53, %s4507_s7  ;;  %2826 = vrot.lane.b32.xlu1 %v2812_v9, %s4507_s7  ;;  %v6073_v62 = vpop.permute.xlu1 %3794 }
 0x349   : > { %v6089_v9 = vpop.permute.xlu0 %3923 }
 0x34c   : > { %2886 = vrot.lane.b32.xlu0 %v2875_v33, %s4523_s28  ;;  %2888 = vrot.lane.b32.xlu1 %v2882_v12, %s4523_s28  ;;  %v6082_v53 = vpop.permute.xlu1 %3859  ;;  %v3141_v33 = vrot.slane %v5932_v37, 4 }
 0x34e   : > { %v3143_v13 = vsel %vm1127_vm14, %v3141_v33, %v5932_v37  ;;  %v3144_v59 = vsel %vm290_vm3, %v3141_v33, %v3142_v24 }
 0x34f   : > { %v3145_v37 = vsel %vm1127_vm14, %v3144_v59, %v5936_v25 }
 0x350   : > { %2890 = vrot.lane.b32.xlu0 %v2876_v3, %s4523_s28  ;;  %2892 = vrot.lane.b32.xlu1 %v2883_v48, %s4523_s28  ;;  %v3066_v3 = vsel %vm1102_vm13, %v3064_v4, %v5918_v16  ;;  %v6093_v22 = vpop.permute.xlu1 %3925 }
 0x351   : > { %v6100_v56 = vmul.f32 %v3066_v3, %v5840_v6 }
 0x353   : > { %v3078_v6 = vcombine.high %v6100_v56, %v6100_v56 }
 0x354   : > { %2951 = vrot.lane.b32.xlu0 %v2947_v35, %s4522_s17  ;;  %2953 = vrot.lane.b32.xlu1 %v2942_v0, %s4522_s17  ;;  %v3039_v0 = vld [vmem:[#allocation2 + $0x10] sm:$0xf]  ;;  %v3207_v35 = vrot.slane %v5954_v10, 4 }
 0x358   : > { %2955 = vrot.lane.b32.xlu0 %v2948_v32, %s4522_s17  ;;  %2957 = vrot.lane.b32.xlu1 %v2943_v23, %s4522_s17  ;;  %v3074_v32 = vmul.f32 %v3065_v55, %v3039_v0 }
 0x35c   : > { %3017 = vrot.lane.b32.xlu0 %v3006_v34, %s4521_s29  ;;  %3019 = vrot.lane.b32.xlu1 %v3013_v47, %s4521_s29  ;;  %v3116_v47 = vld [vmem:[#allocation2 + $0x14] sm:$0xf] }
 0x35d   : > { %v3151_v55 = vmul.f32 %v3142_v24, %v3116_v47  ;;  %v3273_v24 = vrot.slane %v5970_v19, 4 }
 0x360   : > { %3021 = vrot.lane.b32.xlu0 %v3007_v8, %s4521_s29  ;;  %3023 = vrot.lane.b32.xlu1 %v3014_v63, %s4521_s29  ;;  %v3150_v8 = vmul.f32 %v3145_v37, %v5810_v41 }
 0x362   : > { %v3156_v4 = vcombine.high %v3150_v8, %v3150_v8 }
 0x364   : > { %2818 = vrot.lane.b32.xlu0 %v6015_v49, %s4507_s7  ;;  %2884 = vrot.lane.b32.xlu1 %v2881_v26, %s4523_s28  ;;  %v3073_v49 = vmul.f32 %v3068_v21, %v5842_v7  ;;  %v3149_v7 = vmul.f32 %v3143_v13, %v5818_v57  ;;  %v3181_v21 = vld [vmem:[#allocation2 + $0x14] sm:$0xf] }
 0x365   : > { %v3216_v33 = vmul.f32 %v3207_v35, %v3181_v21 }
 0x366   : > { %v6102_v12 = vpop.permute.xlu0 %2362  ;;  %v6106_v16 = vpop.permute.xlu1 %2298  ;;  %v3079_v46 = vcombine.high %v3073_v49, %v3073_v49  ;;  %v3155_v29 = vcombine.high %v3149_v7, %v3149_v7 }
 0x367   : > { %v3222_v59 = vcombine.low %v3216_v33, %v3216_v33 }
 0x368   : > { %2949 = vrot.lane.b32.xlu0 %v2941_v58, %s4522_s17  ;;  %3015 = vrot.lane.b32.xlu1 %v3012_v50, %s4521_s29  ;;  %v3206_v58 = vrot.slane %v5951_v20, 4 }
 0x36a   : > { %v6115_v61 = vpop.permute.xlu0 %2366  ;;  %v2303_v48 = vpop.permute.xlu1 %2302  ;;  %v3209_v23 = vsel %vm290_vm3, %v3206_v58, %v3207_v35  ;;  %v3208_v3 = vsel %vm1059_vm15, %v3206_v58, %v5951_v20  ;;  %v3272_v20 = vrot.slane %v5965_v43, 4 }
 0x36b   : > { %v3210_v25 = vsel %vm1059_vm15, %v3209_v23, %v5954_v10  ;;  %v3214_v10 = vmul.f32 %v3208_v3, %v5818_v57 }
 0x36c   : > { %3082 = vrot.lane.b32.xlu0 %v3078_v6, %s4520_s23  ;;  %3084 = vrot.lane.b32.xlu1 %v3073_v49, %s4520_s23  ;;  %v3215_v26 = vmul.f32 %v3210_v25, %v5810_v41  ;;  %v3274_v35 = vsel %vm6562_vm11, %v3272_v20, %v5965_v43  ;;  %v3275_v23 = vsel %vm290_vm3, %v3272_v20, %v3273_v24  ;;  %vm6564_vm11 = vcmask 72704  }
 0x36d   : > { %v6172_v43 = vmul.f32 %v3274_v35, %v5818_v57 }
 0x36e   : > { %v6125_v38 = vpop.permute.xlu0 %2493  ;;  %v6129_v52 = vpop.permute.xlu1 %2429  ;;  %v3221_v49 = vcombine.low %v3215_v26, %v3215_v26 }
 0x36f   : > { %v3286_v21 = vcombine.high %v6172_v43, %v6172_v43 }
 0x370   : > { %3086 = vrot.lane.b32.xlu0 %v3079_v46, %s4520_s23  ;;  %3088 = vrot.lane.b32.xlu1 %v3074_v32, %s4520_s23 }
 0x372   : > { %v6135_v34 = vpop.permute.xlu0 %2497  ;;  %v6137_v28 = vpop.permute.xlu1 %2433 }
 0x374   : > { %3159 = vrot.lane.b32.xlu0 %v3155_v29, %s4519_s14  ;;  %3161 = vrot.lane.b32.xlu1 %v3150_v8, %s4519_s14 }
 0x376   : > { %v2295_v63 = vpop.permute.xlu0 %2294  ;;  %v6146_v18 = vpop.permute.xlu1 %2560 }
 0x378   : > { %3163 = vrot.lane.b32.xlu0 %v3156_v4, %s4519_s14  ;;  %3165 = vrot.lane.b32.xlu1 %v3151_v55, %s4519_s14  ;;  %v3276_v4 = vsel %vm6563_vm2, %v3275_v23, %v5970_v19  ;;  %v3338_v55 = vrot.slane %v5981_v51, 4  ;;  %vm6565_vm2 = vmmov %vm6564_vm11  ;;  %v3312_v23 = vld [vmem:[#allocation2 + $0x14] sm:$0xf] }
 0x37a   : > { %v2426_v50 = vpop.permute.xlu0 %2425  ;;  %v6151_v6 = vpop.permute.xlu1 %2564 }
 0x37c   : > { %3225 = vrot.lane.b32.xlu0 %v3214_v10, %s4518_s9  ;;  %3227 = vrot.lane.b32.xlu1 %v3221_v49, %s4518_s9 }
 0x37e   : > { %v2297_v13 = vpop.permute.xlu0 %2296  ;;  %v2365_v46 = vpop.permute.xlu1 %2364 }
 0x37f   : > { %v2304_v0 = vsel %vm314_vm9, %v2295_v63, %v2297_v13  ;;  %v2305_v58 = vsel %vm314_vm9, %v2297_v13, %v6106_v16  ;;  %v2371_v37 = vsel %vm383_vm8, %v6102_v12, %v2365_v46  ;;  %v2372_v32 = vsel %vm383_vm8, %v2365_v46, %v6115_v61 }
 0x380   : > { %2312 = vst [vmem:[#allocation3] sm:$0xf] %v2304_v0  ;;  %2313 = vst [vmem:[#allocation3 + $0x8] sm:$0xf] %v2305_v58  ;;  %3229 = vrot.lane.b32.xlu0 %v3215_v26, %s4518_s9  ;;  %3231 = vrot.lane.b32.xlu1 %v3222_v59, %s4518_s9  ;;  %v3337_v63 = vrot.slane %v5978_v40, 4  ;;  %v3281_v26 = vmul.f32 %v3276_v4, %v5810_v41 }
 0x381   : > { %2379 = vst [vmem:[#allocation3 + $0x8] sm:$0xf0] %v2371_v37  ;;  %2380 = vst [vmem:[#allocation3 + $0x10] sm:$0xf0] %v2372_v32  ;;  %v3404_v32 = vrot.slane %v5992_v14, 4 }
 0x382   : > { %v2301_v8 = vpop.permute.xlu0 %2300  ;;  %v2369_v25 = vpop.permute.xlu1 %2368  ;;  %v3287_v59 = vcombine.high %v3281_v26, %v3281_v26  ;;  %v3339_v35 = vsel %vm6565_vm2, %v3337_v63, %v5978_v40 }
 0x383   : > { %v2306_v29 = vsel %vm314_vm9, %v6106_v16, %v2301_v8  ;;  %v2307_v47 = vsel %vm314_vm9, %v2301_v8, %v2303_v48  ;;  %v2373_v3 = vsel %vm383_vm8, %v6115_v61, %v2369_v25  ;;  %v3220_v16 = vcombine.low %v3214_v10, %v3214_v10 }
 0x384   : > { %2314 = vst [vmem:[#allocation3 + $0x10] sm:$0xf] %v2306_v29  ;;  %2315 = vst [vmem:[#allocation3 + $0x18] sm:$0xf] %v2307_v47  ;;  %3080 = vrot.lane.b32.xlu0 %v6100_v56, %s4520_s23  ;;  %3157 = vrot.lane.b32.xlu1 %v3149_v7, %s4519_s14  ;;  %v3340_v61 = vsel %vm290_vm3, %v3337_v63, %v3338_v55  ;;  %v6219_v8 = vmul.f32 %v3339_v35, %v5818_v57 }
 0x385   : > { %2381 = vst [vmem:[#allocation3 + $0x18] sm:$0xf0] %v2373_v3  ;;  %v3341_v13 = vsel %vm6564_vm11, %v3340_v61, %v5981_v51  ;;  %v3403_v51 = vrot.slane %v5989_v17, 4  ;;  %v3347_v3 = vmul.f32 %v3338_v55, %v3312_v23  ;;  %v3468_v61 = vrot.slane %v5998_v15, 4 }
 0x386   : > { %v2428_v48 = vpop.permute.xlu0 %2427  ;;  %v2496_v20 = vpop.permute.xlu1 %2495  ;;  %vm6566_vm11 = vcmask 465920  }
 0x387   : > { %v2435_v33 = vsel %vm451_vm7, %v2426_v50, %v2428_v48  ;;  %v2436_v49 = vsel %vm451_vm7, %v2428_v48, %v6129_v52  ;;  %v2502_v56 = vsel %vm520_vm6, %v6125_v38, %v2496_v20  ;;  %v2503_v7 = vsel %vm520_vm6, %v2496_v20, %v6135_v34  ;;  %v3247_v50 = vld [vmem:[#allocation2 + $0x14] sm:$0xf]  ;;  %vm6567_vm2 = vmmov %vm6566_vm11 }
 0x388   : > { %2443 = vst [vmem:[#allocation3 + $0x20] sm:$0xf] %v2435_v33  ;;  %2444 = vst [vmem:[#allocation3 + $0x28] sm:$0xf] %v2436_v49  ;;  %3223 = vrot.lane.b32.xlu0 %v3220_v16, %s4518_s9  ;;  %3290 = vrot.lane.b32.xlu1 %v3286_v21, %s4517_s26  ;;  %v3405_v47 = vsel %vm288_vm1, %v3403_v51, %v5989_v17  ;;  %v3406_v4 = vsel %vm290_vm3, %v3403_v51, %v3404_v32  ;;  %v3469_v48 = vrot.slane %v6001_v39, 4 }
 0x389   : > { %2510 = vst [vmem:[#allocation3 + $0x28] sm:$0xf0] %v2502_v56  ;;  %2511 = vst [vmem:[#allocation3 + $0x30] sm:$0xf0] %v2503_v7  ;;  %v3407_v55 = vsel %vm288_vm1, %v3406_v4, %v5992_v14 }
 0x38a   : > { %v2432_v10 = vpop.permute.xlu0 %2431  ;;  %v2500_v46 = vpop.permute.xlu1 %2499  ;;  %vm6568_vm12 = vmmov %vm6567_vm2 }
 0x38b   : > { %v2437_v0 = vsel %vm451_vm7, %v6129_v52, %v2432_v10  ;;  %v2438_v58 = vsel %vm451_vm7, %v2432_v10, %v6137_v28  ;;  %v2504_v37 = vsel %vm520_vm6, %v6135_v34, %v2500_v46  ;;  %v3282_v52 = vmul.f32 %v3273_v24, %v3247_v50  ;;  %v3967_v24 = vld [vmem:[#allocation3 + $0x8] sm:$0xff]  ;;  %v3968_v49 = vld [vmem:[#allocation3 + $0x10] sm:$0xff] }
 0x38c   : > { %2445 = vst [vmem:[#allocation3 + $0x30] sm:$0xf] %v2437_v0  ;;  %2446 = vst [vmem:[#allocation3 + $0x38] sm:$0xf] %v2438_v58  ;;  %3292 = vrot.lane.b32.xlu0 %v3281_v26, %s4517_s26  ;;  %3294 = vrot.lane.b32.xlu1 %v3287_v59, %s4517_s26  ;;  %v3346_v28 = vmul.f32 %v3341_v13, %v5810_v41  ;;  %v3353_v50 = vcombine.low %v3347_v3, %v3347_v3 }
 0x38d   : > { %2512 = vst [vmem:[#allocation3 + $0x38] sm:$0xf0] %v2504_v37  ;;  %v3412_v59 = vmul.f32 %v3407_v55, %v5810_v41  ;;  %v3378_v37 = vld [vmem:[#allocation2 + $0x14] sm:$0xf] }
 0x38e   : > { %v6216_v40 = vpop.permute.xlu0 %2558  ;;  %v2361_v29 = vpop.permute.xlu1 %2360  ;;  %v3352_v16 = vcombine.low %v3346_v28, %v3346_v28 }
 0x38f   : > { %v2567_v34 = vsel %vm563_vm5, %v6216_v40, %v6146_v18  ;;  %v2370_v19 = vsel %vm383_vm8, %v2361_v29, %v6102_v12  ;;  %v6236_v12 = vmul.f32 %v3405_v47, %v5818_v57 }
 0x390   : > { %2575 = vst [vmem:[#allocation3 + $0x48] sm:$0xf] %v2567_v34  ;;  %3296 = vrot.lane.b32.xlu0 %v3282_v52, %s4517_s26  ;;  %v3971_v25 = vld [vmem:[#allocation3 + $0x28] sm:$0xff]  ;;  %2378 = vst [vmem:[#allocation3] sm:$0xf0] %v2370_v19  ;;  %3356 = vrot.lane.b32.xlu1 %v6219_v8, %s4516_s20  ;;  %v3418_v52 = vcombine.high %v3412_v59, %v3412_v59  ;;  %v3470_v34 = vsel %vm357_vm0, %v3468_v61, %v5998_v15 }
 0x391   : > { %v4399_v63 = vpack.c.bf16 %v3971_v25, %v3967_v24  ;;  %v3417_v0 = vcombine.high %v6236_v12, %v6236_v12  ;;  %v3476_v15 = vmul.f32 %v3470_v34, %v5818_v57  ;;  %v3509_v34 = vld [vmem:[#allocation2 + $0x14] sm:$0xf] }
 0x392   : > { %v2563_v17 = vpop.permute.xlu0 %2562  ;;  %v2492_v33 = vpop.permute.xlu1 %2491 }
 0x393   : > { %v2568_v26 = vsel %vm563_vm5, %v6146_v18, %v2563_v17  ;;  %v2569_v21 = vsel %vm563_vm5, %v2563_v17, %v6151_v6  ;;  %4400 = vmatprep.subr.bf16.mxu0 %v4399_v63  ;;  %v3972_v20 = vld [vmem:[#allocation3 + $0x30] sm:$0xff]  ;;  %v2501_v56 = vsel %vm520_vm6, %v2492_v33, %v6125_v38  ;;  %v3969_v18 = vld [vmem:[#allocation3 + $0x18] sm:$0xff]  ;;  %v3471_v38 = vsel %vm290_vm3, %v3468_v61, %v3469_v48 }
 0x394   : > { %2576 = vst [vmem:[#allocation3 + $0x50] sm:$0xf] %v2568_v26  ;;  %2577 = vst [vmem:[#allocation3 + $0x58] sm:$0xf] %v2569_v21  ;;  %3358 = vrot.lane.b32.xlu0 %v3352_v16, %s4516_s20  ;;  %v3973_v7 = vld [vmem:[#allocation3 + $0x38] sm:$0xff]  ;;  %v4431_v10 = vpack.c.bf16 %v3972_v20, %v3968_v49  ;;  %3360 = vrot.lane.b32.xlu1 %v3346_v28, %s4516_s20  ;;  %v3472_v51 = vsel %vm357_vm0, %v3471_v38, %v6001_v39  ;;  %v3534_v49 = vrot.slane %v6012_v2, 4 }
 0x395   : > { %2509 = vst [vmem:[#allocation3 + $0x20] sm:$0xf0] %v2501_v56  ;;  %v4429_v6 = vpack.c.bf16 %v3973_v7, %v3969_v18  ;;  %v3413_v39 = vmul.f32 %v3404_v32, %v3378_v37  ;;  %v3477_v25 = vmul.f32 %v3472_v51, %v5810_v41  ;;  %v3443_v63 = vld [vmem:[#allocation2 + $0x14] sm:$0xf]  ;;  %v3535_v20 = vrot.slane %v6019_v5, 4 }
 0x396   : > { %v6249_v13 = vpop.permute.xlu0 %2624  ;;  %v2627_v58 = vpop.permute.xlu1 %2626  ;;  %v3478_v17 = vmul.f32 %v3469_v48, %v3443_v63  ;;  %v3600_v38 = vrot.slane %v6032_v45, 4 }
 0x397   : > { %4430 = vmatprep.subr.bf16.mxu1 %v4429_v6  ;;  %v2633_v46 = vsel %vm494_vm4, %v6249_v13, %v2627_v58  ;;  %v3966_v47 = vld [vmem:[#allocation3] sm:$0xff]  ;;  %v3483_v14 = vcombine.low %v3477_v25, %v3477_v25  ;;  %v3537_v7 = vsel %vm290_vm3, %v3534_v49, %v3535_v20 }
 0x398   : > { %4432 = vmatpush1.bf16.msra.mxu1 %v4431_v10  ;;  %3362 = vrot.lane.b32.xlu0 %v3353_v50, %s4516_s20  ;;  %2641 = vst [vmem:[#allocation3 + $0x48] sm:$0xf0] %v2633_v46  ;;  %v3484_v55 = vcombine.low %v3478_v17, %v3478_v17  ;;  %v3351_v10 = vcombine.low %v6219_v8, %v6219_v8 }
 0x399   : > { %3421 = vrot.lane.b32.xlu1 %v3417_v0, %s4515_s16  ;;  %v3544_v17 = vmul.f32 %v3535_v20, %v3509_v34 }
 0x39a   : > { %v2629_v35 = vpop.permute.xlu0 %2628  ;;  %v2631_v23 = vpop.permute.xlu1 %2630 }
 0x39b   : > { %v2634_v28 = vsel %vm494_vm4, %v2627_v58, %v2629_v35  ;;  %v2635_v29 = vsel %vm494_vm4, %v2629_v35, %v2631_v23  ;;  %v3599_v58 = vrot.slane %v6029_v42, 4 }
 0x39c   : > { %2642 = vst [vmem:[#allocation3 + $0x50] sm:$0xf0] %v2634_v28  ;;  %3423 = vrot.lane.b32.xlu0 %v3412_v59, %s4515_s16  ;;  %v3970_v19 = vld [vmem:[#allocation3 + $0x20] sm:$0xff]  ;;  %2643 = vst [vmem:[#allocation3 + $0x58] sm:$0xf0] %v2635_v29 }
 0x39d   : > { %3425 = vrot.lane.b32.xlu1 %v3418_v52, %s4515_s16  ;;  %v4401_v24 = vpack.c.bf16 %v3970_v19, %v3966_v47  ;;  %v3602_v51 = vsel %vm290_vm3, %v3599_v58, %v3600_v38 }
 0x39e   : > { %v6270_v4 = vpop.permute.xlu0 %2689  ;;  %v2692_v3 = vpop.permute.xlu1 %2691 }
 0x39f   : > { %4402 = vmatpush1.bf16.msra.mxu0 %v4401_v24  ;;  %v2698_v16 = vsel %vm6566_vm11, %v6270_v4, %v2692_v3  ;;  %vm6569_vm11 = vmmov %vm6567_vm2 }
 0x3a0   : > { %3427 = vrot.lane.b32.xlu0 %v3413_v39, %s4515_s16  ;;  %2706 = vst [vmem:[#allocation3 + $0x68] sm:$0xf] %v2698_v16  ;;  %v3536_v56 = vsel %vm6569_vm11, %v3534_v49, %v6012_v2  ;;  %v3601_v39 = vsel %vm494_vm4, %v3599_v58, %v6029_v42  ;;  %v3666_v16 = vrot.slane %v6047_v11, 4  ;;  %vm6571_vm11 = vcmask 72704  }
 0x3a1   : > { %3487 = vrot.lane.b32.xlu1 %v3476_v15, %s4514_s11  ;;  %v6293_v50 = vmul.f32 %v3536_v56, %v5818_v57  ;;  %v3482_v57 = vcombine.low %v3476_v15, %v3476_v15 }
 0x3a2   : > { %v2694_v32 = vpop.permute.xlu0 %2693  ;;  %v2696_v21 = vpop.permute.xlu1 %2695 }
 0x3a3   : > { %v2699_v26 = vsel %vm6567_vm2, %v2692_v3, %v2694_v32  ;;  %v2700_v33 = vsel %vm6568_vm12, %v2694_v32, %v2696_v21  ;;  %vm6570_vm12 = vmmov %vm6567_vm2  ;;  %v3977_v63 = vld [vmem:[#allocation3 + $0x58] sm:$0xff]  ;;  %v6330_v21 = vld [vmem:[#allocation2 + $0x4] sm:$0xff] }
 0x3a4   : > { %2707 = vst [vmem:[#allocation3 + $0x70] sm:$0xf] %v2699_v26  ;;  %3489 = vrot.lane.b32.xlu0 %v3483_v14, %s4514_s11  ;;  %2708 = vst [vmem:[#allocation3 + $0x78] sm:$0xf] %v2700_v33  ;;  %v3538_v0 = vsel %vm6570_vm12, %v3537_v7, %v6019_v5  ;;  %v3548_v5 = vcombine.high %v6293_v50, %v6293_v50  ;;  %v6325_v14 = vld [vmem:[#allocation2 + $0xc] sm:$0xff]  ;;  %v6333_v33 = vmul.f32 %v6330_v21, %v3601_v39 }
 0x3a5   : > { %3491 = vrot.lane.b32.xlu1 %v3477_v25, %s4514_s11  ;;  %v3543_v46 = vmul.f32 %v3538_v0, %v5810_v41  ;;  %v3574_v26 = vld [vmem:[#allocation2 + $0x14] sm:$0xf]  ;;  %vm6572_vm12 = vmmov %vm6571_vm11 }
 0x3a6   : > { %v2756_v61 = vpop.permute.xlu0 %2755  ;;  %v2758_v48 = vpop.permute.xlu1 %2757 }
 0x3a7   : > { %v2764_v18 = vsel %vm357_vm0, %v2756_v61, %v2758_v48  ;;  %v3549_v29 = vcombine.high %v3543_v46, %v3543_v46 }
 0x3a8   : > { %3493 = vrot.lane.b32.xlu0 %v3484_v55, %s4514_s11  ;;  %2772 = vst [vmem:[#allocation3 + $0x68] sm:$0xf0] %v2764_v18 }
 0x3a9   : > { %3288 = vrot.lane.b32.xlu1 %v6172_v43, %s4517_s26 }
 0x3aa   : > { %v2760_v6 = vpop.permute.xlu0 %2759  ;;  %v2762_v2 = vpop.permute.xlu1 %2761 }
 0x3ab   : > { %v2765_v59 = vsel %vm357_vm0, %v2758_v48, %v2760_v6  ;;  %v2766_v43 = vsel %vm357_vm0, %v2760_v6, %v2762_v2  ;;  %v3609_v48 = vmul.f32 %v3600_v38, %v3574_v26  ;;  %v3731_v2 = vrot.slane %v6061_v1, 4 }
 0x3ac   : > { %2773 = vst [vmem:[#allocation3 + $0x70] sm:$0xf0] %v2765_v59  ;;  %3354 = vrot.lane.b32.xlu0 %v3351_v10, %s4516_s20  ;;  %2774 = vst [vmem:[#allocation3 + $0x78] sm:$0xf0] %v2766_v43  ;;  %v3730_v59 = vrot.slane %v6057_v36, 4 }
 0x3ad   : > { %3419 = vrot.lane.b32.xlu1 %v6236_v12, %s4515_s16  ;;  %v3975_v12 = vld [vmem:[#allocation3 + $0x48] sm:$0xff] }
 0x3ae   : > { %v2557_v8 = vpop.permute.xlu0 %2556  ;;  %v2623_v37 = vpop.permute.xlu1 %2622  ;;  %v3732_v34 = vsel %vm520_vm6, %v3730_v59, %v6057_v36 }
 0x3af   : > { %v2566_v35 = vsel %vm563_vm5, %v2557_v8, %v6216_v40  ;;  %v2632_v52 = vsel %vm494_vm4, %v2623_v37, %v6249_v13  ;;  %v3979_v28 = vld [vmem:[#allocation3 + $0x68] sm:$0xff]  ;;  %v3603_v40 = vsel %vm494_vm4, %v3602_v51, %v6032_v45  ;;  %v3976_v13 = vld [vmem:[#allocation3 + $0x50] sm:$0xff]  ;;  %v3665_v45 = vrot.slane %v6042_v44, 4 }
 0x3b0   : > { %2574 = vst [vmem:[#allocation3 + $0x40] sm:$0xf] %v2566_v35  ;;  %3485 = vrot.lane.b32.xlu0 %v3482_v57, %s4514_s11  ;;  %2640 = vst [vmem:[#allocation3 + $0x40] sm:$0xf0] %v2632_v52  ;;  %v4403_v41 = vpack.c.bf16 %v3979_v28, %v3975_v12  ;;  %v3608_v42 = vmul.f32 %v6325_v14, %v3603_v40  ;;  %v3615_v57 = vcombine.low %v3609_v48, %v3609_v48  ;;  %v3640_v52 = vld [vmem:[#allocation2 + $0x14] sm:$0xf] }
 0x3b1   : > { %3552 = vrot.lane.b32.xlu1 %v3548_v5, %s4513_s8  ;;  %v3667_v55 = vsel %vm563_vm5, %v3665_v45, %v6042_v44  ;;  %v3733_v35 = vsel %vm290_vm3, %v3730_v59, %v3731_v2 }
 0x3b2   : > { %v2688_v23 = vpop.permute.xlu0 %2687  ;;  %4404 = vmatprep.subr.bf16.mxu0 %v4403_v41  ;;  %v2754_v19 = vpop.permute.xlu1 %2753  ;;  %v3614_v56 = vcombine.low %v3608_v42, %v3608_v42  ;;  %v6344_v7 = vmul.f32 %v6330_v21, %v3667_v55  ;;  %v3734_v12 = vsel %vm520_vm6, %v3733_v35, %v6061_v1  ;;  %v3705_v1 = vld [vmem:[#allocation2 + $0x14] sm:$0xf] }
 0x3b3   : > { %v2697_v47 = vsel %vm6567_vm2, %v2688_v23, %v6270_v4  ;;  %v3980_v24 = vld [vmem:[#allocation3 + $0x70] sm:$0xff]  ;;  %v2763_v25 = vsel %vm357_vm0, %v2754_v19, %v2756_v61  ;;  %v3981_v15 = vld [vmem:[#allocation3 + $0x78] sm:$0xff]  ;;  %v3668_v61 = vsel %vm290_vm3, %v3665_v45, %v3666_v16  ;;  %vm6573_vm2 = vmmov %vm6571_vm11  ;;  %v3740_v36 = vmul.f32 %v3731_v2, %v3705_v1 }
 0x3b4   : > { %2705 = vst [vmem:[#allocation3 + $0x60] sm:$0xf] %v2697_v47  ;;  %3554 = vrot.lane.b32.xlu0 %v3543_v46, %s4513_s8  ;;  %v4435_v3 = vpack.c.bf16 %v3980_v24, %v3976_v13  ;;  %2771 = vst [vmem:[#allocation3 + $0x60] sm:$0xf0] %v2763_v25  ;;  %v4433_v4 = vpack.c.bf16 %v3981_v15, %v3977_v63  ;;  %v3669_v6 = vsel %vm563_vm5, %v3668_v61, %v6047_v11 }
 0x3b5   : > { %3556 = vrot.lane.b32.xlu1 %v3549_v29, %s4513_s8  ;;  %v3674_v11 = vmul.f32 %v6325_v14, %v3669_v6  ;;  %v3679_v46 = vcombine.high %v6344_v7, %v6344_v7  ;;  %v3675_v29 = vmul.f32 %v3666_v16, %v3640_v52  ;;  %v3739_v47 = vmul.f32 %v6325_v14, %v3734_v12 }
 0x3b6   : > { %v6328_v32 = vpop.permute.xlu0 %2820  ;;  %4434 = vmatprep.subr.bf16.mxu1 %v4433_v4  ;;  %v2823_v49 = vpop.permute.xlu1 %2822  ;;  %v3738_v13 = vmul.f32 %v6330_v21, %v3732_v34  ;;  %v3796_v16 = vrot.slane %v6069_v27, 4  ;;  %v3797_v4 = vrot.slane %v6073_v62, 4  ;;  %v3613_v61 = vcombine.low %v6333_v33, %v6333_v33 }
 0x3b7   : > { %v2829_v20 = vsel %vm288_vm1, %v6328_v32, %v2823_v49  ;;  %4436 = vmatpush1.bf16.msra.mxu1 %v4435_v3  ;;  %v3974_v58 = vld [vmem:[#allocation3 + $0x40] sm:$0xff]  ;;  %v3680_v28 = vcombine.high %v3674_v11, %v3674_v11  ;;  %v3745_v25 = vcombine.low %v3739_v47, %v3739_v47  ;;  %v3862_v6 = vrot.slane %v6082_v53, 4 }
 0x3b8   : > { %3558 = vrot.lane.b32.xlu0 %v3544_v17, %s4513_s8  ;;  %2837 = vst [vmem:[#allocation3 + $0x88] sm:$0xf] %v2829_v20  ;;  %v3746_v17 = vcombine.low %v3740_v36, %v3740_v36  ;;  %v3799_v20 = vsel %vm290_vm3, %v3796_v16, %v3797_v4 }
 0x3b9   : > { %3618 = vrot.lane.b32.xlu1 %v6333_v33, %s4512_s27  ;;  %v3744_v33 = vcombine.low %v3738_v13, %v3738_v13 }
 0x3ba   : > { %v2825_v18 = vpop.permute.xlu0 %2824  ;;  %v2827_v10 = vpop.permute.xlu1 %2826 }
 0x3bb   : > { %v2830_v44 = vsel %vm288_vm1, %v2823_v49, %v2825_v18  ;;  %v2831_v0 = vsel %vm288_vm1, %v2825_v18, %v2827_v10  ;;  %v3978_v38 = vld [vmem:[#allocation3 + $0x60] sm:$0xff]  ;;  %v3798_v49 = vsel %vm451_vm7, %v3796_v16, %v6069_v27  ;;  %v3861_v10 = vrot.slane %v6079_v30, 4 }
 0x3bc   : > { %2838 = vst [vmem:[#allocation3 + $0x90] sm:$0xf] %v2830_v44  ;;  %3620 = vrot.lane.b32.xlu0 %v3614_v56, %s4512_s27  ;;  %2839 = vst [vmem:[#allocation3 + $0x98] sm:$0xf] %v2831_v0  ;;  %v4405_v43 = vpack.c.bf16 %v3978_v38, %v3974_v58  ;;  %v6393_v56 = vmul.f32 %v6330_v21, %v3798_v49  ;;  %v3800_v44 = vsel %vm451_vm7, %v3799_v20, %v6073_v62 }
 0x3bd   : > { %3622 = vrot.lane.b32.xlu1 %v3608_v42, %s4512_s27  ;;  %v3805_v62 = vmul.f32 %v6325_v14, %v3800_v44  ;;  %v3864_v38 = vsel %vm290_vm3, %v3861_v10, %v3862_v6  ;;  %v3863_v12 = vsel %vm383_vm8, %v3861_v10, %v6079_v30 }
 0x3be   : > { %v6354_v8 = vpop.permute.xlu0 %2886  ;;  %4406 = vmatpush1.bf16.msra.mxu0 %v4405_v43  ;;  %v2889_v5 = vpop.permute.xlu1 %2888  ;;  %v3810_v2 = vcombine.high %v6393_v56, %v6393_v56  ;;  %v3869_v1 = vmul.f32 %v6330_v21, %v3863_v12 }
 0x3bf   : > { %v2895_v37 = vsel %vm6571_vm11, %v6354_v8, %v2889_v5  ;;  %vm6574_vm11 = vcmask 64512   ;;  %v3811_v35 = vcombine.high %v3805_v62, %v3805_v62 }
 0x3c0   : > { %3624 = vrot.lane.b32.xlu0 %v3615_v57, %s4512_s27  ;;  %2903 = vst [vmem:[#allocation3 + $0x88] sm:$0xf0] %v2895_v37 }
 0x3c1   : > { %3683 = vrot.lane.b32.xlu1 %v3679_v46, %s4511_s24 }
 0x3c2   : > { %v2891_v51 = vpop.permute.xlu0 %2890  ;;  %v2893_v23 = vpop.permute.xlu1 %2892 }
 0x3c3   : > { %v2896_v41 = vsel %vm6572_vm12, %v2889_v5, %v2891_v51  ;;  %v2897_v40 = vsel %vm6573_vm2, %v2891_v51, %v2893_v23  ;;  %vm6575_vm12 = vmmov %vm6574_vm11  ;;  %v3771_v5 = vld [vmem:[#allocation2 + $0x14] sm:$0xf] }
 0x3c4   : > { %2904 = vst [vmem:[#allocation3 + $0x90] sm:$0xf0] %v2896_v41  ;;  %3685 = vrot.lane.b32.xlu0 %v3674_v11, %s4511_s24  ;;  %2905 = vst [vmem:[#allocation3 + $0x98] sm:$0xf0] %v2897_v40  ;;  %v3927_v40 = vrot.slane %v6089_v9, 4 }
 0x3c5   : > { %3687 = vrot.lane.b32.xlu1 %v3680_v28, %s4511_s24  ;;  %vm6576_vm2 = vmmov %vm6574_vm11 }
 0x3c6   : > { %v2952_v19 = vpop.permute.xlu0 %2951  ;;  %v2954_v24 = vpop.permute.xlu1 %2953 }
 0x3c7   : > { %v2960_v39 = vsel %vm6574_vm11, %v2952_v19, %v2954_v24  ;;  %vm6577_vm11 = vcmask 72704  }
 0x3c8   : > { %3689 = vrot.lane.b32.xlu0 %v3675_v29, %s4511_s24  ;;  %2968 = vst [vmem:[#allocation3 + $0xa8] sm:$0xf] %v2960_v39  ;;  %v3929_v39 = vsel %vm314_vm9, %v3927_v40, %v6089_v9 }
 0x3c9   : > { %3749 = vrot.lane.b32.xlu1 %v3738_v13, %s4509_s19  ;;  %v3836_v13 = vld [vmem:[#allocation2 + $0x14] sm:$0xf] }
 0x3ca   : > { %v2956_v63 = vpop.permute.xlu0 %2955  ;;  %v2958_v3 = vpop.permute.xlu1 %2957 }
 0x3cb   : > { %v2961_v15 = vsel %vm6575_vm12, %v2954_v24, %v2956_v63  ;;  %v2962_v45 = vsel %vm6576_vm2, %v2956_v63, %v2958_v3  ;;  %vm6578_vm12 = vmmov %vm6576_vm2  ;;  %v3984_v52 = vld [vmem:[#allocation3 + $0x90] sm:$0xff]  ;;  %v3985_v41 = vld [vmem:[#allocation3 + $0x98] sm:$0xff]  ;;  %v3871_v63 = vmul.f32 %v3862_v6, %v3836_v13 }
 0x3cc   : > { %2969 = vst [vmem:[#allocation3 + $0xb0] sm:$0xf] %v2961_v15  ;;  %3751 = vrot.lane.b32.xlu0 %v3745_v25, %s4509_s19  ;;  %2970 = vst [vmem:[#allocation3 + $0xb8] sm:$0xf] %v2962_v45  ;;  %v3935_v45 = vmul.f32 %v6330_v21, %v3929_v39 }
 0x3cd   : > { %3753 = vrot.lane.b32.xlu1 %v3739_v47, %s4509_s19  ;;  %v3806_v47 = vmul.f32 %v3797_v4, %v3771_v5 }
 0x3ce   : > { %v3018_v42 = vpop.permute.xlu0 %3017  ;;  %v3020_v26 = vpop.permute.xlu1 %3019  ;;  %v3941_v21 = vcombine.high %v3935_v45, %v3935_v45 }
 0x3cf   : > { %v3026_v55 = vsel %vm1059_vm15, %v3018_v42, %v3020_v26 }
 0x3d0   : > { %3755 = vrot.lane.b32.xlu0 %v3746_v17, %s4509_s19  ;;  %3034 = vst [vmem:[#allocation3 + $0xa8] sm:$0xf0] %v3026_v55  ;;  %v3877_v55 = vcombine.low %v3871_v63, %v3871_v63 }
 0x3d1   : > { %3550 = vrot.lane.b32.xlu1 %v6293_v50, %s4513_s8  ;;  %s251_s8 = scalar_lea.vmem %s6542_s6, %s4337_s15 }
 0x3d2   : > { %v3022_v48 = vpop.permute.xlu0 %3021  ;;  %v3024_v27 = vpop.permute.xlu1 %3023 }
 0x3d3   : > { %v3027_v18 = vsel %vm1059_vm15, %v3020_v26, %v3022_v48  ;;  %v3028_v50 = vsel %vm1059_vm15, %v3022_v48, %v3024_v27  ;;  %v3902_v27 = vld [vmem:[#allocation2 + $0x14] sm:$0xf] }
 0x3d4   : > { %3035 = vst [vmem:[#allocation3 + $0xb0] sm:$0xf0] %v3027_v18  ;;  %3616 = vrot.lane.b32.xlu0 %v3613_v61, %s4512_s27  ;;  %3036 = vst [vmem:[#allocation3 + $0xb8] sm:$0xf0] %v3028_v50 }
 0x3d5   : > { %3681 = vrot.lane.b32.xlu1 %v6344_v7, %s4511_s24  ;;  %v3983_v7 = vld [vmem:[#allocation3 + $0x88] sm:$0xff] }
 0x3d6   : > { %v2819_v59 = vpop.permute.xlu0 %2818  ;;  %v2885_v58 = vpop.permute.xlu1 %2884 }
 0x3d7   : > { %v2828_v0 = vsel %vm288_vm1, %v2819_v59, %v6328_v32  ;;  %v2894_v43 = vsel %vm6577_vm11, %v2885_v58, %v6354_v8  ;;  %v3987_v57 = vld [vmem:[#allocation3 + $0xa8] sm:$0xff]  ;;  %v3865_v32 = vsel %vm383_vm8, %v3864_v38, %v6082_v53  ;;  %v3928_v53 = vrot.slane %v6093_v22, 4 }
 0x3d8   : > { %2836 = vst [vmem:[#allocation3 + $0x80] sm:$0xf] %v2828_v0  ;;  %3747 = vrot.lane.b32.xlu0 %v3744_v33, %s4509_s19  ;;  %2902 = vst [vmem:[#allocation3 + $0x80] sm:$0xf0] %v2894_v43  ;;  %v4407_v11 = vpack.c.bf16 %v3987_v57, %v3983_v7  ;;  %v4022_v7 = vld [vmem:[%s6540_s4] sm:$0xf] }
 0x3d9   : > { %3814 = vrot.lane.b32.xlu1 %v3810_v2, %s4508_s12  ;;  %v3930_v25 = vsel %vm290_vm3, %v3927_v40, %v3928_v53  ;;  %vm6579_vm3 = vcmask 990208  }
 0x3da   : > { %v2950_v46 = vpop.permute.xlu0 %2949  ;;  %4408 = vmatprep.subr.bf16.mxu0 %v4407_v11  ;;  %v3016_v51 = vpop.permute.xlu1 %3015  ;;  %v3931_v9 = vsel %vm314_vm9, %v3930_v25, %v6093_v22  ;;  %vm6581_vm2 = vmmov %vm6579_vm3 }
 0x3db   : > { %v2959_v37 = vsel %vm6578_vm12, %v2950_v46, %v2952_v19  ;;  %v3988_v8 = vld [vmem:[#allocation3 + $0xb0] sm:$0xff]  ;;  %v3025_v28 = vsel %vm1059_vm15, %v3016_v51, %v3018_v42  ;;  %v3989_v23 = vld [vmem:[#allocation3 + $0xb8] sm:$0xff]  ;;  %v3870_v19 = vmul.f32 %v6325_v14, %v3865_v32  ;;  %v3936_v61 = vmul.f32 %v6325_v14, %v3931_v9  ;;  %vm6580_vm15 = vmmov %vm6579_vm3 }
 0x3dc   : > { %2967 = vst [vmem:[#allocation3 + $0xa0] sm:$0xf] %v2959_v37  ;;  %3816 = vrot.lane.b32.xlu0 %v3805_v62, %s4508_s12  ;;  %v4439_v34 = vpack.c.bf16 %v3988_v8, %v3984_v52  ;;  %3033 = vst [vmem:[#allocation3 + $0xa0] sm:$0xf0] %v3025_v28  ;;  %v4437_v29 = vpack.c.bf16 %v3989_v23, %v3985_v41  ;;  %v3937_v14 = vmul.f32 %v3928_v53, %v3902_v27 }
 0x3dd   : > { %3818 = vrot.lane.b32.xlu1 %v3811_v35, %s4508_s12  ;;  %v3876_v15 = vcombine.low %v3870_v19, %v3870_v19  ;;  %v3942_v44 = vcombine.high %v3936_v61, %v3936_v61  ;;  %v3875_v62 = vcombine.low %v3869_v1, %v3869_v1  ;;  %vm6582_vm11 = vmmov %vm6581_vm2 }
 0x3de   : > { %v6425_v30 = vpop.permute.xlu0 %3082  ;;  %4438 = vmatprep.subr.bf16.mxu1 %v4437_v29  ;;  %v3085_v24 = vpop.permute.xlu1 %3084 }
 0x3df   : > { %v3091_v36 = vsel %vm1127_vm14, %v6425_v30, %v3085_v24  ;;  %4440 = vmatpush1.bf16.msra.mxu1 %v4439_v34  ;;  %v3982_v42 = vld [vmem:[#allocation3 + $0x80] sm:$0xff] }
 0x3e0   : > { %3820 = vrot.lane.b32.xlu0 %v3806_v47, %s4508_s12  ;;  %3099 = vst [vmem:[#allocation3 + $0xc8] sm:$0xf] %v3091_v36 }
 0x3e1   : > { %3880 = vrot.lane.b32.xlu1 %v3869_v1, %s4506_s30 }
 0x3e2   : > { %v3087_v3 = vpop.permute.xlu0 %3086  ;;  %v3089_v4 = vpop.permute.xlu1 %3088 }
 0x3e3   : > { %v3092_v16 = vsel %vm1127_vm14, %v3085_v24, %v3087_v3  ;;  %v3093_v17 = vsel %vm1127_vm14, %v3087_v3, %v3089_v4  ;;  %v3986_v26 = vld [vmem:[#allocation3 + $0xa0] sm:$0xff] }
 0x3e4   : > { %3100 = vst [vmem:[#allocation3 + $0xd0] sm:$0xf] %v3092_v16  ;;  %3882 = vrot.lane.b32.xlu0 %v3876_v15, %s4506_s30  ;;  %3101 = vst [vmem:[#allocation3 + $0xd8] sm:$0xf] %v3093_v17  ;;  %v4409_v49 = vpack.c.bf16 %v3986_v26, %v3982_v42 }
 0x3e5   : > { %3884 = vrot.lane.b32.xlu1 %v3870_v19, %s4506_s30 }
 0x3e6   : > { %v3160_v20 = vpop.permute.xlu0 %3159  ;;  %4410 = vmatpush1.bf16.msra.mxu0 %v4409_v49  ;;  %v3162_v48 = vpop.permute.xlu1 %3161 }
 0x3e7   : > { %v3168_v22 = vsel %vm1102_vm13, %v3160_v20, %v3162_v48  ;;  %v3991_v5 = vld [vmem:[#allocation3 + $0xc8] sm:$0xff] }
 0x3e8   : > { %3886 = vrot.lane.b32.xlu0 %v3877_v55, %s4506_s30  ;;  %3176 = vst [vmem:[#allocation3 + $0xe8] sm:$0xf] %v3168_v22 }
 0x3e9   : > { %3945 = vrot.lane.b32.xlu1 %v3941_v21, %s4507_s7 }
 0x3ea   : > { %v3164_v18 = vpop.permute.xlu0 %3163  ;;  %v3166_v6 = vpop.permute.xlu1 %3165 }
 0x3eb   : > { %v3169_v10 = vsel %vm1102_vm13, %v3162_v48, %v3164_v18  ;;  %v3170_v50 = vsel %vm1102_vm13, %v3164_v18, %v3166_v6  ;;  %v3992_v8 = vld [vmem:[#allocation3 + $0xd0] sm:$0xff]  ;;  %v3993_v28 = vld [vmem:[#allocation3 + $0xd8] sm:$0xff] }
 0x3ec   : > { %3177 = vst [vmem:[#allocation3 + $0xf0] sm:$0xf] %v3169_v10  ;;  %3947 = vrot.lane.b32.xlu0 %v3936_v61, %s4507_s7  ;;  %3178 = vst [vmem:[#allocation3 + $0xf8] sm:$0xf] %v3170_v50 }
 0x3ed   : > { %3949 = vrot.lane.b32.xlu1 %v3942_v44, %s4507_s7 }
 0x3ee   : > { %v3226_v33 = vpop.permute.xlu0 %3225  ;;  %v3228_v59 = vpop.permute.xlu1 %3227 }
 0x3ef   : > { %v3234_v2 = vsel %vm6579_vm3, %v3226_v33, %v3228_v59  ;;  %vm6586_vm3 = vcmask 973824  }
 0x3f0   : > { %3951 = vrot.lane.b32.xlu0 %v3937_v14, %s4507_s7  ;;  %3242 = vst [vmem:[#allocation3 + $0xe8] sm:$0xf0] %v3234_v2 }
 0x3f1   : > { %3812 = vrot.lane.b32.xlu1 %v6393_v56, %s4508_s12 }
 0x3f2   : > { %v3230_v0 = vpop.permute.xlu0 %3229  ;;  %v3232_v38 = vpop.permute.xlu1 %3231 }
 0x3f3   : > { %v3235_v58 = vsel %vm6580_vm15, %v3228_v59, %v3230_v0  ;;  %v3236_v43 = vsel %vm6581_vm2, %v3230_v0, %v3232_v38  ;;  %vm6587_vm15 = vmmov %vm6586_vm3 }
 0x3f4   : > { %3243 = vst [vmem:[#allocation3 + $0xf0] sm:$0xf0] %v3235_v58  ;;  %3878 = vrot.lane.b32.xlu0 %v3875_v62, %s4506_s30  ;;  %3244 = vst [vmem:[#allocation3 + $0xf8] sm:$0xf0] %v3236_v43 }
 0x3f5   : > { %3943 = vrot.lane.b32.xlu1 %v3935_v45, %s4507_s7  ;;  %vm6588_vm2 = vmmov %vm6586_vm3 }
 0x3f6   : > { %v3081_v57 = vpop.permute.xlu0 %3080  ;;  %v3158_v11 = vpop.permute.xlu1 %3157 }
 0x3f7   : > { %v3090_v56 = vsel %vm1127_vm14, %v3081_v57, %v6425_v30  ;;  %v3167_v46 = vsel %vm1102_vm13, %v3158_v11, %v3160_v20  ;;  %v3995_v35 = vld [vmem:[#allocation3 + $0xe8] sm:$0xff]  ;;  %vm6583_vm14 = vcmask 982016  }
 0x3f8   : > { %3098 = vst [vmem:[#allocation3 + $0xc0] sm:$0xf] %v3090_v56  ;;  %4025 = vperm.xlu0 %4487, %v4022_v7   ;;  %3175 = vst [vmem:[#allocation3 + $0xe0] sm:$0xf] %v3167_v46  ;;  %v4411_v32 = vpack.c.bf16 %v3995_v35, %v3991_v5 }
 0x3f9   : > { %vm6584_vm13 = vmmov %vm6583_vm14 }
 0x3fa   : > { %v3224_v37 = vpop.permute.xlu0 %3223  ;;  %4412 = vmatprep.subr.bf16.mxu0 %v4411_v32  ;;  %v3291_v52 = vpop.permute.xlu1 %3290  ;;  %vm6585_vm12 = vmmov %vm6584_vm13 }
 0x3fb   : > { %v3233_v51 = vsel %vm6582_vm11, %v3224_v37, %v3226_v33  ;;  %v3996_v12 = vld [vmem:[#allocation3 + $0xf0] sm:$0xff]  ;;  %v3997_v41 = vld [vmem:[#allocation3 + $0xf8] sm:$0xff]  ;;  %vm6589_vm11 = vmmov %vm6585_vm12 }
 0x3fc   : > { %3241 = vst [vmem:[#allocation3 + $0xe0] sm:$0xf0] %v3233_v51  ;;  %v4443_v23 = vpack.c.bf16 %v3996_v12, %v3992_v8  ;;  %v4441_v34 = vpack.c.bf16 %v3997_v41, %v3993_v28 }
 0x3fe   : > { %v3293_v40 = vpop.permute.xlu0 %3292  ;;  %4442 = vmatprep.subr.bf16.mxu1 %v4441_v34  ;;  %v3295_v29 = vpop.permute.xlu1 %3294 }
 0x3ff   : > { %v3299_v53 = vsel %vm6583_vm14, %v3291_v52, %v3293_v40  ;;  %v3300_v47 = vsel %vm6584_vm13, %v3293_v40, %v3295_v29  ;;  %4444 = vmatpush1.bf16.msra.mxu1 %v4443_v23  ;;  %v3990_v13 = vld [vmem:[#allocation3 + $0xc0] sm:$0xff]  ;;  %vm6590_vm14 = vmmov %vm6588_vm2 }
 0x400   : > { %3307 = vst [vmem:[#allocation3 + $0x108] sm:$0xf] %v3299_v53  ;;  %3308 = vst [vmem:[#allocation3 + $0x110] sm:$0xf] %v3300_v47 }
 0x402   : > { %v3297_v19 = vpop.permute.xlu0 %3296  ;;  %v3357_v1 = vpop.permute.xlu1 %3356 }
 0x403   : > { %v3301_v30 = vsel %vm6585_vm12, %v3295_v29, %v3297_v19  ;;  %v3994_v24 = vld [vmem:[#allocation3 + $0xe0] sm:$0xff] }
 0x404   : > { %3309 = vst [vmem:[#allocation3 + $0x118] sm:$0xf] %v3301_v30  ;;  %v4413_v39 = vpack.c.bf16 %v3994_v24, %v3990_v13 }
 0x406   : > { %v3359_v36 = vpop.permute.xlu0 %3358  ;;  %4414 = vmatpush1.bf16.msra.mxu0 %v4413_v39  ;;  %v3361_v63 = vpop.permute.xlu1 %3360 }
 0x407   : > { %v3365_v25 = vsel %vm6586_vm3, %v3357_v1, %v3359_v36  ;;  %v3366_v15 = vsel %vm6587_vm15, %v3359_v36, %v3361_v63 }
 0x408   : > { %3373 = vst [vmem:[#allocation3 + $0x108] sm:$0xf0] %v3365_v25  ;;  %3374 = vst [vmem:[#allocation3 + $0x110] sm:$0xf0] %v3366_v15 }
 0x40a   : > { %v3363_v3 = vpop.permute.xlu0 %3362 }
 0x40b   : > { %v3367_v45 = vsel %vm6588_vm2, %v3361_v63, %v3363_v3  ;;  %v3422_v16 = vpop.permute.xlu1 %3421 }
 0x40c   : > { %3375 = vst [vmem:[#allocation3 + $0x118] sm:$0xf0] %v3367_v45 }
 0x40e   : > { %v3424_v4 = vpop.permute.xlu0 %3423 }
 0x40f   : > { %v3430_v9 = vsel %vm314_vm9, %v3422_v16, %v3424_v4  ;;  %v3426_v17 = vpop.permute.xlu1 %3425  ;;  %v3999_v14 = vld [vmem:[#allocation3 + $0x108] sm:$0xff]  ;;  %v4000_v56 = vld [vmem:[#allocation3 + $0x110] sm:$0xff] }
 0x410   : > { %3438 = vst [vmem:[#allocation3 + $0x128] sm:$0xf] %v3430_v9  ;;  %v3431_v42 = vsel %vm314_vm9, %v3424_v4, %v3426_v17 }
 0x411   : > { %3439 = vst [vmem:[#allocation3 + $0x130] sm:$0xf] %v3431_v42 }
 0x412   : > { %v3428_v26 = vpop.permute.xlu0 %3427 }
 0x413   : > { %v3432_v49 = vsel %vm314_vm9, %v3426_v17, %v3428_v26  ;;  %v3488_v55 = vpop.permute.xlu1 %3487  ;;  %v4001_v43 = vld [vmem:[#allocation3 + $0x118] sm:$0xff] }
 0x414   : > { %3440 = vst [vmem:[#allocation3 + $0x138] sm:$0xf] %v3432_v49 }
 0x416   : > { %v3490_v20 = vpop.permute.xlu0 %3489 }
 0x417   : > { %v3496_v21 = vsel %vm383_vm8, %v3488_v55, %v3490_v20  ;;  %v3492_v61 = vpop.permute.xlu1 %3491 }
 0x418   : > { %3504 = vst [vmem:[#allocation3 + $0x128] sm:$0xf0] %v3496_v21  ;;  %v3497_v48 = vsel %vm383_vm8, %v3490_v20, %v3492_v61 }
 0x419   : > { %3505 = vst [vmem:[#allocation3 + $0x130] sm:$0xf0] %v3497_v48 }
 0x41a   : > { %v3494_v22 = vpop.permute.xlu0 %3493 }
 0x41b   : > { %v3498_v18 = vsel %vm383_vm8, %v3492_v61, %v3494_v22  ;;  %v3289_v27 = vpop.permute.xlu1 %3288 }
 0x41c   : > { %3506 = vst [vmem:[#allocation3 + $0x138] sm:$0xf0] %v3498_v18  ;;  %v3298_v44 = vsel %vm6589_vm11, %v3289_v27, %v3291_v52 }
 0x41d   : > { %3306 = vst [vmem:[#allocation3 + $0x100] sm:$0xf] %v3298_v44 }
 0x41e   : > { %v3355_v10 = vpop.permute.xlu0 %3354 }
 0x41f   : > { %v3364_v6 = vsel %vm6590_vm14, %v3355_v10, %v3357_v1  ;;  %v3420_v50 = vpop.permute.xlu1 %3419  ;;  %v4003_v33 = vld [vmem:[#allocation3 + $0x128] sm:$0xff] }
 0x420   : > { %3372 = vst [vmem:[#allocation3 + $0x100] sm:$0xf0] %v3364_v6  ;;  %v3429_v59 = vsel %vm314_vm9, %v3420_v50, %v3422_v16  ;;  %v4415_v2 = vpack.c.bf16 %v4003_v33, %v3999_v14  ;;  %v4004_v0 = vld [vmem:[#allocation3 + $0x130] sm:$0xff] }
 0x421   : > { %3437 = vst [vmem:[#allocation3 + $0x120] sm:$0xf] %v3429_v59  ;;  %v4447_v11 = vpack.c.bf16 %v4004_v0, %v4000_v56 }
 0x422   : > { %v3486_v62 = vpop.permute.xlu0 %3485  ;;  %4416 = vmatprep.subr.bf16.mxu0 %v4415_v2 }
 0x423   : > { %v3495_v58 = vsel %vm383_vm8, %v3486_v62, %v3488_v55  ;;  %v3553_v38 = vpop.permute.xlu1 %3552  ;;  %v4005_v7 = vld [vmem:[#allocation3 + $0x138] sm:$0xff] }
 0x424   : > { %3503 = vst [vmem:[#allocation3 + $0x120] sm:$0xf0] %v3495_v58  ;;  %v4445_v57 = vpack.c.bf16 %v4005_v7, %v4001_v43 }
 0x426   : > { %v3555_v46 = vpop.permute.xlu0 %3554  ;;  %4446 = vmatprep.subr.bf16.mxu1 %v4445_v57 }
 0x427   : > { %v3561_v5 = vsel %vm451_vm7, %v3553_v38, %v3555_v46  ;;  %v3557_v35 = vpop.permute.xlu1 %3556  ;;  %4448 = vmatpush1.bf16.msra.mxu1 %v4447_v11  ;;  %v3998_v8 = vld [vmem:[#allocation3 + $0x100] sm:$0xff] }
 0x428   : > { %3569 = vst [vmem:[#allocation3 + $0x148] sm:$0xf] %v3561_v5  ;;  %v3562_v32 = vsel %vm451_vm7, %v3555_v46, %v3557_v35 }
 0x429   : > { %3570 = vst [vmem:[#allocation3 + $0x150] sm:$0xf] %v3562_v32 }
 0x42a   : > { %v3559_v37 = vpop.permute.xlu0 %3558 }
 0x42b   : > { %v3563_v51 = vsel %vm451_vm7, %v3557_v35, %v3559_v37  ;;  %v3619_v52 = vpop.permute.xlu1 %3618  ;;  %v4002_v12 = vld [vmem:[#allocation3 + $0x120] sm:$0xff] }
 0x42c   : > { %3571 = vst [vmem:[#allocation3 + $0x158] sm:$0xf] %v3563_v51  ;;  %v4417_v28 = vpack.c.bf16 %v4002_v12, %v3998_v8 }
 0x42e   : > { %v3621_v41 = vpop.permute.xlu0 %3620  ;;  %4418 = vmatpush1.bf16.msra.mxu0 %v4417_v28 }
 0x42f   : > { %v3627_v23 = vsel %vm520_vm6, %v3619_v52, %v3621_v41  ;;  %v3623_v34 = vpop.permute.xlu1 %3622 }
 0x430   : > { %3635 = vst [vmem:[#allocation3 + $0x148] sm:$0xf0] %v3627_v23  ;;  %v3628_v40 = vsel %vm520_vm6, %v3621_v41, %v3623_v34 }
 0x431   : > { %3636 = vst [vmem:[#allocation3 + $0x150] sm:$0xf0] %v3628_v40 }
 0x432   : > { %v3625_v53 = vpop.permute.xlu0 %3624 }
 0x433   : > { %v3629_v29 = vsel %vm520_vm6, %v3623_v34, %v3625_v53  ;;  %v3684_v47 = vpop.permute.xlu1 %3683 }
 0x434   : > { %3637 = vst [vmem:[#allocation3 + $0x158] sm:$0xf0] %v3629_v29 }
 0x436   : > { %v3686_v19 = vpop.permute.xlu0 %3685 }
 0x437   : > { %v3692_v30 = vsel %vm563_vm5, %v3684_v47, %v3686_v19  ;;  %v3688_v1 = vpop.permute.xlu1 %3687  ;;  %v4007_v49 = vld [vmem:[#allocation3 + $0x148] sm:$0xff] }
 0x438   : > { %3700 = vst [vmem:[#allocation3 + $0x168] sm:$0xf] %v3692_v30  ;;  %v3693_v13 = vsel %vm563_vm5, %v3686_v19, %v3688_v1  ;;  %v4008_v6 = vld [vmem:[#allocation3 + $0x150] sm:$0xff] }
 0x439   : > { %3701 = vst [vmem:[#allocation3 + $0x170] sm:$0xf] %v3693_v13 }
 0x43a   : > { %v3690_v24 = vpop.permute.xlu0 %3689 }
 0x43b   : > { %v3694_v39 = vsel %vm563_vm5, %v3688_v1, %v3690_v24  ;;  %v3750_v36 = vpop.permute.xlu1 %3749  ;;  %v4009_v27 = vld [vmem:[#allocation3 + $0x158] sm:$0xff] }
 0x43c   : > { %3702 = vst [vmem:[#allocation3 + $0x178] sm:$0xf] %v3694_v39 }
 0x43e   : > { %v3752_v25 = vpop.permute.xlu0 %3751 }
 0x43f   : > { %v3758_v63 = vsel %vm494_vm4, %v3750_v36, %v3752_v25  ;;  %v3754_v15 = vpop.permute.xlu1 %3753 }
 0x440   : > { %3766 = vst [vmem:[#allocation3 + $0x168] sm:$0xf0] %v3758_v63  ;;  %v3759_v3 = vsel %vm494_vm4, %v3752_v25, %v3754_v15 }
 0x441   : > { %3767 = vst [vmem:[#allocation3 + $0x170] sm:$0xf0] %v3759_v3 }
 0x442   : > { %v3756_v45 = vpop.permute.xlu0 %3755 }
 0x443   : > { %v3760_v16 = vsel %vm494_vm4, %v3754_v15, %v3756_v45  ;;  %v3551_v4 = vpop.permute.xlu1 %3550  ;;  %v3965_v15 = vld [vmem:[%s6539_s3] sm:$0xf] }
 0x444   : > { %3768 = vst [vmem:[#allocation3 + $0x178] sm:$0xf0] %v3760_v16  ;;  %v3560_v9 = vsel %vm451_vm7, %v3551_v4, %v3553_v38 }
 0x445   : > { %3568 = vst [vmem:[#allocation3 + $0x140] sm:$0xf] %v3560_v9  ;;  %v4188_v9 = vcombine.high %v5154_v60, %v5154_v60 }
 0x446   : > { %v3617_v17 = vpop.permute.xlu0 %3616 }
 0x447   : > { %v3626_v42 = vsel %vm520_vm6, %v3617_v17, %v3619_v52  ;;  %v3682_v26 = vpop.permute.xlu1 %3681  ;;  %v4011_v55 = vld [vmem:[#allocation3 + $0x168] sm:$0xff]  ;;  %vm6591_vm6 = vcmask 465920  }
 0x448   : > { %3634 = vst [vmem:[#allocation3 + $0x140] sm:$0xf0] %v3626_v42  ;;  %v3691_v20 = vsel %vm563_vm5, %v3682_v26, %v3684_v47  ;;  %v4419_v21 = vpack.c.bf16 %v4011_v55, %v4007_v49  ;;  %v4012_v48 = vld [vmem:[#allocation3 + $0x170] sm:$0xff]  ;;  %vm6592_vm5 = vmmov %vm6591_vm6 }
 0x449   : > { %3699 = vst [vmem:[#allocation3 + $0x160] sm:$0xf] %v3691_v20  ;;  %v4451_v50 = vpack.c.bf16 %v4012_v48, %v4008_v6  ;;  %vm6593_vm7 = vmmov %vm6592_vm5 }
 0x44a   : > { %v3748_v61 = vpop.permute.xlu0 %3747  ;;  %4420 = vmatprep.subr.bf16.mxu0 %v4419_v21  ;;  %v4187_v21 = vcombine.high %v5157_v31, %v5157_v31 }
 0x44b   : > { %v3757_v22 = vsel %vm494_vm4, %v3748_v61, %v3750_v36  ;;  %v3815_v18 = vpop.permute.xlu1 %3814  ;;  %v4013_v44 = vld [vmem:[#allocation3 + $0x178] sm:$0xff]  ;;  %vm6594_vm4 = vmmov %vm6592_vm5 }
 0x44c   : > { %3765 = vst [vmem:[#allocation3 + $0x160] sm:$0xf0] %v3757_v22  ;;  %v4449_v10 = vpack.c.bf16 %v4013_v44, %v4009_v27 }
 0x44e   : > { %v3817_v14 = vpop.permute.xlu0 %3816  ;;  %4450 = vmatprep.subr.bf16.mxu1 %v4449_v10 }
 0x44f   : > { %v3823_v33 = vsel %vm6591_vm6, %v3815_v18, %v3817_v14  ;;  %v3819_v59 = vpop.permute.xlu1 %3818  ;;  %4452 = vmatpush1.bf16.msra.mxu1 %v4451_v50  ;;  %v4006_v38 = vld [vmem:[#allocation3 + $0x140] sm:$0xff] }
 0x450   : > { %3831 = vst [vmem:[#allocation3 + $0x188] sm:$0xf] %v3823_v33  ;;  %v3824_v2 = vsel %vm6592_vm5, %v3817_v14, %v3819_v59 }
 0x451   : > { %3832 = vst [vmem:[#allocation3 + $0x190] sm:$0xf] %v3824_v2 }
 0x452   : > { %v3821_v62 = vpop.permute.xlu0 %3820 }
 0x453   : > { %v3825_v0 = vsel %vm6593_vm7, %v3819_v59, %v3821_v62  ;;  %v3881_v58 = vpop.permute.xlu1 %3880  ;;  %v4010_v43 = vld [vmem:[#allocation3 + $0x160] sm:$0xff] }
 0x454   : > { %3833 = vst [vmem:[#allocation3 + $0x198] sm:$0xf] %v3825_v0  ;;  %v4421_v7 = vpack.c.bf16 %v4010_v43, %v4006_v38 }
 0x456   : > { %v3883_v57 = vpop.permute.xlu0 %3882  ;;  %4422 = vmatpush1.bf16.msra.mxu0 %v4421_v7 }
 0x457   : > { %v3889_v56 = vsel %vm357_vm0, %v3881_v58, %v3883_v57  ;;  %v3885_v11 = vpop.permute.xlu1 %3884 }
 0x458   : > { %3897 = vst [vmem:[#allocation3 + $0x188] sm:$0xf0] %v3889_v56  ;;  %v3890_v46 = vsel %vm357_vm0, %v3883_v57, %v3885_v11 }
 0x459   : > { %3898 = vst [vmem:[#allocation3 + $0x190] sm:$0xf0] %v3890_v46 }
 0x45a   : > { %v3887_v5 = vpop.permute.xlu0 %3886 }
 0x45b   : > { %v3891_v35 = vsel %vm357_vm0, %v3885_v11, %v3887_v5  ;;  %v3946_v32 = vpop.permute.xlu1 %3945 }
 0x45c   : > { %3899 = vst [vmem:[#allocation3 + $0x198] sm:$0xf0] %v3891_v35 }
 0x45e   : > { %v3948_v37 = vpop.permute.xlu0 %3947 }
 0x45f   : > { %v3954_v51 = vsel %vm288_vm1, %v3946_v32, %v3948_v37  ;;  %v3950_v52 = vpop.permute.xlu1 %3949  ;;  %v4015_v29 = vld [vmem:[#allocation3 + $0x188] sm:$0xff] }
 0x460   : > { %3962 = vst [vmem:[#allocation3 + $0x1a8] sm:$0xf] %v3954_v51  ;;  %v3955_v8 = vsel %vm288_vm1, %v3948_v37, %v3950_v52  ;;  %v4016_v36 = vld [vmem:[#allocation3 + $0x190] sm:$0xff] }
 0x461   : > { %3963 = vst [vmem:[#allocation3 + $0x1b0] sm:$0xf] %v3955_v8 }
 0x462   : > { %v3952_v12 = vpop.permute.xlu0 %3951 }
 0x463   : > { %v3956_v28 = vsel %vm288_vm1, %v3950_v52, %v3952_v12  ;;  %v3813_v41 = vpop.permute.xlu1 %3812  ;;  %v4017_v13 = vld [vmem:[#allocation3 + $0x198] sm:$0xff] }
 0x464   : > { %3964 = vst [vmem:[#allocation3 + $0x1b8] sm:$0xf] %v3956_v28  ;;  %v3822_v23 = vsel %vm6594_vm4, %v3813_v41, %v3815_v18 }
 0x465   : > { %3830 = vst [vmem:[#allocation3 + $0x180] sm:$0xf] %v3822_v23 }
 0x466   : > { %v3879_v34 = vpop.permute.xlu0 %3878 }
 0x467   : > { %v3888_v40 = vsel %vm357_vm0, %v3879_v34, %v3881_v58  ;;  %v3944_v53 = vpop.permute.xlu1 %3943  ;;  %v4019_v47 = vld [vmem:[#allocation3 + $0x1a8] sm:$0xf]  ;;  %vm6595_vm0 = vcmask 883712  }
 0x468   : > { %3896 = vst [vmem:[#allocation3 + $0x180] sm:$0xf0] %v3888_v40  ;;  %v3953_v19 = vsel %vm288_vm1, %v3944_v53, %v3946_v32  ;;  %v4423_v30 = vpack.c.bf16 %v4019_v47, %v4015_v29  ;;  %v4020_v1 = vld [vmem:[#allocation3 + $0x1b0] sm:$0xf]  ;;  %vm6596_vm1 = vmmov %vm6595_vm0 }
 0x469   : > { %3961 = vst [vmem:[#allocation3 + $0x1a0] sm:$0xf] %v3953_v19  ;;  %v4456_v25 = vpack.c.bf16 %v4020_v1, %v4016_v36 }
 0x46a   : > { %4425 = vmatprep.subr.msk.bf16.mxu0 %vm5780_vm10, %v4423_v30 }
 0x46b   : > { %v4021_v24 = vld [vmem:[#allocation3 + $0x1b8] sm:$0xf] }
 0x46c   : > { %v4453_v39 = vpack.c.bf16 %v4021_v24, %v4017_v13 }
 0x46e   : > { %4455 = vmatprep.subr.msk.bf16.mxu1 %vm5780_vm10, %v4453_v39 }
 0x46f   : > { %4458 = vmatpush1.bf16.msk.msra.mxu1 %vm5780_vm10, %v4456_v25  ;;  %v4014_v63 = vld [vmem:[#allocation3 + $0x180] sm:$0xff] }
 0x470   : > { %v4018_v3 = vld [vmem:[#allocation3 + $0x1a0] sm:$0xf] }
 0x471   : > { %v4426_v45 = vpack.c.bf16 %v4018_v3, %v4014_v63 }
 0x472   : > { %4334 = vmatmul.mubr.msk.f32.vlgmr.msra.gmra.mrb[2].mxu1 %vm6595_vm0, %v3965_v15 }
 0x473   : > { %4428 = vmatpush1.bf16.msk.msra.mxu0 %vm5780_vm10, %v4426_v45 }
 0x476   : > { %4331 = vmatmul.mubr.msk.f32.vlgmr.msra.gmra.mrb[2].mxu0 %vm6596_vm1, %v3965_v15 }
 0x477   : > { %v4026_v16 = vpop.permute.xlu0 %4025 }
 0x545   : > { %v4180_v4 = vpop.f32.mrb[2].mxu1 }
 0x546   : > { %v4181_v17 = vadd.f32 %v4180_v4, %v4026_v16  ;;  %v4182_v42 = vpop.f32.mrb[3].mxu1 }
 0x547   : > { %v4183_v26 = vadd.f32 %v4182_v42, %v4026_v16 }
 0x548   : > { %v4193_v49 = vadd.f32 %v5154_v60, %v4181_v17 }
 0x549   : > { %v4194_v55 = vadd.f32 %v4188_v9, %v4183_v26  ;;  %v4109_v20 = vpop.f32.mrb[2].mxu0 }
 0x54a   : > { %v4197_v54 = vmax.f32 %v4193_v49, 0.0  ;;  %v4110_v61 = vadd.f32 %v4109_v20, %v4026_v16  ;;  %v4111_v48 = vpop.f32.mrb[3].mxu0 }
 0x54b   : > { %v4198_v22 = vmax.f32 %v4194_v55, 0.0  ;;  %v4112_v18 = vadd.f32 %v4111_v48, %v4026_v16 }
 0x54c   : > { %v4191_v27 = vadd.f32 %v5157_v31, %v4110_v61 }
 0x54d   : > { %v4204_v44 = vcombine.low %v4197_v54, %v4198_v22  ;;  %v4192_v10 = vadd.f32 %v4187_v21, %v4112_v18 }
 0x54e   : > { %v4195_v60 = vmax.f32 %v4191_v27, 0.0 }
 0x54f   : > { %4208 = vst [vmem:[%s251_s8 + $0x8] sm:$0xff] %v4204_v44  ;;  %v4196_v6 = vmax.f32 %v4192_v10, 0.0 }
 0x551   : > { %v4203_v50 = vcombine.low %v4195_v60, %v4196_v6 }
 0x553   : > { %4207 = vst [vmem:[%s251_s8] sm:$0xff] %v4203_v50 }
 0x554 PF: > { %s16_s21 = sadd.s32 1, %s4504_s21  }
 0x555   : > { %p13_p4 = scmp.ge.s32.totalorder %s16_s21, 4  }
 0x557   :  { %15 = sbr.rel (!%p13_p4) target bundleno = 1 (0x1), region = 99 }

</bundles_post_ra>
